<compile_context>
chip_gen: v5e
topology: v5e:2x2
jax: 0.10.0
libtpu: 0.0.40
codegen_flags: <defaults>
</compile_context>

<pallas_src>
import functools
import math

import jax
import jax.numpy as jnp
from jax import lax
from jax.experimental import pallas as pl
from jax.experimental.pallas import tpu as pltpu  # noqa: F401  (TPU backend)

_MXU_DTYPE = jnp.bfloat16   # MXU operand dtype; accumulation stays f32
D_PAD = 128                 # lane-dense padded hidden width
OUT_PAD = 128               # lane-dense padded output width


def _masked_layernorm(x, gamma, beta, mask, inv_n, eps):
    """LayerNorm over the real (unpadded) columns only; padded columns stay exactly zero
    because gamma/beta are zero there and deviations are masked."""
    mean = jnp.sum(x, axis=-1, keepdims=True) * inv_n          # padded cols of x are zero
    d = (x - mean) * mask
    var = jnp.sum(d * d, axis=-1, keepdims=True) * inv_n
    return d * lax.rsqrt(var + eps) * gamma + beta


# ---------------- Single fused Pallas kernel (whole forward) ----------------

def _transformer_kernel(x_ref, pe_ref, emb_w_ref, emb_b_ref,
                        wqkv_ref, bqkv_ref, wo_ref, bo_ref,
                        w1_ref, b1_ref, w2_ref, b2_ref,
                        ln1_g_ref, ln1_b_ref, ln2_g_ref, ln2_b_ref,
                        fc_w_ref, fc_b_ref, o_ref,
                        *, num_layers, num_heads, d_model, eps):
    f32 = jnp.float32
    S = x_ref.shape[0]
    d_pad = emb_w_ref.shape[1]
    dh_pad = d_pad // num_heads

    inv_n = 1.0 / d_model
    # Hoisted once: mask of the real hidden columns (padded cols >= d_model are zero).
    col_mask = (lax.broadcasted_iota(jnp.int32, (S, d_pad), 1) < d_model).astype(f32)

    # --- embedding + positional encoding ---
    # TODO(synk): nn.Dropout(p=0.1) after the PE add is stochastic; identity (eval mode).
    h = (jnp.dot(x_ref[...].astype(_MXU_DTYPE), emb_w_ref[...],
                 preferred_element_type=f32)
         + emb_b_ref[...] + pe_ref[...])                        # (S, d_pad), padded cols == 0

    # --- encoder layers (post-norm, ReLU FFN, eval mode), statically unrolled ---
    # TODO(synk): attention / FFN dropouts are stochastic; identity (eval-mode semantics).
    for l in range(num_layers):
        # Packed QKV projection (1/sqrt(d_head) already folded into the Q weights/bias).
        qkv = (jnp.dot(h.astype(_MXU_DTYPE), wqkv_ref[l],
                       preferred_element_type=f32) + bqkv_ref[l])   # (S, 3*d_pad) f32
        qkv_b = qkv.astype(_MXU_DTYPE)
        wo_l = wo_ref[l]                                            # (d_pad, d_pad) bf16

        attn = jnp.zeros((S, d_pad), f32)
        for hd in range(num_heads):                                 # static unroll
            lo = hd * dh_pad                                        # 32-lane aligned head block
            q = qkv_b[:, lo:lo + dh_pad]
            k = qkv_b[:, d_pad + lo:d_pad + lo + dh_pad]
            v = qkv_b[:, 2 * d_pad + lo:2 * d_pad + lo + dh_pad]
            s = lax.dot_general(q, k, (((1,), (1,)), ((), ())),
                                preferred_element_type=f32)          # (S, S), exact (pads are 0)
            s = s - jnp.max(s, axis=-1, keepdims=True)
            p = jnp.exp(s)
            p = p / jnp.sum(p, axis=-1, keepdims=True)               # exact divide (PyTorch parity)
            ctx = jnp.dot(p.astype(_MXU_DTYPE), v,
                          preferred_element_type=f32)                # (S, dh_pad)
            # Head recombination folded into the out-projection contraction — no concat.
            attn = attn + jnp.dot(ctx.astype(_MXU_DTYPE),
                                  wo_l[lo:lo + dh_pad, :],
                                  preferred_element_type=f32)
        attn = attn + bo_ref[l]

        # residual + LayerNorm 1 (f32 statistics over the real d_model columns)
        h1 = _masked_layernorm(h + attn, ln1_g_ref[l], ln1_b_ref[l], col_mask, inv_n, eps)

        # feed-forward (ReLU); the (S, d_ff) intermediate never leaves VMEM/vregs
        ff = jnp.maximum(jnp.dot(h1.astype(_MXU_DTYPE), w1_ref[l],
                                 preferred_element_type=f32) + b1_ref[l], 0.0)
        ff2 = jnp.dot(ff.astype(_MXU_DTYPE), w2_ref[l],
                      preferred_element_type=f32) + b2_ref[l]

        # residual + LayerNorm 2
        h = _masked_layernorm(h1 + ff2, ln2_g_ref[l], ln2_b_ref[l], col_mask, inv_n, eps)

    # --- final linear; output lane-padded to 128, wrapper slices back to output_dim ---
    o_ref[...] = (jnp.dot(h.astype(_MXU_DTYPE), fc_w_ref[...],
                          preferred_element_type=f32) + fc_b_ref[...])


# ---------------- Parameter construction (deterministic; padded, bf16 weights) ----------------

def make_pe(max_seq_len, d_model, d_pad):
    position = jnp.arange(max_seq_len, dtype=jnp.float32)[:, None]
    div_term = jnp.exp(
        jnp.arange(0, d_model, 2, dtype=jnp.float32) * (-math.log(10000.0) / d_model))
    ang = position * div_term
    pe = jnp.zeros((max_seq_len, d_pad), jnp.float32)
    pe = pe.at[:, 0:d_model:2].set(jnp.sin(ang))
    pe = pe.at[:, 1:d_model:2].set(jnp.cos(ang))
    return pe


def make_params(key, input_dim, output_dim, hidden_dim, num_layers, num_heads, d_ff,
                max_seq_len=100):
    assert hidden_dim % num_heads == 0 and D_PAD % num_heads == 0
    dh = hidden_dim // num_heads
    dh_pad = D_PAD // num_heads
    assert dh_pad >= dh
    scale = 1.0 / math.sqrt(dh)

    def u(k, shape, fan_in):
        bound = 1.0 / math.sqrt(fan_in)
        return jax.random.uniform(k, shape, jnp.float32, -bound, bound)

    keys = iter(jax.random.split(key, 4 + 8 * num_layers))

    emb_w = jnp.zeros((input_dim, D_PAD), jnp.float32).at[:, :hidden_dim].set(
        u(next(keys), (input_dim, hidden_dim), input_dim))
    emb_b = jnp.zeros((1, D_PAD), jnp.float32).at[:, :hidden_dim].set(
        u(next(keys), (1, hidden_dim), input_dim))
    fc_w = jnp.zeros((D_PAD, OUT_PAD), jnp.float32).at[:hidden_dim, :output_dim].set(
        u(next(keys), (hidden_dim, output_dim), hidden_dim))
    fc_b = jnp.zeros((1, OUT_PAD), jnp.float32).at[:, :output_dim].set(
        u(next(keys), (1, output_dim), hidden_dim))

    names = ("wqkv", "bqkv", "wo", "bo", "w1", "b1", "w2", "b2",
             "ln1_g", "ln1_b", "ln2_g", "ln2_b")
    L = {n: [] for n in names}
    for _ in range(num_layers):
        w_in = u(next(keys), (hidden_dim, 3 * hidden_dim), hidden_dim)
        b_in = u(next(keys), (1, 3 * hidden_dim), hidden_dim)
        # fold the 1/sqrt(d_head) attention scale into the Q projection (weights + bias)
        w_in = w_in.at[:, :hidden_dim].multiply(scale)
        b_in = b_in.at[:, :hidden_dim].multiply(scale)

        # scatter into the lane-dense padded layout: head hd's dh real columns sit at the
        # start of its dh_pad-wide block inside each of the Q / K / V 128-wide sections.
        wqkv = jnp.zeros((D_PAD, 3 * D_PAD), jnp.float32)
        bqkv = jnp.zeros((1, 3 * D_PAD), jnp.float32)
        for part in range(3):            # Q, K, V
            for hd in range(num_heads):
                src = part * hidden_dim + hd * dh
                dst = part * D_PAD + hd * dh_pad
                wqkv = wqkv.at[:hidden_dim, dst:dst + dh].set(w_in[:, src:src + dh])
                bqkv = bqkv.at[:, dst:dst + dh].set(b_in[:, src:src + dh])

        # out-projection: rows permuted into the same per-head padded layout
        wo_real = u(next(keys), (hidden_dim, hidden_dim), hidden_dim)
        wo = jnp.zeros((D_PAD, D_PAD), jnp.float32)
        for hd in range(num_heads):
            wo = wo.at[hd * dh_pad:hd * dh_pad + dh, :hidden_dim].set(
                wo_real[hd * dh:(hd + 1) * dh, :])
        bo = jnp.zeros((1, D_PAD), jnp.float32).at[:, :hidden_dim].set(
            u(next(keys), (1, hidden_dim), hidden_dim))

        w1 = jnp.zeros((D_PAD, d_ff), jnp.float32).at[:hidden_dim, :].set(
            u(next(keys), (hidden_dim, d_ff), hidden_dim))
        b1 = u(next(keys), (1, d_ff), hidden_dim)
        w2 = jnp.zeros((d_ff, D_PAD), jnp.float32).at[:, :hidden_dim].set(
            u(next(keys), (d_ff, hidden_dim), d_ff))
        b2 = jnp.zeros((1, D_PAD), jnp.float32).at[:, :hidden_dim].set(
            u(next(keys), (1, hidden_dim), d_ff))

        ln_g = jnp.zeros((1, D_PAD), jnp.float32).at[:, :hidden_dim].set(1.0)
        ln_b = jnp.zeros((1, D_PAD), jnp.float32)

        for n, v in zip(names, (wqkv, bqkv, wo, bo, w1, b1, w2, b2,
                                ln_g, ln_b, ln_g, ln_b)):
            L[n].append(v)

    bf16 = jnp.bfloat16
    return {
        "emb_w": emb_w.astype(bf16), "emb_b": emb_b,
        "fc_w": fc_w.astype(bf16), "fc_b": fc_b,
        "pe": make_pe(max_seq_len, hidden_dim, D_PAD),
        "wqkv": jnp.stack(L["wqkv"]).astype(bf16), "bqkv": jnp.stack(L["bqkv"]),
        "wo": jnp.stack(L["wo"]).astype(bf16), "bo": jnp.stack(L["bo"]),
        "w1": jnp.stack(L["w1"]).astype(bf16), "b1": jnp.stack(L["b1"]),
        "w2": jnp.stack(L["w2"]).astype(bf16), "b2": jnp.stack(L["b2"]),
        "ln1_g": jnp.stack(L["ln1_g"]), "ln1_b": jnp.stack(L["ln1_b"]),
        "ln2_g": jnp.stack(L["ln2_g"]), "ln2_b": jnp.stack(L["ln2_b"]),
    }


# ---------------- Forward pass (matches PyTorch Transformer.forward, eval mode) ----------------

@functools.partial(jax.jit,
                   static_argnames=("num_layers", "num_heads", "hidden_dim", "output_dim"))
def transformer_forward(x, params, *, num_layers, num_heads, hidden_dim, output_dim):
    S = x.shape[0]
    d_pad = params["emb_w"].shape[1]
    out_pad = params["fc_w"].shape[1]
    d_ff = params["w1"].shape[-1]
    dh_pad = d_pad // num_heads

    inputs = (x, params["pe"][:S], params["emb_w"], params["emb_b"],
              params["wqkv"], params["bqkv"], params["wo"], params["bo"],
              params["w1"], params["b1"], params["w2"], params["b2"],
              params["ln1_g"], params["ln1_b"], params["ln2_g"], params["ln2_b"],
              params["fc_w"], params["fc_b"])

    # Advisory cost estimate for XLA scheduling around the fused custom call.
    bytes_accessed = sum(a.size * a.dtype.itemsize for a in inputs) + S * out_pad * 4
    flops = 2 * S * x.shape[1] * d_pad
    flops += num_layers * (2 * S * d_pad * 3 * d_pad            # QKV
                           + num_heads * 4 * S * S * dh_pad      # scores + ctx
                           + 2 * S * d_pad * d_pad               # out-proj
                           + 4 * S * d_pad * d_ff)               # FFN
    flops += 2 * S * d_pad * out_pad
    transcendentals = num_layers * num_heads * S * S             # softmax exp

    out = pl.pallas_call(
        functools.partial(_transformer_kernel, num_layers=num_layers, num_heads=num_heads,
                          d_model=hidden_dim, eps=1e-5),
        out_shape=jax.ShapeDtypeStruct((S, out_pad), jnp.float32),
        cost_estimate=pl.CostEstimate(flops=flops, transcendentals=transcendentals,
                                      bytes_accessed=bytes_accessed),
    )(*inputs)
    return out[:, :output_dim]


if __name__ == "__main__":
    # Small config consistent with the module's constructor:
    # Transformer(input_dim=16, output_dim=8, hidden_dim=32, num_layers=2, num_heads=4)
    # (dim_feedforward stays at the nn.TransformerEncoderLayer default of 2048)
    INPUT_DIM, OUTPUT_DIM, HIDDEN_DIM = 16, 8, 32
    NUM_LAYERS, NUM_HEADS, D_FF = 2, 4, 2048
    SEQ_LEN = 8

    key = jax.random.PRNGKey(0)
    k_x, k_p = jax.random.split(key)
    x = jax.random.normal(k_x, (SEQ_LEN, INPUT_DIM), dtype=jnp.float32)
    params = make_params(k_p, INPUT_DIM, OUTPUT_DIM, HIDDEN_DIM, NUM_LAYERS, NUM_HEADS, D_FF)

    out = transformer_forward(x, params, num_layers=NUM_LAYERS, num_heads=NUM_HEADS,
                              hidden_dim=HIDDEN_DIM, output_dim=OUTPUT_DIM)
    out = jax.block_until_ready(out)
    assert out.shape == (SEQ_LEN, OUTPUT_DIM), out.shape
    assert bool(jnp.all(jnp.isfinite(out)))
    print("KERNEL_OK")
</pallas_src>

<mosaic_0001>
module attributes {stable_mosaic.version = 11 : i64} {
  func.func @_transformer_kernel(%arg0: memref<8x16xf32, #tpu.memory_space<vmem>>, %arg1: memref<8x128xf32, #tpu.memory_space<vmem>>, %arg2: memref<16x128xbf16, #tpu.memory_space<vmem>>, %arg3: memref<1x128xf32, #tpu.memory_space<vmem>>, %arg4: memref<2x128x384xbf16, #tpu.memory_space<vmem>>, %arg5: memref<2x1x384xf32, #tpu.memory_space<vmem>>, %arg6: memref<2x128x128xbf16, #tpu.memory_space<vmem>>, %arg7: memref<2x1x128xf32, #tpu.memory_space<vmem>>, %arg8: memref<2x128x2048xbf16, #tpu.memory_space<vmem>>, %arg9: memref<2x1x2048xf32, #tpu.memory_space<vmem>>, %arg10: memref<2x2048x128xbf16, #tpu.memory_space<vmem>>, %arg11: memref<2x1x128xf32, #tpu.memory_space<vmem>>, %arg12: memref<2x1x128xf32, #tpu.memory_space<vmem>>, %arg13: memref<2x1x128xf32, #tpu.memory_space<vmem>>, %arg14: memref<2x1x128xf32, #tpu.memory_space<vmem>>, %arg15: memref<2x1x128xf32, #tpu.memory_space<vmem>>, %arg16: memref<128x128xbf16, #tpu.memory_space<vmem>>, %arg17: memref<1x128xf32, #tpu.memory_space<vmem>>, %arg18: memref<8x128xf32, #tpu.memory_space<vmem>>) attributes {dimension_semantics = [], scalar_prefetch = 0 : i64, scratch_operands = 0 : i64, tpu.core_type = #tpu.core_type<tc>} {
    %0 = tpu.iota {dimensions = array<i32: 1>} : vector<8x128xi32>
    %c32_i32 = arith.constant 32 : i32
    %1 = vector.broadcast %c32_i32 : i32 to vector<8x128xi32>
    %2 = arith.cmpi slt, %0, %1 : vector<8x128xi32>
    %3 = arith.extui %2 : vector<8x128xi1> to vector<8x128xi32>
    %4 = arith.sitofp %3 : vector<8x128xi32> to vector<8x128xf32>
    %c0 = arith.constant 0 : index
    %c0_0 = arith.constant 0 : index
    %5 = vector.load %arg0[%c0, %c0_0] : memref<8x16xf32, #tpu.memory_space<vmem>>, vector<8x16xf32>
    %6 = arith.truncf %5 : vector<8x16xf32> to vector<8x16xbf16>
    %c0_1 = arith.constant 0 : index
    %c0_2 = arith.constant 0 : index
    %7 = vector.load %arg2[%c0_1, %c0_2] : memref<16x128xbf16, #tpu.memory_space<vmem>>, vector<16x128xbf16>
    %cst = arith.constant dense<0.000000e+00> : vector<8x128xf32>
    %8 = tpu.matmul %6, %7, %cst {dimension_numbers = #tpu.dot_dimension_numbers<[1], [0], [0], [1], [0, 0, 1, 1], [], []>} : vector<8x16xbf16>, vector<16x128xbf16>, vector<8x128xf32> -> vector<8x128xf32>
    %c0_3 = arith.constant 0 : index
    %c0_4 = arith.constant 0 : index
    %9 = vector.load %arg3[%c0_3, %c0_4] : memref<1x128xf32, #tpu.memory_space<vmem>>, vector<1x128xf32>
    %10 = vector.broadcast %9 : vector<1x128xf32> to vector<8x128xf32>
    %11 = arith.addf %8, %10 : vector<8x128xf32>
    %c0_5 = arith.constant 0 : index
    %c0_6 = arith.constant 0 : index
    %12 = vector.load %arg1[%c0_5, %c0_6] : memref<8x128xf32, #tpu.memory_space<vmem>>, vector<8x128xf32>
    %13 = arith.addf %11, %12 : vector<8x128xf32>
    %14 = arith.truncf %13 : vector<8x128xf32> to vector<8x128xbf16>
    %c0_7 = arith.constant 0 : index
    %c0_8 = arith.constant 0 : index
    %c0_9 = arith.constant 0 : index
    %15 = vector.load %arg4[%c0_7, %c0_8, %c0_9] : memref<2x128x384xbf16, #tpu.memory_space<vmem>>, vector<1x128x384xbf16>
    %16 = vector.shape_cast %15 : vector<1x128x384xbf16> to vector<128x384xbf16>
    %cst_10 = arith.constant dense<0.000000e+00> : vector<8x384xf32>
    %17 = tpu.matmul %14, %16, %cst_10 {dimension_numbers = #tpu.dot_dimension_numbers<[1], [0], [0], [1], [0, 0, 1, 1], [], []>} : vector<8x128xbf16>, vector<128x384xbf16>, vector<8x384xf32> -> vector<8x384xf32>
    %c0_11 = arith.constant 0 : index
    %c0_12 = arith.constant 0 : index
    %c0_13 = arith.constant 0 : index
    %18 = vector.load %arg5[%c0_11, %c0_12, %c0_13] : memref<2x1x384xf32, #tpu.memory_space<vmem>>, vector<1x1x384xf32>
    %19 = vector.shape_cast %18 : vector<1x1x384xf32> to vector<1x384xf32>
    %20 = vector.broadcast %19 : vector<1x384xf32> to vector<8x384xf32>
    %21 = arith.addf %17, %20 : vector<8x384xf32>
    %22 = arith.truncf %21 : vector<8x384xf32> to vector<8x384xbf16>
    %c0_14 = arith.constant 0 : index
    %c0_15 = arith.constant 0 : index
    %c0_16 = arith.constant 0 : index
    %23 = vector.load %arg6[%c0_14, %c0_15, %c0_16] : memref<2x128x128xbf16, #tpu.memory_space<vmem>>, vector<1x128x128xbf16>
    %24 = vector.shape_cast %23 : vector<1x128x128xbf16> to vector<128x128xbf16>
    %cst_17 = arith.constant 0.000000e+00 : f32
    %25 = vector.broadcast %cst_17 : f32 to vector<8x128xf32>
    %26 = vector.extract_strided_slice %22 {offsets = [0, 0], sizes = [8, 32], strides = [1, 1]} : vector<8x384xbf16> to vector<8x32xbf16>
    %27 = vector.extract_strided_slice %22 {offsets = [0, 128], sizes = [8, 32], strides = [1, 1]} : vector<8x384xbf16> to vector<8x32xbf16>
    %28 = vector.extract_strided_slice %22 {offsets = [0, 256], sizes = [8, 32], strides = [1, 1]} : vector<8x384xbf16> to vector<8x32xbf16>
    %cst_18 = arith.constant dense<0.000000e+00> : vector<8x8xf32>
    %29 = tpu.matmul %26, %27, %cst_18 {dimension_numbers = #tpu.dot_dimension_numbers<[1], [1], [0], [0], [0, 0, 1, 0], [], []>} : vector<8x32xbf16>, vector<8x32xbf16>, vector<8x8xf32> -> vector<8x8xf32>
    %cst_19 = arith.constant dense<0xFF800000> : vector<8xf32>
    %30 = vector.multi_reduction <maximumf>, %29, %cst_19 [1] : vector<8x8xf32> to vector<8xf32>
    %31 = vector.shape_cast %30 : vector<8xf32> to vector<8x1xf32>
    %32 = vector.broadcast %31 : vector<8x1xf32> to vector<8x8xf32>
    %33 = arith.subf %29, %32 : vector<8x8xf32>
    %34 = math.exp %33 : vector<8x8xf32>
    %cst_20 = arith.constant dense<0.000000e+00> : vector<8xf32>
    %35 = vector.multi_reduction <add>, %34, %cst_20 [1] : vector<8x8xf32> to vector<8xf32>
    %36 = vector.shape_cast %35 : vector<8xf32> to vector<8x1xf32>
    %37 = vector.broadcast %36 : vector<8x1xf32> to vector<8x8xf32>
    %38 = arith.divf %34, %37 : vector<8x8xf32>
    %39 = arith.truncf %38 : vector<8x8xf32> to vector<8x8xbf16>
    %cst_21 = arith.constant dense<0.000000e+00> : vector<8x32xf32>
    %40 = tpu.matmul %39, %28, %cst_21 {dimension_numbers = #tpu.dot_dimension_numbers<[1], [0], [0], [1], [0, 0, 1, 1], [], []>} : vector<8x8xbf16>, vector<8x32xbf16>, vector<8x32xf32> -> vector<8x32xf32>
    %41 = arith.truncf %40 : vector<8x32xf32> to vector<8x32xbf16>
    %42 = vector.extract_strided_slice %24 {offsets = [0, 0], sizes = [32, 128], strides = [1, 1]} : vector<128x128xbf16> to vector<32x128xbf16>
    %cst_22 = arith.constant dense<0.000000e+00> : vector<8x128xf32>
    %43 = tpu.matmul %41, %42, %cst_22 {dimension_numbers = #tpu.dot_dimension_numbers<[1], [0], [0], [1], [0, 0, 1, 1], [], []>} : vector<8x32xbf16>, vector<32x128xbf16>, vector<8x128xf32> -> vector<8x128xf32>
    %44 = arith.addf %25, %43 : vector<8x128xf32>
    %45 = vector.extract_strided_slice %22 {offsets = [0, 32], sizes = [8, 32], strides = [1, 1]} : vector<8x384xbf16> to vector<8x32xbf16>
    %46 = vector.extract_strided_slice %22 {offsets = [0, 160], sizes = [8, 32], strides = [1, 1]} : vector<8x384xbf16> to vector<8x32xbf16>
    %47 = vector.extract_strided_slice %22 {offsets = [0, 288], sizes = [8, 32], strides = [1, 1]} : vector<8x384xbf16> to vector<8x32xbf16>
    %cst_23 = arith.constant dense<0.000000e+00> : vector<8x8xf32>
    %48 = tpu.matmul %45, %46, %cst_23 {dimension_numbers = #tpu.dot_dimension_numbers<[1], [1], [0], [0], [0, 0, 1, 0], [], []>} : vector<8x32xbf16>, vector<8x32xbf16>, vector<8x8xf32> -> vector<8x8xf32>
    %cst_24 = arith.constant dense<0xFF800000> : vector<8xf32>
    %49 = vector.multi_reduction <maximumf>, %48, %cst_24 [1] : vector<8x8xf32> to vector<8xf32>
    %50 = vector.shape_cast %49 : vector<8xf32> to vector<8x1xf32>
    %51 = vector.broadcast %50 : vector<8x1xf32> to vector<8x8xf32>
    %52 = arith.subf %48, %51 : vector<8x8xf32>
    %53 = math.exp %52 : vector<8x8xf32>
    %cst_25 = arith.constant dense<0.000000e+00> : vector<8xf32>
    %54 = vector.multi_reduction <add>, %53, %cst_25 [1] : vector<8x8xf32> to vector<8xf32>
    %55 = vector.shape_cast %54 : vector<8xf32> to vector<8x1xf32>
    %56 = vector.broadcast %55 : vector<8x1xf32> to vector<8x8xf32>
    %57 = arith.divf %53, %56 : vector<8x8xf32>
    %58 = arith.truncf %57 : vector<8x8xf32> to vector<8x8xbf16>
    %cst_26 = arith.constant dense<0.000000e+00> : vector<8x32xf32>
    %59 = tpu.matmul %58, %47, %cst_26 {dimension_numbers = #tpu.dot_dimension_numbers<[1], [0], [0], [1], [0, 0, 1, 1], [], []>} : vector<8x8xbf16>, vector<8x32xbf16>, vector<8x32xf32> -> vector<8x32xf32>
    %60 = arith.truncf %59 : vector<8x32xf32> to vector<8x32xbf16>
    %61 = vector.extract_strided_slice %24 {offsets = [32, 0], sizes = [32, 128], strides = [1, 1]} : vector<128x128xbf16> to vector<32x128xbf16>
    %cst_27 = arith.constant dense<0.000000e+00> : vector<8x128xf32>
    %62 = tpu.matmul %60, %61, %cst_27 {dimension_numbers = #tpu.dot_dimension_numbers<[1], [0], [0], [1], [0, 0, 1, 1], [], []>} : vector<8x32xbf16>, vector<32x128xbf16>, vector<8x128xf32> -> vector<8x128xf32>
    %63 = arith.addf %44, %62 : vector<8x128xf32>
    %64 = vector.extract_strided_slice %22 {offsets = [0, 64], sizes = [8, 32], strides = [1, 1]} : vector<8x384xbf16> to vector<8x32xbf16>
    %65 = vector.extract_strided_slice %22 {offsets = [0, 192], sizes = [8, 32], strides = [1, 1]} : vector<8x384xbf16> to vector<8x32xbf16>
    %66 = vector.extract_strided_slice %22 {offsets = [0, 320], sizes = [8, 32], strides = [1, 1]} : vector<8x384xbf16> to vector<8x32xbf16>
    %cst_28 = arith.constant dense<0.000000e+00> : vector<8x8xf32>
    %67 = tpu.matmul %64, %65, %cst_28 {dimension_numbers = #tpu.dot_dimension_numbers<[1], [1], [0], [0], [0, 0, 1, 0], [], []>} : vector<8x32xbf16>, vector<8x32xbf16>, vector<8x8xf32> -> vector<8x8xf32>
    %cst_29 = arith.constant dense<0xFF800000> : vector<8xf32>
    %68 = vector.multi_reduction <maximumf>, %67, %cst_29 [1] : vector<8x8xf32> to vector<8xf32>
    %69 = vector.shape_cast %68 : vector<8xf32> to vector<8x1xf32>
    %70 = vector.broadcast %69 : vector<8x1xf32> to vector<8x8xf32>
    %71 = arith.subf %67, %70 : vector<8x8xf32>
    %72 = math.exp %71 : vector<8x8xf32>
    %cst_30 = arith.constant dense<0.000000e+00> : vector<8xf32>
    %73 = vector.multi_reduction <add>, %72, %cst_30 [1] : vector<8x8xf32> to vector<8xf32>
    %74 = vector.shape_cast %73 : vector<8xf32> to vector<8x1xf32>
    %75 = vector.broadcast %74 : vector<8x1xf32> to vector<8x8xf32>
    %76 = arith.divf %72, %75 : vector<8x8xf32>
    %77 = arith.truncf %76 : vector<8x8xf32> to vector<8x8xbf16>
    %cst_31 = arith.constant dense<0.000000e+00> : vector<8x32xf32>
    %78 = tpu.matmul %77, %66, %cst_31 {dimension_numbers = #tpu.dot_dimension_numbers<[1], [0], [0], [1], [0, 0, 1, 1], [], []>} : vector<8x8xbf16>, vector<8x32xbf16>, vector<8x32xf32> -> vector<8x32xf32>
    %79 = arith.truncf %78 : vector<8x32xf32> to vector<8x32xbf16>
    %80 = vector.extract_strided_slice %24 {offsets = [64, 0], sizes = [32, 128], strides = [1, 1]} : vector<128x128xbf16> to vector<32x128xbf16>
    %cst_32 = arith.constant dense<0.000000e+00> : vector<8x128xf32>
    %81 = tpu.matmul %79, %80, %cst_32 {dimension_numbers = #tpu.dot_dimension_numbers<[1], [0], [0], [1], [0, 0, 1, 1], [], []>} : vector<8x32xbf16>, vector<32x128xbf16>, vector<8x128xf32> -> vector<8x128xf32>
    %82 = arith.addf %63, %81 : vector<8x128xf32>
    %83 = vector.extract_strided_slice %22 {offsets = [0, 96], sizes = [8, 32], strides = [1, 1]} : vector<8x384xbf16> to vector<8x32xbf16>
    %84 = vector.extract_strided_slice %22 {offsets = [0, 224], sizes = [8, 32], strides = [1, 1]} : vector<8x384xbf16> to vector<8x32xbf16>
    %85 = vector.extract_strided_slice %22 {offsets = [0, 352], sizes = [8, 32], strides = [1, 1]} : vector<8x384xbf16> to vector<8x32xbf16>
    %cst_33 = arith.constant dense<0.000000e+00> : vector<8x8xf32>
    %86 = tpu.matmul %83, %84, %cst_33 {dimension_numbers = #tpu.dot_dimension_numbers<[1], [1], [0], [0], [0, 0, 1, 0], [], []>} : vector<8x32xbf16>, vector<8x32xbf16>, vector<8x8xf32> -> vector<8x8xf32>
    %cst_34 = arith.constant dense<0xFF800000> : vector<8xf32>
    %87 = vector.multi_reduction <maximumf>, %86, %cst_34 [1] : vector<8x8xf32> to vector<8xf32>
    %88 = vector.shape_cast %87 : vector<8xf32> to vector<8x1xf32>
    %89 = vector.broadcast %88 : vector<8x1xf32> to vector<8x8xf32>
    %90 = arith.subf %86, %89 : vector<8x8xf32>
    %91 = math.exp %90 : vector<8x8xf32>
    %cst_35 = arith.constant dense<0.000000e+00> : vector<8xf32>
    %92 = vector.multi_reduction <add>, %91, %cst_35 [1] : vector<8x8xf32> to vector<8xf32>
    %93 = vector.shape_cast %92 : vector<8xf32> to vector<8x1xf32>
    %94 = vector.broadcast %93 : vector<8x1xf32> to vector<8x8xf32>
    %95 = arith.divf %91, %94 : vector<8x8xf32>
    %96 = arith.truncf %95 : vector<8x8xf32> to vector<8x8xbf16>
    %cst_36 = arith.constant dense<0.000000e+00> : vector<8x32xf32>
    %97 = tpu.matmul %96, %85, %cst_36 {dimension_numbers = #tpu.dot_dimension_numbers<[1], [0], [0], [1], [0, 0, 1, 1], [], []>} : vector<8x8xbf16>, vector<8x32xbf16>, vector<8x32xf32> -> vector<8x32xf32>
    %98 = arith.truncf %97 : vector<8x32xf32> to vector<8x32xbf16>
    %99 = vector.extract_strided_slice %24 {offsets = [96, 0], sizes = [32, 128], strides = [1, 1]} : vector<128x128xbf16> to vector<32x128xbf16>
    %cst_37 = arith.constant dense<0.000000e+00> : vector<8x128xf32>
    %100 = tpu.matmul %98, %99, %cst_37 {dimension_numbers = #tpu.dot_dimension_numbers<[1], [0], [0], [1], [0, 0, 1, 1], [], []>} : vector<8x32xbf16>, vector<32x128xbf16>, vector<8x128xf32> -> vector<8x128xf32>
    %101 = arith.addf %82, %100 : vector<8x128xf32>
    %c0_38 = arith.constant 0 : index
    %c0_39 = arith.constant 0 : index
    %c0_40 = arith.constant 0 : index
    %102 = vector.load %arg7[%c0_38, %c0_39, %c0_40] : memref<2x1x128xf32, #tpu.memory_space<vmem>>, vector<1x1x128xf32>
    %103 = vector.shape_cast %102 : vector<1x1x128xf32> to vector<1x128xf32>
    %104 = vector.broadcast %103 : vector<1x128xf32> to vector<8x128xf32>
    %105 = arith.addf %101, %104 : vector<8x128xf32>
    %106 = arith.addf %13, %105 : vector<8x128xf32>
    %c0_41 = arith.constant 0 : index
    %c0_42 = arith.constant 0 : index
    %c0_43 = arith.constant 0 : index
    %107 = vector.load %arg12[%c0_41, %c0_42, %c0_43] : memref<2x1x128xf32, #tpu.memory_space<vmem>>, vector<1x1x128xf32>
    %108 = vector.shape_cast %107 : vector<1x1x128xf32> to vector<1x128xf32>
    %c0_44 = arith.constant 0 : index
    %c0_45 = arith.constant 0 : index
    %c0_46 = arith.constant 0 : index
    %109 = vector.load %arg13[%c0_44, %c0_45, %c0_46] : memref<2x1x128xf32, #tpu.memory_space<vmem>>, vector<1x1x128xf32>
    %110 = vector.shape_cast %109 : vector<1x1x128xf32> to vector<1x128xf32>
    %cst_47 = arith.constant dense<0.000000e+00> : vector<8xf32>
    %111 = vector.multi_reduction <add>, %106, %cst_47 [1] : vector<8x128xf32> to vector<8xf32>
    %112 = vector.shape_cast %111 : vector<8xf32> to vector<8x1xf32>
    %cst_48 = arith.constant 3.125000e-02 : f32
    %113 = vector.broadcast %cst_48 : f32 to vector<8x1xf32>
    %114 = arith.mulf %112, %113 : vector<8x1xf32>
    %115 = vector.broadcast %114 : vector<8x1xf32> to vector<8x128xf32>
    %116 = arith.subf %106, %115 : vector<8x128xf32>
    %117 = arith.mulf %116, %4 : vector<8x128xf32>
    %118 = arith.mulf %117, %117 : vector<8x128xf32>
    %cst_49 = arith.constant dense<0.000000e+00> : vector<8xf32>
    %119 = vector.multi_reduction <add>, %118, %cst_49 [1] : vector<8x128xf32> to vector<8xf32>
    %120 = vector.shape_cast %119 : vector<8xf32> to vector<8x1xf32>
    %cst_50 = arith.constant 3.125000e-02 : f32
    %121 = vector.broadcast %cst_50 : f32 to vector<8x1xf32>
    %122 = arith.mulf %120, %121 : vector<8x1xf32>
    %cst_51 = arith.constant 9.99999974E-6 : f32
    %123 = vector.broadcast %cst_51 : f32 to vector<8x1xf32>
    %124 = arith.addf %122, %123 : vector<8x1xf32>
    %125 = math.rsqrt %124 : vector<8x1xf32>
    %126 = vector.broadcast %125 : vector<8x1xf32> to vector<8x128xf32>
    %127 = arith.mulf %117, %126 : vector<8x128xf32>
    %128 = vector.broadcast %108 : vector<1x128xf32> to vector<8x128xf32>
    %129 = arith.mulf %127, %128 : vector<8x128xf32>
    %130 = vector.broadcast %110 : vector<1x128xf32> to vector<8x128xf32>
    %131 = arith.addf %129, %130 : vector<8x128xf32>
    %132 = arith.truncf %131 : vector<8x128xf32> to vector<8x128xbf16>
    %c0_52 = arith.constant 0 : index
    %c0_53 = arith.constant 0 : index
    %c0_54 = arith.constant 0 : index
    %133 = vector.load %arg8[%c0_52, %c0_53, %c0_54] : memref<2x128x2048xbf16, #tpu.memory_space<vmem>>, vector<1x128x2048xbf16>
    %134 = vector.shape_cast %133 : vector<1x128x2048xbf16> to vector<128x2048xbf16>
    %cst_55 = arith.constant dense<0.000000e+00> : vector<8x2048xf32>
    %135 = tpu.matmul %132, %134, %cst_55 {dimension_numbers = #tpu.dot_dimension_numbers<[1], [0], [0], [1], [0, 0, 1, 1], [], []>} : vector<8x128xbf16>, vector<128x2048xbf16>, vector<8x2048xf32> -> vector<8x2048xf32>
    %c0_56 = arith.constant 0 : index
    %c0_57 = arith.constant 0 : index
    %c0_58 = arith.constant 0 : index
    %136 = vector.load %arg9[%c0_56, %c0_57, %c0_58] : memref<2x1x2048xf32, #tpu.memory_space<vmem>>, vector<1x1x2048xf32>
    %137 = vector.shape_cast %136 : vector<1x1x2048xf32> to vector<1x2048xf32>
    %138 = vector.broadcast %137 : vector<1x2048xf32> to vector<8x2048xf32>
    %139 = arith.addf %135, %138 : vector<8x2048xf32>
    %cst_59 = arith.constant 0.000000e+00 : f32
    %140 = vector.broadcast %cst_59 : f32 to vector<8x2048xf32>
    %141 = arith.maximumf %139, %140 : vector<8x2048xf32>
    %142 = arith.truncf %141 : vector<8x2048xf32> to vector<8x2048xbf16>
    %c0_60 = arith.constant 0 : index
    %c0_61 = arith.constant 0 : index
    %c0_62 = arith.constant 0 : index
    %143 = vector.load %arg10[%c0_60, %c0_61, %c0_62] : memref<2x2048x128xbf16, #tpu.memory_space<vmem>>, vector<1x2048x128xbf16>
    %144 = vector.shape_cast %143 : vector<1x2048x128xbf16> to vector<2048x128xbf16>
    %cst_63 = arith.constant dense<0.000000e+00> : vector<8x128xf32>
    %145 = tpu.matmul %142, %144, %cst_63 {dimension_numbers = #tpu.dot_dimension_numbers<[1], [0], [0], [1], [0, 0, 1, 1], [], []>} : vector<8x2048xbf16>, vector<2048x128xbf16>, vector<8x128xf32> -> vector<8x128xf32>
    %c0_64 = arith.constant 0 : index
    %c0_65 = arith.constant 0 : index
    %c0_66 = arith.constant 0 : index
    %146 = vector.load %arg11[%c0_64, %c0_65, %c0_66] : memref<2x1x128xf32, #tpu.memory_space<vmem>>, vector<1x1x128xf32>
    %147 = vector.shape_cast %146 : vector<1x1x128xf32> to vector<1x128xf32>
    %148 = vector.broadcast %147 : vector<1x128xf32> to vector<8x128xf32>
    %149 = arith.addf %145, %148 : vector<8x128xf32>
    %150 = arith.addf %131, %149 : vector<8x128xf32>
    %c0_67 = arith.constant 0 : index
    %c0_68 = arith.constant 0 : index
    %c0_69 = arith.constant 0 : index
    %151 = vector.load %arg14[%c0_67, %c0_68, %c0_69] : memref<2x1x128xf32, #tpu.memory_space<vmem>>, vector<1x1x128xf32>
    %152 = vector.shape_cast %151 : vector<1x1x128xf32> to vector<1x128xf32>
    %c0_70 = arith.constant 0 : index
    %c0_71 = arith.constant 0 : index
    %c0_72 = arith.constant 0 : index
    %153 = vector.load %arg15[%c0_70, %c0_71, %c0_72] : memref<2x1x128xf32, #tpu.memory_space<vmem>>, vector<1x1x128xf32>
    %154 = vector.shape_cast %153 : vector<1x1x128xf32> to vector<1x128xf32>
    %cst_73 = arith.constant dense<0.000000e+00> : vector<8xf32>
    %155 = vector.multi_reduction <add>, %150, %cst_73 [1] : vector<8x128xf32> to vector<8xf32>
    %156 = vector.shape_cast %155 : vector<8xf32> to vector<8x1xf32>
    %cst_74 = arith.constant 3.125000e-02 : f32
    %157 = vector.broadcast %cst_74 : f32 to vector<8x1xf32>
    %158 = arith.mulf %156, %157 : vector<8x1xf32>
    %159 = vector.broadcast %158 : vector<8x1xf32> to vector<8x128xf32>
    %160 = arith.subf %150, %159 : vector<8x128xf32>
    %161 = arith.mulf %160, %4 : vector<8x128xf32>
    %162 = arith.mulf %161, %161 : vector<8x128xf32>
    %cst_75 = arith.constant dense<0.000000e+00> : vector<8xf32>
    %163 = vector.multi_reduction <add>, %162, %cst_75 [1] : vector<8x128xf32> to vector<8xf32>
    %164 = vector.shape_cast %163 : vector<8xf32> to vector<8x1xf32>
    %cst_76 = arith.constant 3.125000e-02 : f32
    %165 = vector.broadcast %cst_76 : f32 to vector<8x1xf32>
    %166 = arith.mulf %164, %165 : vector<8x1xf32>
    %cst_77 = arith.constant 9.99999974E-6 : f32
    %167 = vector.broadcast %cst_77 : f32 to vector<8x1xf32>
    %168 = arith.addf %166, %167 : vector<8x1xf32>
    %169 = math.rsqrt %168 : vector<8x1xf32>
    %170 = vector.broadcast %169 : vector<8x1xf32> to vector<8x128xf32>
    %171 = arith.mulf %161, %170 : vector<8x128xf32>
    %172 = vector.broadcast %152 : vector<1x128xf32> to vector<8x128xf32>
    %173 = arith.mulf %171, %172 : vector<8x128xf32>
    %174 = vector.broadcast %154 : vector<1x128xf32> to vector<8x128xf32>
    %175 = arith.addf %173, %174 : vector<8x128xf32>
    %176 = arith.truncf %175 : vector<8x128xf32> to vector<8x128xbf16>
    %c1 = arith.constant 1 : index
    %c0_78 = arith.constant 0 : index
    %c0_79 = arith.constant 0 : index
    %177 = vector.load %arg4[%c1, %c0_78, %c0_79] : memref<2x128x384xbf16, #tpu.memory_space<vmem>>, vector<1x128x384xbf16>
    %178 = vector.shape_cast %177 : vector<1x128x384xbf16> to vector<128x384xbf16>
    %cst_80 = arith.constant dense<0.000000e+00> : vector<8x384xf32>
    %179 = tpu.matmul %176, %178, %cst_80 {dimension_numbers = #tpu.dot_dimension_numbers<[1], [0], [0], [1], [0, 0, 1, 1], [], []>} : vector<8x128xbf16>, vector<128x384xbf16>, vector<8x384xf32> -> vector<8x384xf32>
    %c1_81 = arith.constant 1 : index
    %c0_82 = arith.constant 0 : index
    %c0_83 = arith.constant 0 : index
    %180 = vector.load %arg5[%c1_81, %c0_82, %c0_83] : memref<2x1x384xf32, #tpu.memory_space<vmem>>, vector<1x1x384xf32>
    %181 = vector.shape_cast %180 : vector<1x1x384xf32> to vector<1x384xf32>
    %182 = vector.broadcast %181 : vector<1x384xf32> to vector<8x384xf32>
    %183 = arith.addf %179, %182 : vector<8x384xf32>
    %184 = arith.truncf %183 : vector<8x384xf32> to vector<8x384xbf16>
    %c1_84 = arith.constant 1 : index
    %c0_85 = arith.constant 0 : index
    %c0_86 = arith.constant 0 : index
    %185 = vector.load %arg6[%c1_84, %c0_85, %c0_86] : memref<2x128x128xbf16, #tpu.memory_space<vmem>>, vector<1x128x128xbf16>
    %186 = vector.shape_cast %185 : vector<1x128x128xbf16> to vector<128x128xbf16>
    %cst_87 = arith.constant 0.000000e+00 : f32
    %187 = vector.broadcast %cst_87 : f32 to vector<8x128xf32>
    %188 = vector.extract_strided_slice %184 {offsets = [0, 0], sizes = [8, 32], strides = [1, 1]} : vector<8x384xbf16> to vector<8x32xbf16>
    %189 = vector.extract_strided_slice %184 {offsets = [0, 128], sizes = [8, 32], strides = [1, 1]} : vector<8x384xbf16> to vector<8x32xbf16>
    %190 = vector.extract_strided_slice %184 {offsets = [0, 256], sizes = [8, 32], strides = [1, 1]} : vector<8x384xbf16> to vector<8x32xbf16>
    %cst_88 = arith.constant dense<0.000000e+00> : vector<8x8xf32>
    %191 = tpu.matmul %188, %189, %cst_88 {dimension_numbers = #tpu.dot_dimension_numbers<[1], [1], [0], [0], [0, 0, 1, 0], [], []>} : vector<8x32xbf16>, vector<8x32xbf16>, vector<8x8xf32> -> vector<8x8xf32>
    %cst_89 = arith.constant dense<0xFF800000> : vector<8xf32>
    %192 = vector.multi_reduction <maximumf>, %191, %cst_89 [1] : vector<8x8xf32> to vector<8xf32>
    %193 = vector.shape_cast %192 : vector<8xf32> to vector<8x1xf32>
    %194 = vector.broadcast %193 : vector<8x1xf32> to vector<8x8xf32>
    %195 = arith.subf %191, %194 : vector<8x8xf32>
    %196 = math.exp %195 : vector<8x8xf32>
    %cst_90 = arith.constant dense<0.000000e+00> : vector<8xf32>
    %197 = vector.multi_reduction <add>, %196, %cst_90 [1] : vector<8x8xf32> to vector<8xf32>
    %198 = vector.shape_cast %197 : vector<8xf32> to vector<8x1xf32>
    %199 = vector.broadcast %198 : vector<8x1xf32> to vector<8x8xf32>
    %200 = arith.divf %196, %199 : vector<8x8xf32>
    %201 = arith.truncf %200 : vector<8x8xf32> to vector<8x8xbf16>
    %cst_91 = arith.constant dense<0.000000e+00> : vector<8x32xf32>
    %202 = tpu.matmul %201, %190, %cst_91 {dimension_numbers = #tpu.dot_dimension_numbers<[1], [0], [0], [1], [0, 0, 1, 1], [], []>} : vector<8x8xbf16>, vector<8x32xbf16>, vector<8x32xf32> -> vector<8x32xf32>
    %203 = arith.truncf %202 : vector<8x32xf32> to vector<8x32xbf16>
    %204 = vector.extract_strided_slice %186 {offsets = [0, 0], sizes = [32, 128], strides = [1, 1]} : vector<128x128xbf16> to vector<32x128xbf16>
    %cst_92 = arith.constant dense<0.000000e+00> : vector<8x128xf32>
    %205 = tpu.matmul %203, %204, %cst_92 {dimension_numbers = #tpu.dot_dimension_numbers<[1], [0], [0], [1], [0, 0, 1, 1], [], []>} : vector<8x32xbf16>, vector<32x128xbf16>, vector<8x128xf32> -> vector<8x128xf32>
    %206 = arith.addf %187, %205 : vector<8x128xf32>
    %207 = vector.extract_strided_slice %184 {offsets = [0, 32], sizes = [8, 32], strides = [1, 1]} : vector<8x384xbf16> to vector<8x32xbf16>
    %208 = vector.extract_strided_slice %184 {offsets = [0, 160], sizes = [8, 32], strides = [1, 1]} : vector<8x384xbf16> to vector<8x32xbf16>
    %209 = vector.extract_strided_slice %184 {offsets = [0, 288], sizes = [8, 32], strides = [1, 1]} : vector<8x384xbf16> to vector<8x32xbf16>
    %cst_93 = arith.constant dense<0.000000e+00> : vector<8x8xf32>
    %210 = tpu.matmul %207, %208, %cst_93 {dimension_numbers = #tpu.dot_dimension_numbers<[1], [1], [0], [0], [0, 0, 1, 0], [], []>} : vector<8x32xbf16>, vector<8x32xbf16>, vector<8x8xf32> -> vector<8x8xf32>
    %cst_94 = arith.constant dense<0xFF800000> : vector<8xf32>
    %211 = vector.multi_reduction <maximumf>, %210, %cst_94 [1] : vector<8x8xf32> to vector<8xf32>
    %212 = vector.shape_cast %211 : vector<8xf32> to vector<8x1xf32>
    %213 = vector.broadcast %212 : vector<8x1xf32> to vector<8x8xf32>
    %214 = arith.subf %210, %213 : vector<8x8xf32>
    %215 = math.exp %214 : vector<8x8xf32>
    %cst_95 = arith.constant dense<0.000000e+00> : vector<8xf32>
    %216 = vector.multi_reduction <add>, %215, %cst_95 [1] : vector<8x8xf32> to vector<8xf32>
    %217 = vector.shape_cast %216 : vector<8xf32> to vector<8x1xf32>
    %218 = vector.broadcast %217 : vector<8x1xf32> to vector<8x8xf32>
    %219 = arith.divf %215, %218 : vector<8x8xf32>
    %220 = arith.truncf %219 : vector<8x8xf32> to vector<8x8xbf16>
    %cst_96 = arith.constant dense<0.000000e+00> : vector<8x32xf32>
    %221 = tpu.matmul %220, %209, %cst_96 {dimension_numbers = #tpu.dot_dimension_numbers<[1], [0], [0], [1], [0, 0, 1, 1], [], []>} : vector<8x8xbf16>, vector<8x32xbf16>, vector<8x32xf32> -> vector<8x32xf32>
    %222 = arith.truncf %221 : vector<8x32xf32> to vector<8x32xbf16>
    %223 = vector.extract_strided_slice %186 {offsets = [32, 0], sizes = [32, 128], strides = [1, 1]} : vector<128x128xbf16> to vector<32x128xbf16>
    %cst_97 = arith.constant dense<0.000000e+00> : vector<8x128xf32>
    %224 = tpu.matmul %222, %223, %cst_97 {dimension_numbers = #tpu.dot_dimension_numbers<[1], [0], [0], [1], [0, 0, 1, 1], [], []>} : vector<8x32xbf16>, vector<32x128xbf16>, vector<8x128xf32> -> vector<8x128xf32>
    %225 = arith.addf %206, %224 : vector<8x128xf32>
    %226 = vector.extract_strided_slice %184 {offsets = [0, 64], sizes = [8, 32], strides = [1, 1]} : vector<8x384xbf16> to vector<8x32xbf16>
    %227 = vector.extract_strided_slice %184 {offsets = [0, 192], sizes = [8, 32], strides = [1, 1]} : vector<8x384xbf16> to vector<8x32xbf16>
    %228 = vector.extract_strided_slice %184 {offsets = [0, 320], sizes = [8, 32], strides = [1, 1]} : vector<8x384xbf16> to vector<8x32xbf16>
    %cst_98 = arith.constant dense<0.000000e+00> : vector<8x8xf32>
    %229 = tpu.matmul %226, %227, %cst_98 {dimension_numbers = #tpu.dot_dimension_numbers<[1], [1], [0], [0], [0, 0, 1, 0], [], []>} : vector<8x32xbf16>, vector<8x32xbf16>, vector<8x8xf32> -> vector<8x8xf32>
    %cst_99 = arith.constant dense<0xFF800000> : vector<8xf32>
    %230 = vector.multi_reduction <maximumf>, %229, %cst_99 [1] : vector<8x8xf32> to vector<8xf32>
    %231 = vector.shape_cast %230 : vector<8xf32> to vector<8x1xf32>
    %232 = vector.broadcast %231 : vector<8x1xf32> to vector<8x8xf32>
    %233 = arith.subf %229, %232 : vector<8x8xf32>
    %234 = math.exp %233 : vector<8x8xf32>
    %cst_100 = arith.constant dense<0.000000e+00> : vector<8xf32>
    %235 = vector.multi_reduction <add>, %234, %cst_100 [1] : vector<8x8xf32> to vector<8xf32>
    %236 = vector.shape_cast %235 : vector<8xf32> to vector<8x1xf32>
    %237 = vector.broadcast %236 : vector<8x1xf32> to vector<8x8xf32>
    %238 = arith.divf %234, %237 : vector<8x8xf32>
    %239 = arith.truncf %238 : vector<8x8xf32> to vector<8x8xbf16>
    %cst_101 = arith.constant dense<0.000000e+00> : vector<8x32xf32>
    %240 = tpu.matmul %239, %228, %cst_101 {dimension_numbers = #tpu.dot_dimension_numbers<[1], [0], [0], [1], [0, 0, 1, 1], [], []>} : vector<8x8xbf16>, vector<8x32xbf16>, vector<8x32xf32> -> vector<8x32xf32>
    %241 = arith.truncf %240 : vector<8x32xf32> to vector<8x32xbf16>
    %242 = vector.extract_strided_slice %186 {offsets = [64, 0], sizes = [32, 128], strides = [1, 1]} : vector<128x128xbf16> to vector<32x128xbf16>
    %cst_102 = arith.constant dense<0.000000e+00> : vector<8x128xf32>
    %243 = tpu.matmul %241, %242, %cst_102 {dimension_numbers = #tpu.dot_dimension_numbers<[1], [0], [0], [1], [0, 0, 1, 1], [], []>} : vector<8x32xbf16>, vector<32x128xbf16>, vector<8x128xf32> -> vector<8x128xf32>
    %244 = arith.addf %225, %243 : vector<8x128xf32>
    %245 = vector.extract_strided_slice %184 {offsets = [0, 96], sizes = [8, 32], strides = [1, 1]} : vector<8x384xbf16> to vector<8x32xbf16>
    %246 = vector.extract_strided_slice %184 {offsets = [0, 224], sizes = [8, 32], strides = [1, 1]} : vector<8x384xbf16> to vector<8x32xbf16>
    %247 = vector.extract_strided_slice %184 {offsets = [0, 352], sizes = [8, 32], strides = [1, 1]} : vector<8x384xbf16> to vector<8x32xbf16>
    %cst_103 = arith.constant dense<0.000000e+00> : vector<8x8xf32>
    %248 = tpu.matmul %245, %246, %cst_103 {dimension_numbers = #tpu.dot_dimension_numbers<[1], [1], [0], [0], [0, 0, 1, 0], [], []>} : vector<8x32xbf16>, vector<8x32xbf16>, vector<8x8xf32> -> vector<8x8xf32>
    %cst_104 = arith.constant dense<0xFF800000> : vector<8xf32>
    %249 = vector.multi_reduction <maximumf>, %248, %cst_104 [1] : vector<8x8xf32> to vector<8xf32>
    %250 = vector.shape_cast %249 : vector<8xf32> to vector<8x1xf32>
    %251 = vector.broadcast %250 : vector<8x1xf32> to vector<8x8xf32>
    %252 = arith.subf %248, %251 : vector<8x8xf32>
    %253 = math.exp %252 : vector<8x8xf32>
    %cst_105 = arith.constant dense<0.000000e+00> : vector<8xf32>
    %254 = vector.multi_reduction <add>, %253, %cst_105 [1] : vector<8x8xf32> to vector<8xf32>
    %255 = vector.shape_cast %254 : vector<8xf32> to vector<8x1xf32>
    %256 = vector.broadcast %255 : vector<8x1xf32> to vector<8x8xf32>
    %257 = arith.divf %253, %256 : vector<8x8xf32>
    %258 = arith.truncf %257 : vector<8x8xf32> to vector<8x8xbf16>
    %cst_106 = arith.constant dense<0.000000e+00> : vector<8x32xf32>
    %259 = tpu.matmul %258, %247, %cst_106 {dimension_numbers = #tpu.dot_dimension_numbers<[1], [0], [0], [1], [0, 0, 1, 1], [], []>} : vector<8x8xbf16>, vector<8x32xbf16>, vector<8x32xf32> -> vector<8x32xf32>
    %260 = arith.truncf %259 : vector<8x32xf32> to vector<8x32xbf16>
    %261 = vector.extract_strided_slice %186 {offsets = [96, 0], sizes = [32, 128], strides = [1, 1]} : vector<128x128xbf16> to vector<32x128xbf16>
    %cst_107 = arith.constant dense<0.000000e+00> : vector<8x128xf32>
    %262 = tpu.matmul %260, %261, %cst_107 {dimension_numbers = #tpu.dot_dimension_numbers<[1], [0], [0], [1], [0, 0, 1, 1], [], []>} : vector<8x32xbf16>, vector<32x128xbf16>, vector<8x128xf32> -> vector<8x128xf32>
    %263 = arith.addf %244, %262 : vector<8x128xf32>
    %c1_108 = arith.constant 1 : index
    %c0_109 = arith.constant 0 : index
    %c0_110 = arith.constant 0 : index
    %264 = vector.load %arg7[%c1_108, %c0_109, %c0_110] : memref<2x1x128xf32, #tpu.memory_space<vmem>>, vector<1x1x128xf32>
    %265 = vector.shape_cast %264 : vector<1x1x128xf32> to vector<1x128xf32>
    %266 = vector.broadcast %265 : vector<1x128xf32> to vector<8x128xf32>
    %267 = arith.addf %263, %266 : vector<8x128xf32>
    %268 = arith.addf %175, %267 : vector<8x128xf32>
    %c1_111 = arith.constant 1 : index
    %c0_112 = arith.constant 0 : index
    %c0_113 = arith.constant 0 : index
    %269 = vector.load %arg12[%c1_111, %c0_112, %c0_113] : memref<2x1x128xf32, #tpu.memory_space<vmem>>, vector<1x1x128xf32>
    %270 = vector.shape_cast %269 : vector<1x1x128xf32> to vector<1x128xf32>
    %c1_114 = arith.constant 1 : index
    %c0_115 = arith.constant 0 : index
    %c0_116 = arith.constant 0 : index
    %271 = vector.load %arg13[%c1_114, %c0_115, %c0_116] : memref<2x1x128xf32, #tpu.memory_space<vmem>>, vector<1x1x128xf32>
    %272 = vector.shape_cast %271 : vector<1x1x128xf32> to vector<1x128xf32>
    %cst_117 = arith.constant dense<0.000000e+00> : vector<8xf32>
    %273 = vector.multi_reduction <add>, %268, %cst_117 [1] : vector<8x128xf32> to vector<8xf32>
    %274 = vector.shape_cast %273 : vector<8xf32> to vector<8x1xf32>
    %cst_118 = arith.constant 3.125000e-02 : f32
    %275 = vector.broadcast %cst_118 : f32 to vector<8x1xf32>
    %276 = arith.mulf %274, %275 : vector<8x1xf32>
    %277 = vector.broadcast %276 : vector<8x1xf32> to vector<8x128xf32>
    %278 = arith.subf %268, %277 : vector<8x128xf32>
    %279 = arith.mulf %278, %4 : vector<8x128xf32>
    %280 = arith.mulf %279, %279 : vector<8x128xf32>
    %cst_119 = arith.constant dense<0.000000e+00> : vector<8xf32>
    %281 = vector.multi_reduction <add>, %280, %cst_119 [1] : vector<8x128xf32> to vector<8xf32>
    %282 = vector.shape_cast %281 : vector<8xf32> to vector<8x1xf32>
    %cst_120 = arith.constant 3.125000e-02 : f32
    %283 = vector.broadcast %cst_120 : f32 to vector<8x1xf32>
    %284 = arith.mulf %282, %283 : vector<8x1xf32>
    %cst_121 = arith.constant 9.99999974E-6 : f32
    %285 = vector.broadcast %cst_121 : f32 to vector<8x1xf32>
    %286 = arith.addf %284, %285 : vector<8x1xf32>
    %287 = math.rsqrt %286 : vector<8x1xf32>
    %288 = vector.broadcast %287 : vector<8x1xf32> to vector<8x128xf32>
    %289 = arith.mulf %279, %288 : vector<8x128xf32>
    %290 = vector.broadcast %270 : vector<1x128xf32> to vector<8x128xf32>
    %291 = arith.mulf %289, %290 : vector<8x128xf32>
    %292 = vector.broadcast %272 : vector<1x128xf32> to vector<8x128xf32>
    %293 = arith.addf %291, %292 : vector<8x128xf32>
    %294 = arith.truncf %293 : vector<8x128xf32> to vector<8x128xbf16>
    %c1_122 = arith.constant 1 : index
    %c0_123 = arith.constant 0 : index
    %c0_124 = arith.constant 0 : index
    %295 = vector.load %arg8[%c1_122, %c0_123, %c0_124] : memref<2x128x2048xbf16, #tpu.memory_space<vmem>>, vector<1x128x2048xbf16>
    %296 = vector.shape_cast %295 : vector<1x128x2048xbf16> to vector<128x2048xbf16>
    %cst_125 = arith.constant dense<0.000000e+00> : vector<8x2048xf32>
    %297 = tpu.matmul %294, %296, %cst_125 {dimension_numbers = #tpu.dot_dimension_numbers<[1], [0], [0], [1], [0, 0, 1, 1], [], []>} : vector<8x128xbf16>, vector<128x2048xbf16>, vector<8x2048xf32> -> vector<8x2048xf32>
    %c1_126 = arith.constant 1 : index
    %c0_127 = arith.constant 0 : index
    %c0_128 = arith.constant 0 : index
    %298 = vector.load %arg9[%c1_126, %c0_127, %c0_128] : memref<2x1x2048xf32, #tpu.memory_space<vmem>>, vector<1x1x2048xf32>
    %299 = vector.shape_cast %298 : vector<1x1x2048xf32> to vector<1x2048xf32>
    %300 = vector.broadcast %299 : vector<1x2048xf32> to vector<8x2048xf32>
    %301 = arith.addf %297, %300 : vector<8x2048xf32>
    %cst_129 = arith.constant 0.000000e+00 : f32
    %302 = vector.broadcast %cst_129 : f32 to vector<8x2048xf32>
    %303 = arith.maximumf %301, %302 : vector<8x2048xf32>
    %304 = arith.truncf %303 : vector<8x2048xf32> to vector<8x2048xbf16>
    %c1_130 = arith.constant 1 : index
    %c0_131 = arith.constant 0 : index
    %c0_132 = arith.constant 0 : index
    %305 = vector.load %arg10[%c1_130, %c0_131, %c0_132] : memref<2x2048x128xbf16, #tpu.memory_space<vmem>>, vector<1x2048x128xbf16>
    %306 = vector.shape_cast %305 : vector<1x2048x128xbf16> to vector<2048x128xbf16>
    %cst_133 = arith.constant dense<0.000000e+00> : vector<8x128xf32>
    %307 = tpu.matmul %304, %306, %cst_133 {dimension_numbers = #tpu.dot_dimension_numbers<[1], [0], [0], [1], [0, 0, 1, 1], [], []>} : vector<8x2048xbf16>, vector<2048x128xbf16>, vector<8x128xf32> -> vector<8x128xf32>
    %c1_134 = arith.constant 1 : index
    %c0_135 = arith.constant 0 : index
    %c0_136 = arith.constant 0 : index
    %308 = vector.load %arg11[%c1_134, %c0_135, %c0_136] : memref<2x1x128xf32, #tpu.memory_space<vmem>>, vector<1x1x128xf32>
    %309 = vector.shape_cast %308 : vector<1x1x128xf32> to vector<1x128xf32>
    %310 = vector.broadcast %309 : vector<1x128xf32> to vector<8x128xf32>
    %311 = arith.addf %307, %310 : vector<8x128xf32>
    %312 = arith.addf %293, %311 : vector<8x128xf32>
    %c1_137 = arith.constant 1 : index
    %c0_138 = arith.constant 0 : index
    %c0_139 = arith.constant 0 : index
    %313 = vector.load %arg14[%c1_137, %c0_138, %c0_139] : memref<2x1x128xf32, #tpu.memory_space<vmem>>, vector<1x1x128xf32>
    %314 = vector.shape_cast %313 : vector<1x1x128xf32> to vector<1x128xf32>
    %c1_140 = arith.constant 1 : index
    %c0_141 = arith.constant 0 : index
    %c0_142 = arith.constant 0 : index
    %315 = vector.load %arg15[%c1_140, %c0_141, %c0_142] : memref<2x1x128xf32, #tpu.memory_space<vmem>>, vector<1x1x128xf32>
    %316 = vector.shape_cast %315 : vector<1x1x128xf32> to vector<1x128xf32>
    %cst_143 = arith.constant dense<0.000000e+00> : vector<8xf32>
    %317 = vector.multi_reduction <add>, %312, %cst_143 [1] : vector<8x128xf32> to vector<8xf32>
    %318 = vector.shape_cast %317 : vector<8xf32> to vector<8x1xf32>
    %cst_144 = arith.constant 3.125000e-02 : f32
    %319 = vector.broadcast %cst_144 : f32 to vector<8x1xf32>
    %320 = arith.mulf %318, %319 : vector<8x1xf32>
    %321 = vector.broadcast %320 : vector<8x1xf32> to vector<8x128xf32>
    %322 = arith.subf %312, %321 : vector<8x128xf32>
    %323 = arith.mulf %322, %4 : vector<8x128xf32>
    %324 = arith.mulf %323, %323 : vector<8x128xf32>
    %cst_145 = arith.constant dense<0.000000e+00> : vector<8xf32>
    %325 = vector.multi_reduction <add>, %324, %cst_145 [1] : vector<8x128xf32> to vector<8xf32>
    %326 = vector.shape_cast %325 : vector<8xf32> to vector<8x1xf32>
    %cst_146 = arith.constant 3.125000e-02 : f32
    %327 = vector.broadcast %cst_146 : f32 to vector<8x1xf32>
    %328 = arith.mulf %326, %327 : vector<8x1xf32>
    %cst_147 = arith.constant 9.99999974E-6 : f32
    %329 = vector.broadcast %cst_147 : f32 to vector<8x1xf32>
    %330 = arith.addf %328, %329 : vector<8x1xf32>
    %331 = math.rsqrt %330 : vector<8x1xf32>
    %332 = vector.broadcast %331 : vector<8x1xf32> to vector<8x128xf32>
    %333 = arith.mulf %323, %332 : vector<8x128xf32>
    %334 = vector.broadcast %314 : vector<1x128xf32> to vector<8x128xf32>
    %335 = arith.mulf %333, %334 : vector<8x128xf32>
    %336 = vector.broadcast %316 : vector<1x128xf32> to vector<8x128xf32>
    %337 = arith.addf %335, %336 : vector<8x128xf32>
    %338 = arith.truncf %337 : vector<8x128xf32> to vector<8x128xbf16>
    %c0_148 = arith.constant 0 : index
    %c0_149 = arith.constant 0 : index
    %339 = vector.load %arg16[%c0_148, %c0_149] : memref<128x128xbf16, #tpu.memory_space<vmem>>, vector<128x128xbf16>
    %cst_150 = arith.constant dense<0.000000e+00> : vector<8x128xf32>
    %340 = tpu.matmul %338, %339, %cst_150 {dimension_numbers = #tpu.dot_dimension_numbers<[1], [0], [0], [1], [0, 0, 1, 1], [], []>} : vector<8x128xbf16>, vector<128x128xbf16>, vector<8x128xf32> -> vector<8x128xf32>
    %c0_151 = arith.constant 0 : index
    %c0_152 = arith.constant 0 : index
    %341 = vector.load %arg17[%c0_151, %c0_152] : memref<1x128xf32, #tpu.memory_space<vmem>>, vector<1x128xf32>
    %342 = vector.broadcast %341 : vector<1x128xf32> to vector<8x128xf32>
    %343 = arith.addf %340, %342 : vector<8x128xf32>
    %c0_153 = arith.constant 0 : index
    %c0_154 = arith.constant 0 : index
    %344 = vector.load %arg18[%c0_153, %c0_154] : memref<8x128xf32, #tpu.memory_space<vmem>>, vector<8x128xf32>
    tpu.vector_store %arg18[%c0_153, %c0_154], %343 {strides = array<i32>} : memref<8x128xf32, #tpu.memory_space<vmem>>, vector<8x128xf32>,
    return
  }
}

</mosaic_0001>

<bundles_post_ra>
// kernel: transformer_forward.1
= control target key start
LH: loop header
LB: loop body
LE: loop exit
PB: predicated region body
PF: predicated region fallthrough
CT: control target
= control target key end

     0   :  { %s10102_s0 = inlined_call_operand.vmem [shape: f32[8,16], index: 0, kind: input, shape index: {}]   ;;  %s10103_s1 = inlined_call_operand.vmem [shape: f32[8,128], index: 1, kind: input, shape index: {}]   ;;  %s10104_s2 = inlined_call_operand.hbm [shape: bf16[16,128], index: 2, kind: input, shape index: {}]   ;;  %s10105_s3 = inlined_call_operand.hbm [shape: f32[1,128], index: 3, kind: input, shape index: {}]   ;;  %s10106_s4 = inlined_call_operand.hbm [shape: bf16[2,128,384], index: 4, kind: input, shape index: {}]   ;;  %s10107_s5 = inlined_call_operand.hbm [shape: f32[2,1,384], index: 5, kind: input, shape index: {}]   ;;  %s10108_s6 = inlined_call_operand.hbm [shape: bf16[2,128,128], index: 6, kind: input, shape index: {}]   ;;  %s10109_s7 = inlined_call_operand.vmem [shape: f32[2,1,128], index: 7, kind: input, shape index: {}]   ;;  %s10110_s8 = inlined_call_operand.hbm [shape: bf16[2,128,2048], index: 8, kind: input, shape index: {}]   ;;  %s10111_s9 = inlined_call_operand.hbm [shape: f32[2,1,2048], index: 9, kind: input, shape index: {}]   ;;  %s10112_s10 = inlined_call_operand.hbm [shape: bf16[2,2048,128], index: 10, kind: input, shape index: {}]   ;;  %s10113_s11 = inlined_call_operand.hbm [shape: f32[2,1,128], index: 11, kind: input, shape index: {}]   ;;  %s10114_s12 = inlined_call_operand.vmem [shape: f32[2,1,128], index: 12, kind: input, shape index: {}]   ;;  %s10115_s13 = inlined_call_operand.vmem [shape: f32[2,1,128], index: 13, kind: input, shape index: {}]   ;;  %s10116_s14 = inlined_call_operand.vmem [shape: f32[2,1,128], index: 14, kind: input, shape index: {}]   ;;  %s10117_s15 = inlined_call_operand.vmem [shape: f32[2,1,128], index: 15, kind: input, shape index: {}]   ;;  %s10118_s16 = inlined_call_operand.hbm [shape: bf16[128,128], index: 16, kind: input, shape index: {}]   ;;  %s10119_s17 = inlined_call_operand.hbm [shape: f32[1,128], index: 17, kind: input, shape index: {}]   ;;  %s10120_s18 = inlined_call_operand.hbm [shape: f32[8,128], index: 18, kind: output, shape index: {}]  }
   0x1   :  { %10121 = sst [smem:[#allocation28_spill]] %s10102_s0 }
   0x2   :  { %10122 = sst [smem:[#allocation29_spill]] %s10103_s1 }
   0x3   :  { %10123 = sst [smem:[#allocation30_spill]] %s10104_s2 }
   0x4   :  { %23 = vsyncpa [#allocation3], 0 }
   0x5   :  { %24 = vsyncpa [#allocation6], 0 }
   0x6   :  { %25 = vsyncpa [#allocation9], 0 }
   0x7   :  { %26 = vsyncpa [#allocation12], 0 }
   0x8   :  { %27 = vsyncpa [#allocation15], 0 }
   0x9   :  { %28 = vsyncpa [#allocation18], 0  ;;  %s52_s29 = sshll.u32 %s10105_s3, 4  ;;  %s53_s29 = int_to_ptr.hbm [resolvable:$true] %s52_s29 }
   0xa   :  { %29 = vsyncpa [#allocation4], 0  ;;  %s9667_s30 = smov [#allocation5]   ;;  %s75_s20 = sshll.u32 %s10107_s5, 4  ;;  %s76_s20 = int_to_ptr.hbm [resolvable:$true] %s75_s20 }
   0xb   :  { %s54_s0 = sshll.u32 %s9667_s30, 4  ;;  %s9668_s21 = smov [#allocation8]   ;;  %s55_s0 = int_to_ptr.vmem [resolvable:$true] %s54_s0 }
   0xc   :  { %57 = dma.hbm_to_vmem [thread:$0]  %s53_s29, 16, %s55_s0, [#allocation6]  }
   0xd   :  { %s77_s22 = sshll.u32 %s9668_s21, 4  ;;  %s9669_s2 = smov 48   ;;  %s78_s22 = int_to_ptr.vmem [resolvable:$true] %s77_s22 }
   0xe   :  { %s9670_s23 = smov 3   ;;  %s103_s3 = sshll.u32 %s10110_s8, 4  ;;  %s104_s3 = int_to_ptr.hbm [resolvable:$true] %s103_s3 }
   0xf   :  { %83 = dma.hbm_to_vmem [thread:$0]  %s76_s20, 96, %s78_s22, [#allocation9], %s9669_s2, %s9669_s2, %s9670_s23  }
  0x10   :  { %s9671_s26 = smov [#allocation11]   ;;  %s9672_s28 = smov 1024  }
  0x11   :  { %s105_s27 = sshll.u32 %s9671_s26, 4  ;;  %s9673_s30 = smov 64   ;;  %s106_s27 = int_to_ptr.vmem [resolvable:$true] %s105_s27 }
  0x12   :  { %111 = dma.hbm_to_vmem [thread:$0]  %s104_s3, 32768, %s106_s27, [#allocation12], %s9672_s28, %s9672_s28, %s9673_s30  }
  0x13   :  { %s129_s0 = sshll.u32 %s10112_s10, 4  ;;  %s9674_s19 = smov [#allocation14]   ;;  %s130_s0 = int_to_ptr.hbm [resolvable:$true] %s129_s0 }
  0x14   :  { %s131_s1 = sshll.u32 %s9674_s19, 4  ;;  %s163_s8 = sshll.u32 %s10118_s16, 4  ;;  %s132_s1 = int_to_ptr.vmem [resolvable:$true] %s131_s1  ;;  %s164_s8 = int_to_ptr.hbm [resolvable:$true] %s163_s8 }
  0x15   :  { %s9675_s22 = smov 4   ;;  %s9676_s2 = smov [#allocation17]  }
  0x16   :  { %137 = dma.hbm_to_vmem [thread:$0]  %s130_s0, 32768, %s132_s1, [#allocation15], %s9673_s30, %s9673_s30, %s9675_s22  }
  0x17   :  { %s165_s23 = sshll.u32 %s9676_s2, 4  ;;  %s10124_s3 = sld [smem:[#allocation30_spill]]  ;;  %s166_s23 = int_to_ptr.vmem [resolvable:$true] %s165_s23 }
  0x18   :  { %171 = dma.hbm_to_vmem [thread:$0]  %s164_s8, 1024, %s166_s23, [#allocation18], %s9673_s30, %s9673_s30, %s9675_s22  }
  0x19   :  { %s62_s27 = sshll.u32 %s10106_s4, 4  ;;  %s9677_s28 = smov [#allocation2]   ;;  %s63_s27 = int_to_ptr.hbm [resolvable:$true] %s62_s27 }
  0x1a   :  { %s40_s5 = sshll.u32 %s9677_s28, 4  ;;  %s9678_s29 = smov [#allocation7]   ;;  %s41_s5 = int_to_ptr.vmem [resolvable:$true] %s40_s5 }
  0x1b   :  { %s64_s0 = sshll.u32 %s9678_s29, 4  ;;  %s9679_s19 = smov 192   ;;  %s65_s0 = int_to_ptr.vmem [resolvable:$true] %s64_s0 }
  0x1c   :  { %s9680_s1 = smov 12   ;;  %s88_s8 = sshll.u32 %s10108_s6, 4  ;;  %s89_s8 = int_to_ptr.hbm [resolvable:$true] %s88_s8 }
  0x1d   :  { %s38_s10 = sshll.u32 %s10124_s3, 4  ;;  %s9681_s4 = smov [#allocation10]   ;;  %s39_s10 = int_to_ptr.hbm [resolvable:$true] %s38_s10 }
  0x1e   :  { %46 = dma.hbm_to_vmem [thread:$0]  %s39_s10, 128, %s41_s5, [#allocation3], %s9673_s30, %s9673_s30, %s9675_s22  }
  0x1f   :  { %70 = dma.hbm_to_vmem [thread:$0]  %s63_s27, 6144, %s65_s0, [#allocation6], %s9679_s19, %s9679_s19, %s9680_s1  }
  0x20   :  { %s90_s2 = sshll.u32 %s9681_s4, 4  ;;  %s116_s25 = sshll.u32 %s10111_s9, 4  ;;  %s91_s2 = int_to_ptr.vmem [resolvable:$true] %s90_s2  ;;  %s117_s25 = int_to_ptr.hbm [resolvable:$true] %s116_s25 }
  0x21   :  { %96 = dma.hbm_to_vmem [thread:$0]  %s89_s8, 2048, %s91_s2, [#allocation9], %s9673_s30, %s9673_s30, %s9675_s22  }
  0x22   :  { %s9682_s3 = smov [#allocation13]   ;;  %s9683_s26 = smov 256  }
  0x23   :  { %s118_s10 = sshll.u32 %s9682_s3, 4  ;;  %s9684_s16 = smov 16   ;;  %s119_s10 = int_to_ptr.vmem [resolvable:$true] %s118_s10 }
  0x24   :  { %124 = dma.hbm_to_vmem [thread:$0]  %s117_s25, 512, %s119_s10, [#allocation12], %s9683_s26, %s9683_s26, %s9684_s16  }
  0x25   :  { %s142_s28 = sshll.u32 %s10113_s11, 4  ;;  %s9685_s5 = smov [#allocation16]   ;;  %s143_s28 = int_to_ptr.hbm [resolvable:$true] %s142_s28 }
  0x26   :  { %s144_s29 = sshll.u32 %s9685_s5, 4  ;;  %s9686_s9 = smov 1   ;;  %s145_s29 = int_to_ptr.vmem [resolvable:$true] %s144_s29 }
  0x27   :  { %150 = dma.hbm_to_vmem [thread:$0]  %s143_s28, 32, %s145_s29, [#allocation15], %s9684_s16, %s9684_s16, %s9686_s9  }
  0x28   :  { %s177_s22 = sshll.u32 %s10119_s17, 4  ;;  %s9687_s1 = smov [#allocation19]   ;;  %s178_s22 = int_to_ptr.hbm [resolvable:$true] %s177_s22 }
  0x29   :  { %s179_s20 = sshll.u32 %s9687_s1, 4  ;;  %s180_s20 = int_to_ptr.vmem [resolvable:$true] %s179_s20 }
  0x2a   :  { %182 = dma.hbm_to_vmem [thread:$0]  %s178_s22, 16, %s180_s20, [#allocation18]  }
  0x2b   :  { %9653 = dma.done.wait [#allocation3], 128  }
  0x2c   :  { %9654 = vsyncadd [#allocation3], 4294967168 }
  0x2d   :  { %9655 = dma.done.wait [#allocation6], 6160  }
  0x2e   :  { %9656 = vsyncadd [#allocation6], 4294961136 }
  0x2f   :  { %9657 = dma.done.wait [#allocation9], 2144  }
  0x30   :  { %9658 = vsyncadd [#allocation9], 4294965152 }
  0x31   :  { %9659 = dma.done.wait [#allocation12], 33280  }
  0x32   :  { %9660 = vsyncadd [#allocation12], 4294934016 }
  0x33   :  { %9661 = dma.done.wait [#allocation15], 32800  }
  0x34   :  { %9662 = vsyncadd [#allocation15], 4294934496 }
  0x35   :  { %9663 = dma.done.wait [#allocation18], 1040  }
  0x36   :  { %9664 = vsyncadd [#allocation18], 4294966256  ;;  %v8701_v0 = vld [vmem:[#allocation2] sm:$0xff]  ;;  %s10125_s21 = sld [smem:[#allocation28_spill]]  ;;  %vm247_vm0 = vcmask 130048   ;;  %vm495_vm1 = vcmask 261120  }
  0x37   :  { %v6422_v2 = vld [vmem:[#allocation7 + $0xa8] sm:$0xf]  ;;  %v8724_v4 = vld [vmem:[#allocation7 + $0xb0] sm:$0xf0]  ;;  %v8723_v5 = vld [vmem:[#allocation7 + $0xac] sm:$0xf]  ;;  %258 = vmatpush.bf16.msra.mxu0 %v8701_v0 }
  0x38   :  { %v6424_v6 = vld [vmem:[#allocation7 + $0xb4] sm:$0xf0]  ;;  %v6423_v7 = vor.u32 %v8724_v4, %v6422_v2  ;;  %v6430_v9 = vld [vmem:[#allocation7 + $0xb0] sm:$0xf]  ;;  %v8725_v10 = vld [vmem:[#allocation7 + $0xb8] sm:$0xf0] }
  0x39   :  { %v6427_v8 = vor.u32 %v8723_v5, %v6424_v6  ;;  %v6410_v11 = vld [vmem:[#allocation7 + $0x90] sm:$0xf]  ;;  %v6431_v12 = vor.u32 %v8725_v10, %v6430_v9  ;;  %v8721_v13 = vld [vmem:[#allocation7 + $0x98] sm:$0xf0]  ;;  %v8720_v14 = vld [vmem:[#allocation7 + $0x94] sm:$0xf] }
  0x3a   :  { %v6412_v15 = vld [vmem:[#allocation7 + $0x9c] sm:$0xf0]  ;;  %435 = vmatpush.bf16.msra.mxu1 %v6423_v7  ;;  %v6411_v16 = vor.u32 %v8721_v13, %v6410_v11  ;;  %v6418_v18 = vld [vmem:[#allocation7 + $0x98] sm:$0xf]  ;;  %v8722_v19 = vld [vmem:[#allocation7 + $0xa0] sm:$0xf0] }
  0x3b   :  { %448 = vmatpush.bf16.msra.mxu2 %v6427_v8  ;;  %v6415_v17 = vor.u32 %v8720_v14, %v6412_v15  ;;  %v6398_v20 = vld [vmem:[#allocation7 + $0x78] sm:$0xf]  ;;  %461 = vmatpush.bf16.msra.mxu3 %v6431_v12  ;;  %v6419_v21 = vor.u32 %v8722_v19, %v6418_v18  ;;  %v8718_v22 = vld [vmem:[#allocation7 + $0x80] sm:$0xf0]  ;;  %v8717_v23 = vld [vmem:[#allocation7 + $0x7c] sm:$0xf] }
  0x3c   :  { %v233_v1 = vld [vmem:[%s10125_s21] sm:$0xff]  ;;  %v6400_v24 = vld [vmem:[#allocation7 + $0x84] sm:$0xf0]  ;;  %v6406_v25 = vld [vmem:[#allocation7 + $0x80] sm:$0xf]  ;;  %v6399_v27 = vor.u32 %v8718_v22, %v6398_v20  ;;  %s10126_s2 = sld [smem:[#allocation29_spill]] }
  0x3d   :  { %v234_v3 = vpack.c.bf16 %v233_v1, %v233_v1  ;;  %v8719_v26 = vld [vmem:[#allocation7 + $0x88] sm:$0xf0]  ;;  %v6403_v28 = vor.u32 %v8717_v23, %v6400_v24  ;;  %v6386_v29 = vld [vmem:[#allocation7 + $0x60] sm:$0xf]  ;;  %v8714_v32 = vld [vmem:[#allocation7 + $0x64] sm:$0xf] }
  0x3e   :  { %436 = vmatpush.bf16.msra.mxu1 %v6411_v16  ;;  %v6407_v30 = vor.u32 %v8719_v26, %v6406_v25  ;;  %v8715_v31 = vld [vmem:[#allocation7 + $0x68] sm:$0xf0]  ;;  %v6388_v33 = vld [vmem:[#allocation7 + $0x6c] sm:$0xf0]  ;;  %v6394_v34 = vld [vmem:[#allocation7 + $0x68] sm:$0xf] }
  0x3f   :  { %6335 = vmatmul.msk.bf16.vlgmr.msra.gmra.mxu0 %vm247_vm0, %v234_v3  ;;  %449 = vmatpush.bf16.msra.mxu2 %v6415_v17  ;;  %v8716_v35 = vld [vmem:[#allocation7 + $0x70] sm:$0xf0]  ;;  %v6374_v36 = vld [vmem:[#allocation7 + $0x48] sm:$0xf]  ;;  %v8711_v38 = vld [vmem:[#allocation7 + $0x4c] sm:$0xf]  ;;  %v6387_v39 = vor.u32 %v8715_v31, %v6386_v29  ;;  %v6391_v40 = vor.u32 %v8714_v32, %v6388_v33 }
  0x40   :  { %462 = vmatpush.bf16.msra.mxu3 %v6419_v21  ;;  %v8712_v37 = vld [vmem:[#allocation7 + $0x50] sm:$0xf0]  ;;  %v6376_v41 = vld [vmem:[#allocation7 + $0x54] sm:$0xf0]  ;;  %v6382_v42 = vld [vmem:[#allocation7 + $0x50] sm:$0xf]  ;;  %v6395_v43 = vor.u32 %v8716_v35, %v6394_v34 }
  0x41   :  { %v8713_v44 = vld [vmem:[#allocation7 + $0x58] sm:$0xf0]  ;;  %v6362_v45 = vld [vmem:[#allocation7 + $0x30] sm:$0xf]  ;;  %v8708_v47 = vld [vmem:[#allocation7 + $0x34] sm:$0xf]  ;;  %v6375_v48 = vor.u32 %v8712_v37, %v6374_v36  ;;  %v6379_v49 = vor.u32 %v8711_v38, %v6376_v41 }
  0x42   :  { %437 = vmatpush.bf16.msra.mxu1 %v6399_v27  ;;  %v8709_v46 = vld [vmem:[#allocation7 + $0x38] sm:$0xf0]  ;;  %v6383_v50 = vor.u32 %v8713_v44, %v6382_v42  ;;  %v6364_v51 = vld [vmem:[#allocation7 + $0x3c] sm:$0xf0]  ;;  %v6370_v52 = vld [vmem:[#allocation7 + $0x38] sm:$0xf] }
  0x43   :  { %450 = vmatpush.bf16.msra.mxu2 %v6403_v28  ;;  %v8710_v53 = vld [vmem:[#allocation7 + $0x40] sm:$0xf0]  ;;  %v6363_v54 = vor.u32 %v8709_v46, %v6362_v45  ;;  %v6367_v55 = vor.u32 %v8708_v47, %v6364_v51  ;;  %v6350_v57 = vld [vmem:[#allocation7 + $0x18] sm:$0xf]  ;;  %v8705_v59 = vld [vmem:[#allocation7 + $0x1c] sm:$0xf] }
  0x44   :  { %463 = vmatpush.bf16.msra.mxu3 %v6407_v30  ;;  %v6371_v56 = vor.u32 %v8710_v53, %v6370_v52  ;;  %v8706_v58 = vld [vmem:[#allocation7 + $0x20] sm:$0xf0]  ;;  %v6352_v61 = vld [vmem:[#allocation7 + $0x24] sm:$0xf0]  ;;  %v6358_v62 = vld [vmem:[#allocation7 + $0x20] sm:$0xf] }
  0x45   :  { %v6351_v60 = vor.u32 %v8706_v58, %v6350_v57  ;;  %v8707_v63 = vld [vmem:[#allocation7 + $0x28] sm:$0xf0]  ;;  %v6355_v0 = vor.u32 %v8705_v59, %v6352_v61  ;;  %v6338_v2 = vld [vmem:[#allocation7] sm:$0xf]  ;;  %v8702_v5 = vld [vmem:[#allocation7 + $0x4] sm:$0xf] }
  0x46   :  { %438 = vmatpush.bf16.msra.mxu1 %v6387_v39  ;;  %v6359_v1 = vor.u32 %v8707_v63, %v6358_v62  ;;  %v8703_v3 = vld [vmem:[#allocation7 + $0x8] sm:$0xf0]  ;;  %v6340_v6 = vld [vmem:[#allocation7 + $0xc] sm:$0xf0]  ;;  %v6346_v7 = vld [vmem:[#allocation7 + $0x8] sm:$0xf] }
  0x47   :  { %451 = vmatpush.bf16.msra.mxu2 %v6391_v40  ;;  %v6339_v4 = vor.u32 %v8703_v3, %v6338_v2  ;;  %v6343_v8 = vor.u32 %v8702_v5, %v6340_v6  ;;  %v8704_v9 = vld [vmem:[#allocation7 + $0x10] sm:$0xf0]  ;;  %v9311_v11 = vld [vmem:[#allocation5] ss:$0 sm:$0xff]  ;;  %v299_v18 = vld [vmem:[#allocation8] sm:$0x7] }
  0x48   :  { %464 = vmatpush.bf16.msra.mxu3 %v6395_v43  ;;  %v6347_v10 = vor.u32 %v8704_v9, %v6346_v7  ;;  %v264_v13 = vld [vmem:[%s10126_s2] sm:$0xff]  ;;  %v301_v20 = vperm.slane %v299_v18, 0  ;;  %v302_v21 = vperm.slane %v299_v18, 1  ;;  %v303_v22 = vperm.slane %v299_v18, 2  ;;  %s9688_s23 = smov 96   ;;  %s9689_s24 = smov 32  }
  0x49   :  { %vm544_vm2 = vcmask 1043456   ;;  %vm515_vm3 = vcmask 64512   ;;  %v8727_v63 = vld [vmem:[#allocation10 + $0x8] sm:$0xff]  ;;  %v8726_v2 = vld [vmem:[#allocation10] sm:$0xff]  ;;  %s9691_s11 = smov [#allocation20]   ;;  %s6315_s4 = sshll.u32 %s10120_s18, 4  ;;  %s6316_s4 = int_to_ptr.hbm [resolvable:$true] %s6315_s4 }
  0x4a   :  { %439 = vmatpush.bf16.msra.mxu1 %v6375_v48  ;;  %s6313_s17 = sshll.u32 %s9691_s11, 4  ;;  %s6314_s17 = int_to_ptr.vmem [resolvable:$true] %s6313_s17 }
  0x4b   :  { %452 = vmatpush.bf16.msra.mxu2 %v6379_v49 }
  0x4c   :  { %465 = vmatpush.bf16.msra.mxu3 %v6383_v50 }
  0x4e   :  { %440 = vmatpush.bf16.msra.mxu1 %v6363_v54 }
  0x4f   :  { %453 = vmatpush.bf16.msra.mxu2 %v6367_v55 }
  0x50   :  { %466 = vmatpush.bf16.msra.mxu3 %v6371_v56 }
  0x52   :  { %441 = vmatpush.bf16.msra.mxu1 %v6351_v60 }
  0x53   :  { %454 = vmatpush.bf16.msra.mxu2 %v6355_v0 }
  0x54   :  { %467 = vmatpush.bf16.msra.mxu3 %v6359_v1 }
  0x56   :  { %442 = vmatpush.bf16.msra.mxu1 %v6339_v4 }
  0x57   :  { %455 = vmatpush.bf16.msra.mxu2 %v6343_v8 }
  0x58   :  { %468 = vmatpush.bf16.msra.mxu3 %v6347_v10 }
  0xbc   :  { %v260_v12 = vpop.f32.mrf.mxu0 }
  0xbd   :  { %v261_v14 = vadd.f32 %v9311_v11, %v260_v12 }
  0xbf   :  { %v9840_v15 = vadd.f32 %v264_v13, %v261_v14 }
  0xc1   :  { %v266_v16 = vpack.c.bf16 %v9840_v15, %v9840_v15 }
  0xc3   :  { %443 = vmatmul.bf16.vlgmr.msra.gmra.mxu1 %v266_v16  ;;  %456 = vmatmul.bf16.vlgmr.msra.gmra.mxu2 %v266_v16 }
  0xc4   :  { %469 = vmatmul.bf16.vlgmr.msra.gmra.mxu3 %v266_v16  ;;  %v262_v17 = vpop.f32.mrf.mxu0 }
 0x140   :  { %v444_v19 = vpop.f32.mrf.mxu1 }
 0x141   :  { %v445_v24 = vadd.f32 %v444_v19, %v301_v20 }
 0x146   :  { %v457_v23 = vpop.f32.mrf.mxu2 }
 0x147   :  { %v458_v25 = vadd.f32 %v457_v23, %v302_v21  ;;  %v470_v26 = vpop.f32.mrf.mxu3 }
 0x148   :  { %v471_v27 = vadd.f32 %v470_v26, %v303_v22  ;;  %v446_v28 = vpop.f32.mrf.mxu1 }
 0x149   :  { %v474_v29 = vpack.c.bf16 %v458_v25, %v445_v24 }
 0x14a   :  { %v475_v31 = vpack.c.bf16 %v471_v27, %v471_v27 }
 0x14b   :  { %v493_v30 = vunpack.c.h.b16 %v474_v29  ;;  %v562_v37 = vunpack.c.l.b16 %v474_v29 }
 0x14c   :  { %v546_v36 = vsel %vm544_vm2, %v475_v31, 0  ;;  %v613_v51 = vunpack.c.l.b16 %v475_v31 }
 0x14d   :  { %v494_v32 = vpack.c.b16 %v493_v30, %v493_v30  ;;  %v563_v38 = vpack.c.b16 %v562_v37, %v562_v37 }
 0x14e   :  { %v459_v33 = vpop.f32.mrf.mxu2  ;;  %v9858_v52 = vpack.c.b16 %v613_v51, %v613_v51 }
 0x14f   :  { %v472_v34 = vpop.f32.mrf.mxu3  ;;  %695 = vrot.lane.b32.xlu2 %v494_v32, %s9673_s30  ;;  %566 = vrot.lane.b32.xlu1 %v494_v32, %s9688_s23  ;;  %v500_v35 = vsel %vm495_vm1, %v494_v32, 0 }
 0x150   :  { %509 = vmatpush.bf16.xpose.msrb.mxu0 %v500_v35 }
 0x157   :  { %693 = vrot.lane.b32.xlu2 %v563_v38, %s9673_s30  ;;  %564 = vrot.lane.b32.xlu1 %v563_v38, %s9688_s23 }
 0x158   :  { %555 = vmatpush.bf16.msra.mxu0 %v546_v36  ;;  %v8729_v36 = vld [vmem:[#allocation10 + $0x18] sm:$0xff] }
 0x159   :  { %6432 = vmatmul.msk.bf16.vlgmr.msrb.gmra.mxu0 %vm495_vm1, %v474_v29  ;;  %658 = vmatpush.bf16.msrb.mxu3 %v8729_v36 }
 0x15c   :  { %686 = vmatpush.bf16.msrb.mxu0 %v8727_v63 }
 0x15f   :  { %792 = vrot.lane.b32.xlu1 %v563_v38, %s9689_s24 }
 0x160   :  { %687 = vmatpush.bf16.msrb.mxu0 %v8726_v2 }
 0x1a9   :  { %v696_v39 = vpop.permute.xlu2 %695 }
 0x1aa   :  { %v701_v40 = vsel %vm495_vm1, %v696_v39, 0 }
 0x1ab   :  { %710 = vmatpush.bf16.xpose.msrb.mxu1 %v701_v40 }
 0x1b1   :  { %v694_v41 = vpop.permute.xlu2 %693 }
 0x1b2   :  { %6454 = vmatmul.msk.bf16.vlgmr.msrb.gmra.mxu1 %vm495_vm1, %v694_v41 }
 0x1c1   :  { %v567_v42 = vpop.permute.xlu1 %566 }
 0x1c2   :  { %v572_v43 = vsel %vm495_vm1, %v567_v42, 0 }
 0x1c3   :  { %581 = vmatpush.bf16.xpose.msrb.mxu2 %v572_v43 }
 0x1c9   :  { %v565_v44 = vpop.permute.xlu1 %564 }
 0x1ca   :  { %6434 = vmatmul.msk.bf16.vlgmr.msrb.gmra.mxu2 %vm495_vm1, %v565_v44 }
 0x1d1   :  { %v9865_v61 = vpop.permute.xlu1 %792 }
 0x1d6   :  { %v511_v45 = vpop.f32.mrf.mxu0 }
 0x1d7   :  { %v516_v46 = vsel %vm515_vm3, %v511_v45, -inf }
 0x1d8   :  { %517 = vmax.xlane.f32.xlu0 %v516_v46 }
 0x1de   :  { %v513_v47 = vpop.f32.mrf.mxu0 }
 0x22f   :  { %v712_v48 = vpop.f32.mrf.mxu1 }
 0x230   :  { %v716_v49 = vsel %vm515_vm3, %v712_v48, -inf }
 0x231   :  { %717 = vmax.xlane.f32.xlu1 %v716_v49 }
 0x237   :  { %v714_v50 = vpop.f32.mrf.mxu1 }
 0x24a   :  { %615 = vrot.lane.b32.xlu1 %v9858_v52, %s9688_s23 }
 0x24b   :  { %v518_v53 = vpop.xlane.xlu0 %517 }
 0x24c   :  { %v519_v54 = vsub.f32 %v511_v45, %v518_v53  ;;  %v8728_v45 = vld [vmem:[#allocation10 + $0x10] sm:$0xff] }
 0x24d   :  { %v583_v56 = vpop.f32.mrf.mxu2  ;;  %659 = vmatpush.bf16.msrb.mxu3 %v8728_v45 }
 0x24e   :  { %v520_v55 = vmul.f32 1.442695, %v519_v54  ;;  %v587_v57 = vsel %vm515_vm3, %v583_v56, -inf }
 0x24f   :  { %588 = vmax.xlane.f32.xlu2 %v587_v57 }
 0x250   :  { %9325 = vpow2.f32 %v520_v55 }
 0x255   :  { %v585_v59 = vpop.f32.mrf.mxu2 }
 0x256   :  { %v9326_v58 = vpop.eup %9325 }
 0x257   :  { %v522_v60 = vsel %vm515_vm3, %v9326_v58, 0.0 }
 0x258   :  { %523 = vadd.xlane.f32.xlu0 %v522_v60 }
 0x26c   :  { %794 = vrot.lane.b32.xlu0 %v494_v32, %s9689_s24 }
 0x2a4   :  { %v718_v62 = vpop.xlane.xlu1 %717 }
 0x2a5   :  { %v719_v5 = vsub.f32 %v712_v48, %v718_v62 }
 0x2a7   :  { %v720_v7 = vmul.f32 1.442695, %v719_v5 }
 0x2bc   :  { %v616_v0 = vpop.permute.xlu1 %615 }
 0x2bd   :  { %v621_v1 = vsel %vm544_vm2, %v616_v0, 0 }
 0x2be   :  { %630 = vmatpush.bf16.msra.mxu2 %v621_v1 }
 0x2c2   :  { %v589_v3 = vpop.xlane.xlu2 %588 }
 0x2c3   :  { %v590_v4 = vsub.f32 %v583_v56, %v589_v3 }
 0x2c5   :  { %v591_v6 = vmul.f32 1.442695, %v590_v4 }
 0x2c7   :  { %9327 = vpow2.f32 %v591_v6 }
 0x2cb   :  { %v524_v8 = vpop.xlane.xlu0 %523 }
 0x2cc   :  { %9329 = vrcp.f32 %v524_v8  ;;  %v536_v16 = vand.u32 2147483648, %v524_v8  ;;  %v534_v18 = vand.u32 2147483647, %v524_v8  ;;  %vm530_vm5 = vweird.f32 %v524_v8 }
 0x2cd   :  { %v9328_v9 = vpop.eup %9327  ;;  %9331 = vpow2.f32 %v720_v7 }
 0x2ce   :  { %v593_v10 = vsel %vm515_vm3, %v9328_v9, 0.0  ;;  %v537_v21 = vor.u32 1.1754944e-38, %v536_v16  ;;  %vm535_vm7 = vcmp.eq.f32.partialorder %v534_v18, 8.507059e+37  ;;  %v8730_v16 = vld [vmem:[#allocation10 + $0x20] sm:$0xff]  ;;  %v8733_v18 = vld [vmem:[#allocation10 + $0x38] sm:$0xff] }
 0x2cf   :  { %594 = vadd.xlane.f32.xlu2 %v593_v10 }
 0x2d2   :  { %v9330_v11 = vpop.eup %9329 }
 0x2d3   :  { %v526_v12 = vmul.f32 %v9330_v11, %v524_v8  ;;  %v9869_v13 = vpop.eup %9331  ;;  %vm531_vm4 = vweird.f32 %v9330_v11 }
 0x2d4   :  { %v722_v19 = vsel %vm515_vm3, %v9869_v13, 0.0  ;;  %vm532_vm6 = vmor %vm530_vm5, %vm531_vm4 }
 0x2d5   :  { %v527_v14 = vsub.f32 1.0, %v526_v12 }
 0x2d7   :  { %v528_v17 = vmul.f32 %v9330_v11, %v527_v14  ;;  %723 = vadd.xlane.f32.xlu2 %v722_v19  ;;  %v8731_v14 = vld [vmem:[#allocation10 + $0x28] sm:$0xff] }
 0x2d8   :  { %784 = vmatpush.bf16.msra.mxu3 %v8731_v14 }
 0x2d9   :  { %v529_v20 = vadd.f32 %v9330_v11, %v528_v17 }
 0x2db   :  { %v533_v22 = vsel %vm532_vm6, %v9330_v11, %v529_v20 }
 0x2dc   :  { %v538_v23 = vsel %vm535_vm7, %v537_v21, %v533_v22  ;;  %785 = vmatpush.bf16.msra.mxu3 %v8730_v16  ;;  %v8823_v16 = vld [vmem:[#allocation11 + $0x2c4] sm:$0xf0] }
 0x2dd   :  { %v539_v24 = vmul.f32 %v9326_v58, %v538_v23 }
 0x2de   :  { %v795_v25 = vpop.permute.xlu0 %794 }
 0x2df   :  { %v800_v26 = vsel %vm495_vm1, %v795_v25, 0  ;;  %v540_v27 = vpack.c.bf16 %v539_v24, %v539_v24 }
 0x2e1   :  { %6433 = vmatmul.msk.bf16.vlgmr.msra.gmra.mxu0 %vm515_vm3, %v540_v27 }
 0x2e2   :  { %809 = vmatpush.bf16.xpose.msra.mxu0 %v800_v26 }
 0x342   :  { %v595_v28 = vpop.xlane.xlu2 %594 }
 0x343   :  { %9333 = vrcp.f32 %v595_v28  ;;  %v607_v32 = vand.u32 2147483648, %v595_v28  ;;  %v605_v34 = vand.u32 2147483647, %v595_v28  ;;  %vm601_vm9 = vweird.f32 %v595_v28 }
 0x345   :  { %v608_v37 = vor.u32 1.1754944e-38, %v607_v32  ;;  %vm606_vm11 = vcmp.eq.f32.partialorder %v605_v34, 8.507059e+37  ;;  %v8732_v34 = vld [vmem:[#allocation10 + $0x30] sm:$0xff] }
 0x349   :  { %v9334_v29 = vpop.eup %9333 }
 0x34a   :  { %v597_v30 = vmul.f32 %v9334_v29, %v595_v28  ;;  %vm602_vm8 = vweird.f32 %v9334_v29  ;;  %v724_v55 = vpop.xlane.xlu2 %723 }
 0x34b   :  { %vm603_vm10 = vmor %vm601_vm9, %vm602_vm8  ;;  %9335 = vrcp.f32 %v724_v55  ;;  %v736_v2 = vand.u32 2147483648, %v724_v55  ;;  %vm730_vm13 = vweird.f32 %v724_v55  ;;  %v734_v3 = vand.u32 2147483647, %v724_v55 }
 0x34c   :  { %v598_v31 = vsub.f32 1.0, %v597_v30 }
 0x34d   :  { %v737_v7 = vor.u32 1.1754944e-38, %v736_v2  ;;  %vm735_vm15 = vcmp.eq.f32.partialorder %v734_v3, 8.507059e+37  ;;  %v6870_v2 = vld [vmem:[#allocation11 + $0x308] sm:$0xf] }
 0x34e   :  { %v599_v33 = vmul.f32 %v9334_v29, %v598_v31  ;;  %v8839_v3 = vld [vmem:[#allocation11 + $0x344] sm:$0xf0] }
 0x350   :  { %v600_v35 = vadd.f32 %v9334_v29, %v599_v33 }
 0x351   :  { %v9336_v56 = vpop.eup %9335 }
 0x352   :  { %v604_v38 = vsel %vm603_vm10, %v9334_v29, %v600_v35  ;;  %v726_v57 = vmul.f32 %v9336_v56, %v724_v55  ;;  %vm731_vm12 = vweird.f32 %v9336_v56  ;;  %v8855_v55 = vld [vmem:[#allocation11 + $0x3c4] sm:$0xf0] }
 0x353   :  { %v609_v39 = vsel %vm606_vm11, %v608_v37, %v604_v38  ;;  %vm732_vm14 = vmor %vm730_vm13, %vm731_vm12 }
 0x354   :  { %v610_v40 = vmul.f32 %v9328_v9, %v609_v39  ;;  %v727_v59 = vsub.f32 1.0, %v726_v57 }
 0x356   :  { %v611_v41 = vpack.c.bf16 %v610_v40, %v610_v40  ;;  %v728_v63 = vmul.f32 %v9336_v56, %v727_v59  ;;  %v6936_v59 = vld [vmem:[#allocation11 + $0x3c8] sm:$0xf0] }
 0x358   :  { %6435 = vmatmul.msk.bf16.vlgmr.msra.gmra.mxu2 %vm515_vm3, %v611_v41  ;;  %v729_v1 = vadd.f32 %v9336_v56, %v728_v63  ;;  %v6864_v63 = vld [vmem:[#allocation11 + $0x340] sm:$0xf0] }
 0x35a   :  { %v733_v5 = vsel %vm732_vm14, %v9336_v56, %v729_v1 }
 0x35b   :  { %v738_v8 = vsel %vm735_vm15, %v737_v7, %v733_v5  ;;  %v6871_v5 = vor.u32 %v8839_v3, %v6870_v2  ;;  %v6798_v7 = vld [vmem:[#allocation11 + $0x280] sm:$0xf]  ;;  %v6552_v2 = vld [vmem:[#allocation11 + $0xc8] sm:$0xf0] }
 0x35c   :  { %v739_v9 = vmul.f32 %v9869_v13, %v738_v8  ;;  %v8822_v8 = vld [vmem:[#allocation11 + $0x2bc] sm:$0xf0] }
 0x35d   :  { %v6799_v14 = vor.u32 %v8822_v8, %v6798_v7  ;;  %v9690_v8 = vmov 0.0  }
 0x35e   :  { %v557_v42 = vpop.f32.mrf.mxu0  ;;  %v740_v12 = vpack.c.bf16 %v739_v9, %v739_v9 }
 0x35f   :  { %v561_v43 = vpack.c.bf16 %v557_v42, %v557_v42  ;;  %v9312_v42 = vld [vmem:[%s10109_s7] ss:$0 sm:$0xff] }
 0x361   :  { %6453 = vmatmul.msk.bf16.vlgmr.msrb.gmra.mxu0 %vm495_vm1, %v561_v43 }
 0x366   :  { %v559_v44 = vpop.f32.mrf.mxu0 }
 0x371   :  { %6465 = vmatmul.msk.bf16.vlgmr.msra.gmra.mxu0 %vm495_vm1, %v9865_v61 }
 0x3db   :  { %v632_v46 = vpop.f32.mrf.mxu2 }
 0x3dc   :  { %v636_v47 = vpack.c.bf16 %v632_v46, %v632_v46 }
 0x3de   :  { %v9879_v48 = vpop.f32.mrf.mxu0  ;;  %6444 = vmatmul.msk.bf16.vlgmr.msrb.gmra.mxu3 %vm495_vm1, %v636_v47 }
 0x3e3   :  { %v634_v49 = vpop.f32.mrf.mxu2 }
 0x3e4   :  { %v6926_v49 = vld [vmem:[#allocation11 + $0x380] sm:$0xf] }
 0x3e6   :  { %v691_v50 = vpop.f32.mrf.mxu0 }
 0x3e7   :  { %v8854_v50 = vld [vmem:[#allocation11 + $0x3bc] sm:$0xf0] }
 0x3ee   :  { %v811_v51 = vpop.f32.mrf.mxu0 }
 0x3ef   :  { %v815_v53 = vsel %vm515_vm3, %v811_v51, -inf }
 0x3f0   :  { %816 = vmax.xlane.f32.xlu0 %v815_v53  ;;  %v6928_v53 = vld [vmem:[#allocation11 + $0x3c0] sm:$0xf0] }
 0x3f6   :  { %v813_v54 = vpop.f32.mrf.mxu0 }
 0x3f7   :  { %v6934_v54 = vld [vmem:[#allocation11 + $0x388] sm:$0xf] }
 0x3f8   :  { %v6935_v57 = vor.u32 %v8855_v55, %v6934_v54  ;;  %v8767_v54 = vld [vmem:[#allocation11 + $0x10c] sm:$0xf] }
 0x3f9   :  { %v6616_v55 = vld [vmem:[#allocation11 + $0x148] sm:$0xf0] }
 0x404   :  { %741 = vrot.lane.b32.xlu0 %v9858_v52, %s9673_s30 }
 0x461   :  { %v9885_v58 = vpop.f32.mrf.mxu3 }
 0x462   :  { %v690_v38 = vadd.f32 %v9879_v48, %v9885_v58  ;;  %v6927_v48 = vor.u32 %v8854_v50, %v6926_v49  ;;  %v8847_v58 = vld [vmem:[#allocation11 + $0x38c] sm:$0xf]  ;;  %v6608_v50 = vld [vmem:[#allocation11 + $0x140] sm:$0xf0] }
 0x463   :  { %v817_v60 = vpop.xlane.xlu0 %816 }
 0x464   :  { %v818_v61 = vsub.f32 %v811_v51, %v817_v60  ;;  %v8846_v51 = vld [vmem:[#allocation11 + $0x384] sm:$0xf]  ;;  %v6862_v60 = vld [vmem:[#allocation11 + $0x300] sm:$0xf]  ;;  %1733 = vmatpush.bf16.msrb.mxu3 %v6927_v48  ;;  %v8775_v48 = vld [vmem:[#allocation11 + $0x144] sm:$0xf0] }
 0x465   :  { %v6931_v56 = vor.u32 %v8846_v51, %v6928_v53  ;;  %v6614_v51 = vld [vmem:[#allocation11 + $0x108] sm:$0xf] }
 0x466   :  { %v819_v62 = vmul.f32 1.442695, %v818_v61  ;;  %v6939_v61 = vor.u32 %v8847_v58, %v6936_v59  ;;  %v6615_v58 = vor.u32 %v8775_v48, %v6614_v51  ;;  %v6542_v59 = vld [vmem:[#allocation11 + $0x80] sm:$0xf]  ;;  %v6814_v51 = vld [vmem:[#allocation11 + $0x290] sm:$0xf] }
 0x467   :  { %1746 = vmatpush.bf16.msrb.mxu0 %v6931_v56  ;;  %v8824_v48 = vld [vmem:[#allocation11 + $0x2cc] sm:$0xf0] }
 0x468   :  { %9337 = vpow2.f32 %v819_v62  ;;  %v8838_v62 = vld [vmem:[#allocation11 + $0x33c] sm:$0xf0] }
 0x469   :  { %v663_v0 = vpop.f32.mrf.mxu3 }
 0x46a   :  { %v6863_v0 = vor.u32 %v8838_v62, %v6862_v60  ;;  %v8758_v60 = vld [vmem:[#allocation11 + $0xbc] sm:$0xf0]  ;;  %v6619_v62 = vor.u32 %v8767_v54, %v6616_v55  ;;  %v6815_v54 = vor.u32 %v8824_v48, %v6814_v51  ;;  %v6816_v55 = vld [vmem:[#allocation11 + $0x2d0] sm:$0xf0] }
 0x46b   :  { %v8736_v51 = vld [vmem:[#allocation11 + $0x14] sm:$0xf] }
 0x46c   :  { %1734 = vmatpush.bf16.msrb.mxu3 %v6863_v0  ;;  %v8759_v0 = vld [vmem:[#allocation11 + $0xc4] sm:$0xf0] }
 0x46e   :  { %v9338_v4 = vpop.eup %9337 }
 0x46f   :  { %v821_v6 = vsel %vm515_vm3, %v9338_v4, 0.0 }
 0x470   :  { %822 = vadd.xlane.f32.xlu2 %v821_v6  ;;  %v6872_v6 = vld [vmem:[#allocation11 + $0x348] sm:$0xf0]  ;;  %1735 = vmatpush.bf16.msrb.mxu3 %v6799_v14 }
 0x476   :  { %v742_v10 = vpop.permute.xlu0 %741 }
 0x477   :  { %v747_v11 = vsel %vm544_vm2, %v742_v10, 0  ;;  %v8814_v10 = vld [vmem:[#allocation11 + $0x284] sm:$0xf] }
 0x478   :  { %756 = vmatpush.bf16.msrb.mxu2 %v747_v11  ;;  %v6800_v11 = vld [vmem:[#allocation11 + $0x2c0] sm:$0xf0] }
 0x47b   :  { %6455 = vmatmul.msk.bf16.vlgmr.msrb.gmra.mxu2 %vm515_vm3, %v740_v12  ;;  %v6806_v12 = vld [vmem:[#allocation11 + $0x288] sm:$0xf] }
 0x47c   :  { %883 = vmatpush.bf16.msra.mxu2 %v8733_v18  ;;  %v6808_v18 = vld [vmem:[#allocation11 + $0x2c8] sm:$0xf0] }
 0x480   :  { %884 = vmatpush.bf16.msra.mxu2 %v8732_v34 }
 0x484   :  { %1772 = vmatpush.bf16.msrb.mxu2 %v6939_v61  ;;  %v8750_v61 = vld [vmem:[#allocation11 + $0x84] sm:$0xf] }
 0x488   :  { %840 = vrot.lane.b32.xlu2 %v9858_v52, %s9689_s24 }
 0x4e3   :  { %v823_v17 = vpop.xlane.xlu2 %822 }
 0x4e4   :  { %9339 = vrcp.f32 %v823_v17  ;;  %v835_v23 = vand.u32 2147483648, %v823_v17  ;;  %v833_v25 = vand.u32 2147483647, %v823_v17  ;;  %vm829_vm4 = vweird.f32 %v823_v17 }
 0x4e6   :  { %v836_v26 = vor.u32 1.1754944e-38, %v835_v23  ;;  %vm834_vm6 = vcmp.eq.f32.partialorder %v833_v25, 8.507059e+37  ;;  %v6742_v25 = vld [vmem:[#allocation11 + $0x208] sm:$0xf] }
 0x4ea   :  { %v9340_v19 = vpop.eup %9339 }
 0x4eb   :  { %v825_v13 = vmul.f32 %v9340_v19, %v823_v17  ;;  %v841_v20 = vpop.permute.xlu2 %840  ;;  %vm830_vm0 = vweird.f32 %v9340_v19  ;;  %v8815_v17 = vld [vmem:[#allocation11 + $0x28c] sm:$0xf] }
 0x4ec   :  { %v846_v21 = vsel %vm544_vm2, %v841_v20, 0  ;;  %vm831_vm5 = vmor %vm829_vm4, %vm830_vm0  ;;  %v6734_v20 = vld [vmem:[#allocation11 + $0x200] sm:$0xf]  ;;  %v6811_v23 = vor.u32 %v8815_v17, %v6808_v18  ;;  %v8734_v18 = vld [vmem:[#allocation11 + $0x4] sm:$0xf] }
 0x4ed   :  { %v826_v22 = vsub.f32 1.0, %v825_v13  ;;  %855 = vmatpush.bf16.msra.mxu1 %v846_v21  ;;  %v6807_v13 = vor.u32 %v8823_v16, %v6806_v12  ;;  %v8806_v21 = vld [vmem:[#allocation11 + $0x23c] sm:$0xf0] }
 0x4ee   :  { %v6478_v16 = vld [vmem:[#allocation11] sm:$0xf] }
 0x4ef   :  { %v827_v24 = vmul.f32 %v9340_v19, %v826_v22  ;;  %v8798_v22 = vld [vmem:[#allocation11 + $0x204] sm:$0xf]  ;;  %v8742_v17 = vld [vmem:[#allocation11 + $0x3c] sm:$0xf0] }
 0x4f1   :  { %v828_v52 = vadd.f32 %v9340_v19, %v827_v24  ;;  %1759 = vmatpush.bf16.msrb.mxu1 %v6935_v57  ;;  %v6736_v24 = vld [vmem:[#allocation11 + $0x240] sm:$0xf0] }
 0x4f3   :  { %v832_v27 = vsel %vm831_vm5, %v9340_v19, %v828_v52  ;;  %v6803_v19 = vor.u32 %v8814_v10, %v6800_v11  ;;  %v8807_v52 = vld [vmem:[#allocation11 + $0x244] sm:$0xf0] }
 0x4f4   :  { %v837_v28 = vsel %vm834_vm6, %v836_v26, %v832_v27  ;;  %v8799_v26 = vld [vmem:[#allocation11 + $0x20c] sm:$0xf] }
 0x4f5   :  { %v838_v29 = vmul.f32 %v9338_v4, %v837_v28  ;;  %v8831_v4 = vld [vmem:[#allocation11 + $0x30c] sm:$0xf]  ;;  %1760 = vmatpush.bf16.msrb.mxu1 %v6871_v5  ;;  %v6735_v28 = vor.u32 %v8806_v21, %v6734_v20  ;;  %v6486_v20 = vld [vmem:[#allocation11 + $0x8] sm:$0xf] }
 0x4f6   :  { %v6875_v9 = vor.u32 %v8831_v4, %v6872_v6  ;;  %v6744_v27 = vld [vmem:[#allocation11 + $0x248] sm:$0xf0]  ;;  %v6543_v4 = vor.u32 %v8758_v60, %v6542_v59  ;;  %v8743_v21 = vld [vmem:[#allocation11 + $0x44] sm:$0xf0]  ;;  %v8817_v60 = vld [vmem:[#allocation11 + $0x29c] sm:$0xf] }
 0x4f7   :  { %v839_v30 = vpack.c.bf16 %v838_v29, %v838_v29  ;;  %v6739_v29 = vor.u32 %v8798_v22, %v6736_v24  ;;  %v6747_v34 = vor.u32 %v8799_v26, %v6744_v27  ;;  %1736 = vmatpush.bf16.msrb.mxu3 %v6735_v28  ;;  %v6488_v24 = vld [vmem:[#allocation11 + $0x48] sm:$0xf0]  ;;  %v8856_v26 = vld [vmem:[#allocation11 + $0x3cc] sm:$0xf0]  ;;  %v8848_v27 = vld [vmem:[#allocation11 + $0x394] sm:$0xf] }
 0x4f8   :  { %1773 = vmatpush.bf16.msrb.mxu2 %v6875_v9  ;;  %v6944_v28 = vld [vmem:[#allocation11 + $0x3d0] sm:$0xf0] }
 0x4f9   :  { %6466 = vmatmul.msk.bf16.vlgmr.msra.gmra.mxu1 %vm515_vm3, %v839_v30  ;;  %v6743_v30 = vor.u32 %v8807_v52, %v6742_v25  ;;  %v6942_v25 = vld [vmem:[#allocation11 + $0x390] sm:$0xf] }
 0x4fa   :  { %1761 = vmatpush.bf16.msrb.mxu1 %v6807_v13  ;;  %v6480_v13 = vld [vmem:[#allocation11 + $0x40] sm:$0xf0] }
 0x4fb   :  { %v6483_v22 = vor.u32 %v8734_v18, %v6480_v13  ;;  %v6688_v18 = vld [vmem:[#allocation11 + $0x1d0] sm:$0xf0]  ;;  %v8793_v13 = vld [vmem:[#allocation11 + $0x1d4] sm:$0xf0] }
 0x4fc   :  { %1774 = vmatpush.bf16.msrb.mxu2 %v6811_v23  ;;  %v8735_v23 = vld [vmem:[#allocation11 + $0xc] sm:$0xf] }
 0x4fd   :  { %v6491_v52 = vor.u32 %v8735_v23, %v6488_v24  ;;  %v6622_v24 = vld [vmem:[#allocation11 + $0x110] sm:$0xf] }
 0x4fe   :  { %v758_v31 = vpop.f32.mrf.mxu2  ;;  %1762 = vmatpush.bf16.msrb.mxu1 %v6743_v30  ;;  %v6947_v30 = vor.u32 %v8848_v27, %v6944_v28  ;;  %v6624_v27 = vld [vmem:[#allocation11 + $0x150] sm:$0xf0]  ;;  %v6630_v28 = vld [vmem:[#allocation11 + $0x118] sm:$0xf] }
 0x4ff   :  { %v762_v32 = vpack.c.bf16 %v758_v31, %v758_v31  ;;  %v6670_v31 = vld [vmem:[#allocation11 + $0x180] sm:$0xf] }
 0x500   :  { %1775 = vmatpush.bf16.msrb.mxu2 %v6747_v34 }
 0x501   :  { %6464 = vmatmul.msk.bf16.vlgmr.msra.gmra.mxu3 %vm495_vm1, %v762_v32  ;;  %v8790_v32 = vld [vmem:[#allocation11 + $0x1bc] sm:$0xf0] }
 0x506   :  { %v760_v33 = vpop.f32.mrf.mxu2 }
 0x507   :  { %v8782_v33 = vld [vmem:[#allocation11 + $0x184] sm:$0xf] }
 0x576   :  { %v857_v35 = vpop.f32.mrf.mxu1 }
 0x577   :  { %v861_v36 = vpack.c.bf16 %v857_v35, %v857_v35  ;;  %v6672_v35 = vld [vmem:[#allocation11 + $0x1c0] sm:$0xf0] }
 0x579   :  { %6475 = vmatmul.msk.bf16.vlgmr.msra.gmra.mxu2 %vm495_vm1, %v861_v36  ;;  %v6678_v36 = vld [vmem:[#allocation11 + $0x188] sm:$0xf] }
 0x57e   :  { %v859_v37 = vpop.f32.mrf.mxu1 }
 0x57f   :  { %v8791_v37 = vld [vmem:[#allocation11 + $0x1c4] sm:$0xf0] }
 0x584   :  { %v787_v39 = vpop.f32.mrf.mxu3 }
 0x585   :  { %v791_v40 = vadd.f32 %v787_v39, %v690_v38  ;;  %v228_v38 = vlaneseq  ;;  %v8783_v39 = vld [vmem:[#allocation11 + $0x18c] sm:$0xf] }
 0x587   :  { %v229_v53 = vand.u32 127, %v228_v38 }
 0x589   :  { %vm230_vm7 = vcmp.lt.s32.totalorder %v229_v53, 32  ;;  %v8816_v53 = vld [vmem:[#allocation11 + $0x294] sm:$0xf] }
 0x58a   :  { %v9906_v9 = vsel %vm230_vm7, 1.0, %v9690_v8  ;;  %v6760_v8 = vld [vmem:[#allocation11 + $0x258] sm:$0xf0] }
 0x58c   :  { %v789_v41 = vpop.f32.mrf.mxu3 }
 0x58d   :  { %v6671_v41 = vor.u32 %v8790_v32, %v6670_v31  ;;  %v6950_v31 = vld [vmem:[#allocation11 + $0x398] sm:$0xf] }
 0x58e   :  { %v8857_v32 = vld [vmem:[#allocation11 + $0x3d4] sm:$0xf0] }
 0x58f   :  { %1737 = vmatpush.bf16.msrb.mxu3 %v6671_v41  ;;  %v6951_v34 = vor.u32 %v8857_v32, %v6950_v31  ;;  %v6880_v41 = vld [vmem:[#allocation11 + $0x350] sm:$0xf0]  ;;  %v8769_v32 = vld [vmem:[#allocation11 + $0x11c] sm:$0xf] }
 0x5fc   :  { %v886_v43 = vpop.f32.mrf.mxu2 }
 0x5fd   :  { %v890_v44 = vadd.f32 %v886_v43, %v791_v40  ;;  %v6680_v40 = vld [vmem:[#allocation11 + $0x1c8] sm:$0xf0]  ;;  %v6679_v43 = vor.u32 %v8791_v37, %v6678_v36  ;;  %v6878_v36 = vld [vmem:[#allocation11 + $0x310] sm:$0xf] }
 0x5fe   :  { %v6683_v49 = vor.u32 %v8783_v39, %v6680_v40  ;;  %v8840_v37 = vld [vmem:[#allocation11 + $0x34c] sm:$0xf0]  ;;  %v8832_v40 = vld [vmem:[#allocation11 + $0x314] sm:$0xf] }
 0x5ff   :  { %v895_v45 = vadd.f32 %v9312_v42, %v890_v44  ;;  %v6675_v42 = vor.u32 %v8782_v33, %v6672_v35  ;;  %v6606_v44 = vld [vmem:[#allocation11 + $0x100] sm:$0xf]  ;;  %1763 = vmatpush.bf16.msrb.mxu1 %v6679_v43  ;;  %v8849_v33 = vld [vmem:[#allocation11 + $0x39c] sm:$0xf]  ;;  %v6879_v39 = vor.u32 %v8840_v37, %v6878_v36  ;;  %v6883_v43 = vor.u32 %v8832_v40, %v6880_v41  ;;  %v8760_v36 = vld [vmem:[#allocation11 + $0xcc] sm:$0xf0] }
 0x600   :  { %1776 = vmatpush.bf16.msrb.mxu2 %v6683_v49  ;;  %v6952_v35 = vld [vmem:[#allocation11 + $0x3d8] sm:$0xf0]  ;;  %v8752_v37 = vld [vmem:[#allocation11 + $0x94] sm:$0xf]  ;;  %v6566_v40 = vld [vmem:[#allocation11 + $0x98] sm:$0xf] }
 0x601   :  { %v9903_v46 = vadd.f32 %v895_v45, %v9840_v15  ;;  %v8830_v15 = vld [vmem:[#allocation11 + $0x304] sm:$0xf]  ;;  %v8774_v45 = vld [vmem:[#allocation11 + $0x13c] sm:$0xf0]  ;;  %v6955_v38 = vor.u32 %v8849_v33, %v6952_v35  ;;  %v6632_v33 = vld [vmem:[#allocation11 + $0x158] sm:$0xf0] }
 0x602   :  { %v6867_v1 = vor.u32 %v8830_v15, %v6864_v63  ;;  %v6607_v56 = vor.u32 %v8774_v45, %v6606_v44  ;;  %v6544_v15 = vld [vmem:[#allocation11 + $0xc0] sm:$0xf0]  ;;  %v6550_v63 = vld [vmem:[#allocation11 + $0x88] sm:$0xf]  ;;  %v8841_v44 = vld [vmem:[#allocation11 + $0x354] sm:$0xf0] }
 0x603   :  { %899 = vadd.xlane.f32.xlu1 %v9903_v46  ;;  %1764 = vmatpush.bf16.msrb.mxu1 %v6615_v58  ;;  %v6547_v6 = vor.u32 %v8750_v61, %v6544_v15  ;;  %v6551_v7 = vor.u32 %v8759_v0, %v6550_v63  ;;  %v8833_v45 = vld [vmem:[#allocation11 + $0x31c] sm:$0xf]  ;;  %v6819_v58 = vor.u32 %v8816_v53, %v6816_v55  ;;  %v6750_v15 = vld [vmem:[#allocation11 + $0x210] sm:$0xf]  ;;  %v8800_v0 = vld [vmem:[#allocation11 + $0x214] sm:$0xf] }
 0x604   :  { %v888_v47 = vpop.f32.mrf.mxu2  ;;  %1747 = vmatpush.bf16.msrb.mxu0 %v6867_v1  ;;  %v8751_v1 = vld [vmem:[#allocation11 + $0x8c] sm:$0xf]  ;;  %1738 = vmatpush.bf16.msrb.mxu3 %v6607_v56  ;;  %v6822_v56 = vld [vmem:[#allocation11 + $0x298] sm:$0xf]  ;;  %v6824_v61 = vld [vmem:[#allocation11 + $0x2d8] sm:$0xf0] }
 0x605   :  { %v8766_v47 = vld [vmem:[#allocation11 + $0x104] sm:$0xf]  ;;  %1777 = vmatpush.bf16.msrb.mxu2 %v6619_v62  ;;  %v6555_v10 = vor.u32 %v8751_v1, %v6552_v2  ;;  %v6827_v62 = vor.u32 %v8817_v60, %v6824_v61  ;;  %v8808_v63 = vld [vmem:[#allocation11 + $0x24c] sm:$0xf0]  ;;  %v6752_v2 = vld [vmem:[#allocation11 + $0x250] sm:$0xf0] }
 0x606   :  { %v6611_v57 = vor.u32 %v8766_v47, %v6608_v50  ;;  %v6888_v47 = vld [vmem:[#allocation11 + $0x358] sm:$0xf0]  ;;  %v6751_v1 = vor.u32 %v8808_v63, %v6750_v15  ;;  %v6558_v35 = vld [vmem:[#allocation11 + $0x90] sm:$0xf]  ;;  %v8761_v41 = vld [vmem:[#allocation11 + $0xd4] sm:$0xf0] }
 0x607   :  { %1765 = vmatpush.bf16.msrb.mxu1 %v6551_v7  ;;  %v6891_v50 = vor.u32 %v8833_v45, %v6888_v47  ;;  %v8801_v7 = vld [vmem:[#allocation11 + $0x21c] sm:$0xf]  ;;  %v6496_v53 = vld [vmem:[#allocation11 + $0x50] sm:$0xf0]  ;;  %v8745_v55 = vld [vmem:[#allocation11 + $0x54] sm:$0xf0] }
 0x608   :  { %1748 = vmatpush.bf16.msrb.mxu0 %v6803_v19  ;;  %1739 = vmatpush.bf16.msrb.mxu3 %v6543_v4  ;;  %v6479_v19 = vor.u32 %v8742_v17, %v6478_v16  ;;  %v8809_v4 = vld [vmem:[#allocation11 + $0x254] sm:$0xf0]  ;;  %v8784_v16 = vld [vmem:[#allocation11 + $0x194] sm:$0xf]  ;;  %v6568_v45 = vld [vmem:[#allocation11 + $0xd8] sm:$0xf0] }
 0x609   :  { %1778 = vmatpush.bf16.msrb.mxu2 %v6555_v10  ;;  %v6763_v10 = vor.u32 %v8801_v7, %v6760_v8  ;;  %v9314_v7 = vld [vmem:[%s10115_s13] ss:$0 sm:$0xff] }
 0x60c   :  { %1749 = vmatpush.bf16.msrb.mxu0 %v6739_v29  ;;  %1740 = vmatpush.bf16.msrb.mxu3 %v6479_v19  ;;  %v6943_v29 = vor.u32 %v8856_v26, %v6942_v25  ;;  %v6694_v19 = vld [vmem:[#allocation11 + $0x198] sm:$0xf]  ;;  %v8776_v25 = vld [vmem:[#allocation11 + $0x14c] sm:$0xf0] }
 0x60d   :  { %1779 = vmatpush.bf16.msrb.mxu2 %v6491_v52  ;;  %v8768_v52 = vld [vmem:[#allocation11 + $0x114] sm:$0xf]  ;;  %v6623_v26 = vor.u32 %v8776_v25, %v6622_v24  ;;  %v6894_v24 = vld [vmem:[#allocation11 + $0x320] sm:$0xf] }
 0x60e   :  { %v8842_v25 = vld [vmem:[#allocation11 + $0x35c] sm:$0xf0] }
 0x610   :  { %1750 = vmatpush.bf16.msrb.mxu0 %v6675_v42  ;;  %1785 = vmatpush.bf16.msra.mxu3 %v6943_v29  ;;  %v6886_v42 = vld [vmem:[#allocation11 + $0x318] sm:$0xf] }
 0x611   :  { %1824 = vmatpush.bf16.msra.mxu2 %v6955_v38  ;;  %v6887_v49 = vor.u32 %v8841_v44, %v6886_v42  ;;  %v8777_v29 = vld [vmem:[#allocation11 + $0x154] sm:$0xf0]  ;;  %v6559_v38 = vor.u32 %v8760_v36, %v6558_v35  ;;  %v8753_v44 = vld [vmem:[#allocation11 + $0x9c] sm:$0xf]  ;;  %v8826_v35 = vld [vmem:[#allocation11 + $0x2dc] sm:$0xf0] }
 0x612   :  { %v6631_v31 = vor.u32 %v8777_v29, %v6630_v28  ;;  %v6571_v47 = vor.u32 %v8753_v44, %v6568_v45  ;;  %v6902_v28 = vld [vmem:[#allocation11 + $0x328] sm:$0xf] }
 0x613   :  { %v8843_v29 = vld [vmem:[#allocation11 + $0x364] sm:$0xf0] }
 0x614   :  { %1751 = vmatpush.bf16.msrb.mxu0 %v6611_v57  ;;  %1786 = vmatpush.bf16.msra.mxu3 %v6879_v39  ;;  %v8825_v57 = vld [vmem:[#allocation11 + $0x2d4] sm:$0xf0]  ;;  %v6560_v39 = vld [vmem:[#allocation11 + $0xd0] sm:$0xf0]  ;;  %v6903_v36 = vor.u32 %v8843_v29, %v6902_v28  ;;  %v8763_v28 = vld [vmem:[#allocation11 + $0xe4] sm:$0xf0] }
 0x615   :  { %v6823_v59 = vor.u32 %v8825_v57, %v6822_v56  ;;  %1825 = vmatpush.bf16.msra.mxu2 %v6891_v50  ;;  %v6563_v42 = vor.u32 %v8752_v37, %v6560_v39  ;;  %v8744_v50 = vld [vmem:[#allocation11 + $0x4c] sm:$0xf0]  ;;  %v6499_v56 = vor.u32 %v8736_v51, %v6496_v53  ;;  %v6832_v39 = vld [vmem:[#allocation11 + $0x2e0] sm:$0xf0]  ;;  %v8755_v29 = vld [vmem:[#allocation11 + $0xac] sm:$0xf] }
 0x616   :  { %v6768_v53 = vld [vmem:[#allocation11 + $0x260] sm:$0xf0] }
 0x618   :  { %1752 = vmatpush.bf16.msrb.mxu0 %v6547_v6  ;;  %1787 = vmatpush.bf16.msra.mxu3 %v6815_v54  ;;  %v6502_v54 = vld [vmem:[#allocation11 + $0x18] sm:$0xf] }
 0x619   :  { %1826 = vmatpush.bf16.msra.mxu2 %v6827_v62  ;;  %v6503_v57 = vor.u32 %v8745_v55, %v6502_v54  ;;  %v6774_v54 = vld [vmem:[#allocation11 + $0x228] sm:$0xf] }
 0x61a   :  { %v8811_v55 = vld [vmem:[#allocation11 + $0x264] sm:$0xf0] }
 0x61c   :  { %1753 = vmatpush.bf16.msrb.mxu0 %v6483_v22  ;;  %1788 = vmatpush.bf16.msra.mxu3 %v6751_v1  ;;  %v8785_v22 = vld [vmem:[#allocation11 + $0x19c] sm:$0xf] }
 0x61d   :  { %1827 = vmatpush.bf16.msra.mxu2 %v6763_v10 }
 0x620   :  { %1798 = vmatpush.bf16.msra.mxu0 %v6947_v30  ;;  %v6627_v30 = vor.u32 %v8768_v52, %v6624_v27  ;;  %v6896_v27 = vld [vmem:[#allocation11 + $0x360] sm:$0xf0] }
 0x624   :  { %1799 = vmatpush.bf16.msra.mxu0 %v6883_v43  ;;  %v6567_v43 = vor.u32 %v8761_v41, %v6566_v40  ;;  %v6838_v40 = vld [vmem:[#allocation11 + $0x2a8] sm:$0xf] }
 0x625   :  { %v8827_v41 = vld [vmem:[#allocation11 + $0x2e4] sm:$0xf0] }
 0x628   :  { %1800 = vmatpush.bf16.msra.mxu0 %v6819_v58  ;;  %v8737_v58 = vld [vmem:[#allocation11 + $0x1c] sm:$0xf] }
 0x676   :  { %v900_v3 = vpop.xlane.xlu1 %899 }
 0x677   :  { %v901_v5 = vmul.f32 0.03125, %v900_v3  ;;  %v6758_v3 = vld [vmem:[#allocation11 + $0x218] sm:$0xf] }
 0x678   :  { %v6759_v6 = vor.u32 %v8809_v4, %v6758_v3 }
 0x679   :  { %v902_v11 = vsub.f32 %v9903_v46, %v901_v5  ;;  %v6487_v46 = vor.u32 %v8743_v21, %v6486_v20  ;;  %v6755_v5 = vor.u32 %v8800_v0, %v6752_v2  ;;  %v6691_v20 = vor.u32 %v8784_v16, %v6688_v18  ;;  %v8850_v16 = vld [vmem:[#allocation11 + $0x3a4] sm:$0xf]  ;;  %v6966_v18 = vld [vmem:[#allocation11 + $0x3a8] sm:$0xf] }
 0x67a   :  { %v6695_v21 = vor.u32 %v8793_v13, %v6694_v19  ;;  %v8859_v13 = vld [vmem:[#allocation11 + $0x3e4] sm:$0xf0] }
 0x67b   :  { %v9910_v12 = vmul.f32 %v9906_v9, %v902_v11  ;;  %1766 = vmatpush.bf16.msrb.mxu1 %v6487_v46  ;;  %v6686_v11 = vld [vmem:[#allocation11 + $0x190] sm:$0xf]  ;;  %1801 = vmatpush.bf16.msra.mxu0 %v6755_v5  ;;  %v6696_v46 = vld [vmem:[#allocation11 + $0x1d8] sm:$0xf0] }
 0x67c   :  { %v6699_v23 = vor.u32 %v8785_v22, %v6696_v46  ;;  %v9313_v5 = vld [vmem:[%s10114_s12] ss:$0 sm:$0xff] }
 0x67d   :  { %v904_v14 = vmul.f32 %v9910_v12, %v9910_v12 }
 0x67e   :  { %1828 = vmatpush.bf16.msra.mxu2 %v6699_v23 }
 0x67f   :  { %905 = vadd.xlane.f32.xlu0 %v904_v14  ;;  %1811 = vmatpush.bf16.msra.mxu1 %v6951_v34  ;;  %v8792_v14 = vld [vmem:[#allocation11 + $0x1cc] sm:$0xf0]  ;;  %v6635_v34 = vor.u32 %v8769_v32, %v6632_v33  ;;  %v6895_v32 = vor.u32 %v8842_v25, %v6894_v24  ;;  %v8762_v24 = vld [vmem:[#allocation11 + $0xdc] sm:$0xf0] }
 0x680   :  { %v6687_v17 = vor.u32 %v8792_v14, %v6686_v11  ;;  %1802 = vmatpush.bf16.msra.mxu0 %v6691_v20  ;;  %v6958_v11 = vld [vmem:[#allocation11 + $0x3a0] sm:$0xf]  ;;  %v8851_v20 = vld [vmem:[#allocation11 + $0x3ac] sm:$0xf] }
 0x681   :  { %v8858_v14 = vld [vmem:[#allocation11 + $0x3dc] sm:$0xf0] }
 0x682   :  { %1789 = vmatpush.bf16.msra.mxu3 %v6687_v17  ;;  %1829 = vmatpush.bf16.msra.mxu2 %v6635_v34  ;;  %v6960_v17 = vld [vmem:[#allocation11 + $0x3e0] sm:$0xf0]  ;;  %v6959_v46 = vor.u32 %v8858_v14, %v6958_v11  ;;  %v6830_v34 = vld [vmem:[#allocation11 + $0x2a0] sm:$0xf] }
 0x683   :  { %1812 = vmatpush.bf16.msra.mxu1 %v6887_v49  ;;  %v6494_v49 = vld [vmem:[#allocation11 + $0x10] sm:$0xf]  ;;  %v6963_v23 = vor.u32 %v8850_v16, %v6960_v17  ;;  %v6831_v44 = vor.u32 %v8826_v35, %v6830_v34  ;;  %v8770_v14 = vld [vmem:[#allocation11 + $0x124] sm:$0xf]  ;;  %v6646_v17 = vld [vmem:[#allocation11 + $0x128] sm:$0xf] }
 0x684   :  { %1803 = vmatpush.bf16.msra.mxu0 %v6627_v30  ;;  %v6495_v48 = vor.u32 %v8744_v50, %v6494_v49  ;;  %v8835_v30 = vld [vmem:[#allocation11 + $0x32c] sm:$0xf]  ;;  %v8810_v49 = vld [vmem:[#allocation11 + $0x25c] sm:$0xf0]  ;;  %v6839_v50 = vor.u32 %v8827_v41, %v6838_v40  ;;  %v6640_v16 = vld [vmem:[#allocation11 + $0x160] sm:$0xf0] }
 0x685   :  { %v8746_v34 = vld [vmem:[#allocation11 + $0x5c] sm:$0xf0]  ;;  %v8738_v35 = vld [vmem:[#allocation11 + $0x24] sm:$0xf]  ;;  %v8747_v40 = vld [vmem:[#allocation11 + $0x64] sm:$0xf0] }
 0x686   :  { %1790 = vmatpush.bf16.msra.mxu3 %v6623_v26  ;;  %1830 = vmatpush.bf16.msra.mxu2 %v6571_v47  ;;  %v8834_v26 = vld [vmem:[#allocation11 + $0x324] sm:$0xf]  ;;  %v6766_v47 = vld [vmem:[#allocation11 + $0x220] sm:$0xf]  ;;  %v8739_v41 = vld [vmem:[#allocation11 + $0x2c] sm:$0xf] }
 0x687   :  { %1813 = vmatpush.bf16.msra.mxu1 %v6823_v59  ;;  %v6504_v59 = vld [vmem:[#allocation11 + $0x58] sm:$0xf0]  ;;  %v6899_v33 = vor.u32 %v8834_v26, %v6896_v27  ;;  %v6576_v26 = vld [vmem:[#allocation11 + $0xe0] sm:$0xf0]  ;;  %v6582_v27 = vld [vmem:[#allocation11 + $0xa8] sm:$0xf] }
 0x688   :  { %1804 = vmatpush.bf16.msra.mxu0 %v6563_v42  ;;  %v6507_v60 = vor.u32 %v8737_v58, %v6504_v59  ;;  %v8819_v42 = vld [vmem:[#allocation11 + $0x2ac] sm:$0xf]  ;;  %v6767_v58 = vor.u32 %v8810_v49, %v6766_v47  ;;  %v6976_v47 = vld [vmem:[#allocation11 + $0x3f0] sm:$0xf0]  ;;  %v6982_v49 = vld [vmem:[#allocation11 + $0x3b8] sm:$0xf] }
 0x68a   :  { %1791 = vmatpush.bf16.msra.mxu3 %v6559_v38  ;;  %1831 = vmatpush.bf16.msra.mxu2 %v6507_v60  ;;  %v8818_v38 = vld [vmem:[#allocation11 + $0x2a4] sm:$0xf]  ;;  %v6702_v60 = vld [vmem:[#allocation11 + $0x1a0] sm:$0xf] }
 0x68b   :  { %1814 = vmatpush.bf16.msra.mxu1 %v6759_v6  ;;  %v6835_v45 = vor.u32 %v8818_v38, %v6832_v39  ;;  %v6518_v39 = vld [vmem:[#allocation11 + $0x28] sm:$0xf] }
 0x68c   :  { %1805 = vmatpush.bf16.msra.mxu0 %v6499_v56  ;;  %v8803_v56 = vld [vmem:[#allocation11 + $0x22c] sm:$0xf] }
 0x68e   :  { %1792 = vmatpush.bf16.msra.mxu3 %v6495_v48  ;;  %v8802_v48 = vld [vmem:[#allocation11 + $0x224] sm:$0xf] }
 0x68f   :  { %1815 = vmatpush.bf16.msra.mxu1 %v6695_v21  ;;  %v6968_v21 = vld [vmem:[#allocation11 + $0x3e8] sm:$0xf0]  ;;  %v6771_v59 = vor.u32 %v8802_v48, %v6768_v53  ;;  %v8861_v48 = vld [vmem:[#allocation11 + $0x3f4] sm:$0xf0]  ;;  %v8853_v53 = vld [vmem:[#allocation11 + $0x3bc] sm:$0xf] }
 0x690   :  { %v6971_v52 = vor.u32 %v8851_v20, %v6968_v21  ;;  %v6648_v20 = vld [vmem:[#allocation11 + $0x168] sm:$0xf0] }
 0x693   :  { %1816 = vmatpush.bf16.msra.mxu1 %v6631_v31  ;;  %v6904_v31 = vld [vmem:[#allocation11 + $0x368] sm:$0xf0] }
 0x694   :  { %v6907_v37 = vor.u32 %v8835_v30, %v6904_v31  ;;  %v6584_v30 = vld [vmem:[#allocation11 + $0xe8] sm:$0xf0]  ;;  %v6510_v31 = vld [vmem:[#allocation11 + $0x20] sm:$0xf] }
 0x695   :  { %v6587_v38 = vor.u32 %v8755_v29, %v6584_v30  ;;  %v6792_v29 = vld [vmem:[#allocation11 + $0x278] sm:$0xf0] }
 0x697   :  { %1817 = vmatpush.bf16.msra.mxu1 %v6567_v43  ;;  %v6840_v43 = vld [vmem:[#allocation11 + $0x2e8] sm:$0xf0] }
 0x698   :  { %v6843_v51 = vor.u32 %v8819_v42, %v6840_v43  ;;  %v6520_v42 = vld [vmem:[#allocation11 + $0x68] sm:$0xf0]  ;;  %v6974_v43 = vld [vmem:[#allocation11 + $0x3b0] sm:$0xf] }
 0x69b   :  { %1818 = vmatpush.bf16.msra.mxu1 %v6503_v57  ;;  %v6776_v57 = vld [vmem:[#allocation11 + $0x268] sm:$0xf0] }
 0x6f2   :  { %v906_v61 = vpop.xlane.xlu0 %905 }
 0x6f3   :  { %v907_v62 = vmul.f32 0.03125, %v906_v61  ;;  %v8794_v61 = vld [vmem:[#allocation11 + $0x1dc] sm:$0xf0] }
 0x6f5   :  { %v908_v15 = vadd.f32 1e-05, %v907_v62  ;;  %v6775_v62 = vor.u32 %v8811_v55, %v6774_v54  ;;  %v6984_v54 = vld [vmem:[#allocation11 + $0x3f8] sm:$0xf0]  ;;  %v6519_v55 = vor.u32 %v8747_v40, %v6518_v39  ;;  %v8797_v39 = vld [vmem:[#allocation11 + $0x1f4] sm:$0xf0] }
 0x6f6   :  { %v8789_v40 = vld [vmem:[#allocation11 + $0x1bc] sm:$0xf] }
 0x6f7   :  { %9341 = vrsqrt.f32 %v908_v15  ;;  %vm915_vm9 = vweird.f32 %v908_v15 }
 0x6fd   :  { %v9342_v63 = vpop.eup %9341 }
 0x6fe   :  { %v910_v0 = vmul.f32 %v9342_v63, %v908_v15  ;;  %vm916_vm8 = vweird.f32 %v9342_v63  ;;  %v6779_v15 = vor.u32 %v8803_v56, %v6776_v57  ;;  %v6523_v56 = vor.u32 %v8739_v41, %v6520_v42  ;;  %v6728_v41 = vld [vmem:[#allocation11 + $0x1f8] sm:$0xf0] }
 0x6ff   :  { %vm917_vm10 = vmor %vm915_vm9, %vm916_vm8 }
 0x700   :  { %v911_v1 = vmul.f32 %v9342_v63, %v910_v0  ;;  %v6704_v0 = vld [vmem:[#allocation11 + $0x1e0] sm:$0xf0] }
 0x702   :  { %v912_v2 = vmul.f32 0.5, %v911_v1  ;;  %v6710_v1 = vld [vmem:[#allocation11 + $0x1a8] sm:$0xf] }
 0x704   :  { %v913_v3 = vsub.f32 1.5, %v912_v2  ;;  %v8795_v2 = vld [vmem:[#allocation11 + $0x1e4] sm:$0xf0] }
 0x706   :  { %v914_v4 = vmul.f32 %v9342_v63, %v913_v3  ;;  %v8787_v3 = vld [vmem:[#allocation11 + $0x1ac] sm:$0xf] }
 0x708   :  { %v918_v6 = vsel %vm917_vm10, %v9342_v63, %v914_v4  ;;  %v8786_v63 = vld [vmem:[#allocation11 + $0x1a4] sm:$0xf]  ;;  %v6712_v4 = vld [vmem:[#allocation11 + $0x1e8] sm:$0xf0] }
 0x709   :  { %v919_v8 = vmul.f32 %v918_v6, %v9910_v12  ;;  %v6967_v12 = vor.u32 %v8859_v13, %v6966_v18  ;;  %v6707_v6 = vor.u32 %v8786_v63, %v6704_v0  ;;  %v6715_v11 = vor.u32 %v8787_v3, %v6712_v4  ;;  %v8779_v18 = vld [vmem:[#allocation11 + $0x164] sm:$0xf0]  ;;  %v8771_v13 = vld [vmem:[#allocation11 + $0x12c] sm:$0xf]  ;;  %v6912_v63 = vld [vmem:[#allocation11 + $0x370] sm:$0xf0] }
 0x70a   :  { %v6647_v25 = vor.u32 %v8779_v18, %v6646_v17  ;;  %v6918_v0 = vld [vmem:[#allocation11 + $0x338] sm:$0xf]  ;;  %v6920_v3 = vld [vmem:[#allocation11 + $0x378] sm:$0xf0] }
 0x70b   :  { %v923_v10 = vmul.f32 %v9313_v5, %v919_v8  ;;  %v6703_v5 = vor.u32 %v8794_v61, %v6702_v60  ;;  %v8778_v8 = vld [vmem:[#allocation11 + $0x15c] sm:$0xf0]  ;;  %v8844_v60 = vld [vmem:[#allocation11 + $0x36c] sm:$0xf0]  ;;  %v6983_v61 = vor.u32 %v8861_v48, %v6982_v49  ;;  %v8829_v17 = vld [vmem:[#allocation11 + $0x2f4] sm:$0xf0]  ;;  %v6731_v49 = vor.u32 %v8789_v40, %v6728_v41 }
 0x70c   :  { %v8821_v18 = vld [vmem:[#allocation11 + $0x2bc] sm:$0xf]  ;;  %v6662_v48 = vld [vmem:[#allocation11 + $0x138] sm:$0xf]  ;;  %v8872_v40 = vld [vmem:[#allocation14 + $0x50] sm:$0xff] }
 0x70d   :  { %v9921_v19 = vadd.f32 %v9314_v7, %v923_v10  ;;  %v6638_v7 = vld [vmem:[#allocation11 + $0x120] sm:$0xf]  ;;  %v6711_v10 = vor.u32 %v8795_v2, %v6710_v1  ;;  %v8845_v1 = vld [vmem:[#allocation11 + $0x374] sm:$0xf0]  ;;  %v8837_v2 = vld [vmem:[#allocation11 + $0x33c] sm:$0xf] }
 0x70e   :  { %v6639_v21 = vor.u32 %v8778_v8, %v6638_v7  ;;  %v8828_v7 = vld [vmem:[#allocation11 + $0x2ec] sm:$0xf0]  ;;  %v6919_v8 = vor.u32 %v8845_v1, %v6918_v0  ;;  %v8765_v0 = vld [vmem:[#allocation11 + $0xf4] sm:$0xf0]  ;;  %v8757_v1 = vld [vmem:[#allocation11 + $0xbc] sm:$0xf] }
 0x70f   :  { %v9925_v22 = vpack.c.bf16 %v9921_v19, %v9921_v19  ;;  %v8880_v41 = vld [vmem:[#allocation14 + $0x90] sm:$0xff] }
 0x711   :  { %1741 = vmatmul.bf16.vlgmr.msrb.gmra.mxu3 %v9925_v22  ;;  %1754 = vmatmul.bf16.vlgmr.msrb.gmra.mxu0 %v9925_v22 }
 0x712   :  { %1767 = vmatmul.bf16.vlgmr.msrb.gmra.mxu1 %v9925_v22  ;;  %1780 = vmatmul.bf16.vlgmr.msrb.gmra.mxu2 %v9925_v22 }
 0x713   :  { %1837 = vmatpush.bf16.msrb.mxu3 %v6959_v46  ;;  %1850 = vmatpush.bf16.msrb.mxu0 %v6963_v23  ;;  %v6643_v46 = vor.u32 %v8770_v14, %v6640_v16  ;;  %v6574_v23 = vld [vmem:[#allocation11 + $0xa0] sm:$0xf]  ;;  %v6848_v14 = vld [vmem:[#allocation11 + $0x2f0] sm:$0xf0]  ;;  %v6854_v16 = vld [vmem:[#allocation11 + $0x2b8] sm:$0xf] }
 0x714   :  { %1863 = vmatpush.bf16.msrb.mxu1 %v6967_v12  ;;  %1876 = vmatpush.bf16.msrb.mxu2 %v6971_v52  ;;  %v6651_v12 = vor.u32 %v8771_v13, %v6648_v20  ;;  %v8754_v52 = vld [vmem:[#allocation11 + $0xa4] sm:$0xf]  ;;  %v6856_v13 = vld [vmem:[#allocation11 + $0x2f8] sm:$0xf0] }
 0x717   :  { %1838 = vmatpush.bf16.msrb.mxu3 %v6895_v32  ;;  %1851 = vmatpush.bf16.msrb.mxu0 %v6899_v33  ;;  %v6575_v32 = vor.u32 %v8762_v24, %v6574_v23  ;;  %v6579_v33 = vor.u32 %v8754_v52, %v6576_v26  ;;  %v8812_v23 = vld [vmem:[#allocation11 + $0x26c] sm:$0xf0]  ;;  %v6855_v24 = vor.u32 %v8829_v17, %v6854_v16  ;;  %v6784_v52 = vld [vmem:[#allocation11 + $0x270] sm:$0xf0]  ;;  %v6790_v26 = vld [vmem:[#allocation11 + $0x238] sm:$0xf] }
 0x718   :  { %1864 = vmatpush.bf16.msrb.mxu1 %v6903_v36  ;;  %1877 = vmatpush.bf16.msrb.mxu2 %v6907_v37  ;;  %v6512_v36 = vld [vmem:[#allocation11 + $0x60] sm:$0xf0]  ;;  %v6583_v37 = vor.u32 %v8763_v28, %v6582_v27  ;;  %v8813_v27 = vld [vmem:[#allocation11 + $0x274] sm:$0xf0]  ;;  %v8805_v28 = vld [vmem:[#allocation11 + $0x23c] sm:$0xf] }
 0x719   :  { %v8749_v16 = vld [vmem:[#allocation11 + $0x74] sm:$0xf0]  ;;  %v8741_v17 = vld [vmem:[#allocation11 + $0x3c] sm:$0xf] }
 0x71b   :  { %1839 = vmatpush.bf16.msrb.mxu3 %v6831_v44  ;;  %1852 = vmatpush.bf16.msrb.mxu0 %v6835_v45  ;;  %v8860_v44 = vld [vmem:[#allocation11 + $0x3ec] sm:$0xf0]  ;;  %v8852_v45 = vld [vmem:[#allocation11 + $0x3b4] sm:$0xf] }
 0x71c   :  { %1865 = vmatpush.bf16.msrb.mxu1 %v6839_v50  ;;  %1878 = vmatpush.bf16.msrb.mxu2 %v6843_v51  ;;  %v6511_v50 = vor.u32 %v8746_v34, %v6510_v31  ;;  %v6515_v51 = vor.u32 %v8738_v35, %v6512_v36  ;;  %v6975_v57 = vor.u32 %v8860_v44, %v6974_v43  ;;  %v8788_v36 = vld [vmem:[#allocation11 + $0x1b4] sm:$0xf]  ;;  %v6654_v44 = vld [vmem:[#allocation11 + $0x130] sm:$0xf] }
 0x71d   :  { %v6791_v34 = vor.u32 %v8813_v27, %v6790_v26  ;;  %v6795_v35 = vor.u32 %v8805_v28, %v6792_v29  ;;  %v8884_v26 = vld [vmem:[#allocation14 + $0xb0] sm:$0xff]  ;;  %v8875_v29 = vld [vmem:[#allocation14 + $0x68] sm:$0xff] }
 0x71e   :  { %v8868_v27 = vld [vmem:[#allocation14 + $0x30] sm:$0xff] }
 0x71f   :  { %1840 = vmatpush.bf16.msrb.mxu3 %v6767_v58  ;;  %1853 = vmatpush.bf16.msrb.mxu0 %v6771_v59  ;;  %v6979_v58 = vor.u32 %v8852_v45, %v6976_v47  ;;  %v6910_v59 = vld [vmem:[#allocation11 + $0x330] sm:$0xf] }
 0x720   :  { %1866 = vmatpush.bf16.msrb.mxu1 %v6775_v62  ;;  %1879 = vmatpush.bf16.msrb.mxu2 %v6779_v15  ;;  %v6987_v62 = vor.u32 %v8853_v53, %v6984_v54  ;;  %v8836_v15 = vld [vmem:[#allocation11 + $0x334] sm:$0xf]  ;;  %v6911_v4 = vor.u32 %v8844_v60, %v6910_v59  ;;  %v8780_v45 = vld [vmem:[#allocation11 + $0x16c] sm:$0xf0]  ;;  %v8781_v53 = vld [vmem:[#allocation11 + $0x174] sm:$0xf0] }
 0x721   :  { %1793 = vmatmul.bf16.vlgmr.msra.gmra.mxu3 %v9925_v22  ;;  %1806 = vmatmul.bf16.vlgmr.msra.gmra.mxu0 %v9925_v22  ;;  %v8773_v54 = vld [vmem:[#allocation11 + $0x13c] sm:$0xf]  ;;  %v8764_v59 = vld [vmem:[#allocation11 + $0xec] sm:$0xf0]  ;;  %v6663_v60 = vor.u32 %v8781_v53, %v6662_v48 }
 0x722   :  { %1819 = vmatmul.bf16.vlgmr.msra.gmra.mxu1 %v9925_v22  ;;  %1832 = vmatmul.bf16.vlgmr.msra.gmra.mxu2 %v9925_v22  ;;  %v8892_v28 = vld [vmem:[#allocation14 + $0xf0] sm:$0xff]  ;;  %v8909_v48 = vld [vmem:[#allocation14 + $0x178] sm:$0xff] }
 0x723   :  { %1841 = vmatpush.bf16.msrb.mxu3 %v6703_v5  ;;  %1854 = vmatpush.bf16.msrb.mxu0 %v6707_v6  ;;  %v6915_v5 = vor.u32 %v8836_v15, %v6912_v63  ;;  %v6846_v6 = vld [vmem:[#allocation11 + $0x2b0] sm:$0xf]  ;;  %v6592_v15 = vld [vmem:[#allocation11 + $0xf0] sm:$0xf0]  ;;  %v6598_v63 = vld [vmem:[#allocation11 + $0xb8] sm:$0xf] }
 0x724   :  { %1867 = vmatpush.bf16.msrb.mxu1 %v6711_v10  ;;  %1880 = vmatpush.bf16.msrb.mxu2 %v6715_v11  ;;  %v6923_v10 = vor.u32 %v8837_v2, %v6920_v3  ;;  %v8820_v11 = vld [vmem:[#allocation11 + $0x2b4] sm:$0xf]  ;;  %v6847_v20 = vor.u32 %v8828_v7, %v6846_v6  ;;  %v6600_v2 = vld [vmem:[#allocation11 + $0xf8] sm:$0xf0]  ;;  %v8748_v6 = vld [vmem:[#allocation11 + $0x6c] sm:$0xf0]  ;;  %v6599_v7 = vor.u32 %v8765_v0, %v6598_v63 }
 0x725   :  { %v8917_v53 = vld [vmem:[#allocation14 + $0x1b8] sm:$0xff]  ;;  %v8899_v63 = vld [vmem:[#allocation14 + $0x128] sm:$0xff] }
 0x726   :  { %v8923_v0 = vld [vmem:[#allocation14 + $0x1e8] sm:$0xff] }
 0x727   :  { %1842 = vmatpush.bf16.msrb.mxu3 %v6639_v21  ;;  %1855 = vmatpush.bf16.msrb.mxu0 %v6643_v46  ;;  %v6851_v21 = vor.u32 %v8820_v11, %v6848_v14  ;;  %v6782_v46 = vld [vmem:[#allocation11 + $0x230] sm:$0xf]  ;;  %v6528_v11 = vld [vmem:[#allocation11 + $0x70] sm:$0xf0]  ;;  %v6534_v14 = vld [vmem:[#allocation11 + $0x38] sm:$0xf] }
 0x728   :  { %1868 = vmatpush.bf16.msrb.mxu1 %v6647_v25  ;;  %1881 = vmatpush.bf16.msrb.mxu2 %v6651_v12  ;;  %v6859_v25 = vor.u32 %v8821_v18, %v6856_v13  ;;  %v8804_v12 = vld [vmem:[#allocation11 + $0x234] sm:$0xf]  ;;  %v6783_v30 = vor.u32 %v8812_v23, %v6782_v46  ;;  %v6536_v18 = vld [vmem:[#allocation11 + $0x78] sm:$0xf0] }
 0x729   :  { %v6787_v31 = vor.u32 %v8804_v12, %v6784_v52  ;;  %v6539_v46 = vor.u32 %v8741_v17, %v6536_v18  ;;  %v8877_v23 = vld [vmem:[#allocation14 + $0x78] sm:$0xff]  ;;  %v8876_v52 = vld [vmem:[#allocation14 + $0x70] sm:$0xff]  ;;  %v8903_v17 = vld [vmem:[#allocation14 + $0x148] sm:$0xff] }
 0x72a   :  { %v8893_v12 = vld [vmem:[#allocation14 + $0xf8] sm:$0xff]  ;;  %v8911_v18 = vld [vmem:[#allocation14 + $0x188] sm:$0xff] }
 0x72b   :  { %1843 = vmatpush.bf16.msrb.mxu3 %v6575_v32  ;;  %1856 = vmatpush.bf16.msrb.mxu0 %v6579_v33  ;;  %v6718_v32 = vld [vmem:[#allocation11 + $0x1b0] sm:$0xf] }
 0x72c   :  { %1869 = vmatpush.bf16.msrb.mxu1 %v6583_v37  ;;  %1882 = vmatpush.bf16.msrb.mxu2 %v6587_v38  ;;  %v8796_v33 = vld [vmem:[#allocation11 + $0x1ec] sm:$0xf0]  ;;  %v6720_v37 = vld [vmem:[#allocation11 + $0x1f0] sm:$0xf0]  ;;  %v6726_v38 = vld [vmem:[#allocation11 + $0x1b8] sm:$0xf] }
 0x72d   :  { %v6719_v42 = vor.u32 %v8796_v33, %v6718_v32  ;;  %v6723_v43 = vor.u32 %v8788_v36, %v6720_v37  ;;  %v6727_v47 = vor.u32 %v8797_v39, %v6726_v38  ;;  %v8891_v32 = vld [vmem:[#allocation14 + $0xe8] sm:$0xff]  ;;  %v8874_v33 = vld [vmem:[#allocation14 + $0x60] sm:$0xff]  ;;  %v8873_v36 = vld [vmem:[#allocation14 + $0x58] sm:$0xff] }
 0x72e   :  { %v8881_v37 = vld [vmem:[#allocation14 + $0x98] sm:$0xff] }
 0x72f   :  { %1844 = vmatpush.bf16.msrb.mxu3 %v6511_v50  ;;  %1857 = vmatpush.bf16.msrb.mxu0 %v6515_v51  ;;  %v8772_v50 = vld [vmem:[#allocation11 + $0x134] sm:$0xf]  ;;  %v8865_v38 = vld [vmem:[#allocation14 + $0x18] sm:$0xff] }
 0x730   :  { %1870 = vmatpush.bf16.msrb.mxu1 %v6519_v55  ;;  %1883 = vmatpush.bf16.msrb.mxu2 %v6523_v56  ;;  %v6656_v51 = vld [vmem:[#allocation11 + $0x170] sm:$0xf0]  ;;  %v6664_v55 = vld [vmem:[#allocation11 + $0x178] sm:$0xf0]  ;;  %v6655_v56 = vor.u32 %v8780_v45, %v6654_v44  ;;  %v8871_v44 = vld [vmem:[#allocation14 + $0x48] sm:$0xff] }
 0x731   :  { %v8889_v39 = vld [vmem:[#allocation14 + $0xd8] sm:$0xff]  ;;  %v8879_v45 = vld [vmem:[#allocation14 + $0x88] sm:$0xff] }
 0x732   :  { %1845 = vmatmul.bf16.vlgmr.msrb.gmra.mxu3 %v9925_v22  ;;  %1858 = vmatmul.bf16.vlgmr.msrb.gmra.mxu0 %v9925_v22 }
 0x733   :  { %1889 = vmatpush.bf16.msra.mxu3 %v6975_v57  ;;  %1902 = vmatpush.bf16.msra.mxu0 %v6979_v58  ;;  %v6659_v57 = vor.u32 %v8772_v50, %v6656_v51  ;;  %v6590_v58 = vld [vmem:[#allocation11 + $0xb0] sm:$0xf]  ;;  %v8870_v50 = vld [vmem:[#allocation14 + $0x40] sm:$0xff] }
 0x734   :  { %1915 = vmatpush.bf16.msra.mxu1 %v6983_v61  ;;  %1928 = vmatpush.bf16.msra.mxu2 %v6987_v62  ;;  %v6667_v61 = vor.u32 %v8773_v54, %v6664_v55  ;;  %v8756_v62 = vld [vmem:[#allocation11 + $0xb4] sm:$0xf]  ;;  %v6591_v3 = vor.u32 %v8764_v59, %v6590_v58  ;;  %v8878_v51 = vld [vmem:[#allocation14 + $0x80] sm:$0xff] }
 0x735   :  { %1871 = vmatmul.bf16.vlgmr.msrb.gmra.mxu1 %v9925_v22  ;;  %1884 = vmatmul.bf16.vlgmr.msrb.gmra.mxu2 %v9925_v22  ;;  %v8862_v54 = vld [vmem:[#allocation14] sm:$0xff]  ;;  %v8908_v58 = vld [vmem:[#allocation14 + $0x170] sm:$0xff] }
 0x736   :  { %v8886_v55 = vld [vmem:[#allocation14 + $0xc0] sm:$0xff]  ;;  %v8916_v59 = vld [vmem:[#allocation14 + $0x1b0] sm:$0xff] }
 0x737   :  { %1890 = vmatpush.bf16.msra.mxu3 %v6911_v4  ;;  %1903 = vmatpush.bf16.msra.mxu0 %v6915_v5  ;;  %v6595_v4 = vor.u32 %v8756_v62, %v6592_v15  ;;  %v6526_v5 = vld [vmem:[#allocation11 + $0x30] sm:$0xf]  ;;  %v8907_v62 = vld [vmem:[#allocation14 + $0x168] sm:$0xff] }
 0x738   :  { %1916 = vmatpush.bf16.msra.mxu1 %v6919_v8  ;;  %1929 = vmatpush.bf16.msra.mxu2 %v6923_v10  ;;  %v6603_v8 = vor.u32 %v8757_v1, %v6600_v2  ;;  %v8740_v10 = vld [vmem:[#allocation11 + $0x34] sm:$0xf]  ;;  %v6527_v13 = vor.u32 %v8748_v6, %v6526_v5  ;;  %v8915_v15 = vld [vmem:[#allocation14 + $0x1a8] sm:$0xff]  ;;  %v8906_v1 = vld [vmem:[#allocation14 + $0x160] sm:$0xff] }
 0x739   :  { %v8914_v2 = vld [vmem:[#allocation14 + $0x1a0] sm:$0xff]  ;;  %v8905_v5 = vld [vmem:[#allocation14 + $0x158] sm:$0xff] }
 0x73a   :  { %v8913_v6 = vld [vmem:[#allocation14 + $0x198] sm:$0xff] }
 0x73b   :  { %1891 = vmatpush.bf16.msra.mxu3 %v6847_v20  ;;  %1904 = vmatpush.bf16.msra.mxu0 %v6851_v21  ;;  %v6531_v20 = vor.u32 %v8740_v10, %v6528_v11  ;;  %v6535_v21 = vor.u32 %v8749_v16, %v6534_v14  ;;  %v8904_v10 = vld [vmem:[#allocation14 + $0x150] sm:$0xff] }
 0x73c   :  { %1917 = vmatpush.bf16.msra.mxu1 %v6855_v24  ;;  %1930 = vmatpush.bf16.msra.mxu2 %v6859_v25  ;;  %v8885_v24 = vld [vmem:[#allocation14 + $0xb8] sm:$0xff]  ;;  %v8912_v11 = vld [vmem:[#allocation14 + $0x190] sm:$0xff] }
 0x73d   :  { %v8869_v25 = vld [vmem:[#allocation14 + $0x38] sm:$0xff]  ;;  %v8896_v14 = vld [vmem:[#allocation14 + $0x110] sm:$0xff] }
 0x73e   :  { %v8920_v16 = vld [vmem:[#allocation14 + $0x1d0] sm:$0xff] }
 0x73f   :  { %1892 = vmatpush.bf16.msra.mxu3 %v6783_v30  ;;  %1905 = vmatpush.bf16.msra.mxu0 %v6787_v31  ;;  %v8883_v30 = vld [vmem:[#allocation14 + $0xa8] sm:$0xff] }
 0x740   :  { %1918 = vmatpush.bf16.msra.mxu1 %v6791_v34  ;;  %1931 = vmatpush.bf16.msra.mxu2 %v6795_v35  ;;  %v8867_v31 = vld [vmem:[#allocation14 + $0x28] sm:$0xff]  ;;  %v8882_v34 = vld [vmem:[#allocation14 + $0xa0] sm:$0xff] }
 0x741   :  { %v8866_v35 = vld [vmem:[#allocation14 + $0x20] sm:$0xff] }
 0x743   :  { %1893 = vmatpush.bf16.msra.mxu3 %v6719_v42  ;;  %1906 = vmatpush.bf16.msra.mxu0 %v6723_v43  ;;  %v8864_v42 = vld [vmem:[#allocation14 + $0x10] sm:$0xff] }
 0x744   :  { %1919 = vmatpush.bf16.msra.mxu1 %v6727_v47  ;;  %1932 = vmatpush.bf16.msra.mxu2 %v6731_v49  ;;  %v8888_v43 = vld [vmem:[#allocation14 + $0xd0] sm:$0xff]  ;;  %v8863_v47 = vld [vmem:[#allocation14 + $0x8] sm:$0xff] }
 0x745   :  { %v8887_v49 = vld [vmem:[#allocation14 + $0xc8] sm:$0xff] }
 0x747   :  { %1894 = vmatpush.bf16.msra.mxu3 %v6655_v56  ;;  %1907 = vmatpush.bf16.msra.mxu0 %v6659_v57  ;;  %v8901_v56 = vld [vmem:[#allocation14 + $0x138] sm:$0xff] }
 0x748   :  { %1920 = vmatpush.bf16.msra.mxu1 %v6663_v60  ;;  %1933 = vmatpush.bf16.msra.mxu2 %v6667_v61  ;;  %v8925_v57 = vld [vmem:[#allocation14 + $0x1f8] sm:$0xff]  ;;  %v8900_v60 = vld [vmem:[#allocation14 + $0x130] sm:$0xff] }
 0x749   :  { %v8924_v61 = vld [vmem:[#allocation14 + $0x1f0] sm:$0xff] }
 0x74b   :  { %1895 = vmatpush.bf16.msra.mxu3 %v6591_v3  ;;  %1908 = vmatpush.bf16.msra.mxu0 %v6595_v4  ;;  %v8898_v3 = vld [vmem:[#allocation14 + $0x120] sm:$0xff] }
 0x74c   :  { %1921 = vmatpush.bf16.msra.mxu1 %v6599_v7  ;;  %1934 = vmatpush.bf16.msra.mxu2 %v6603_v8  ;;  %v8922_v4 = vld [vmem:[#allocation14 + $0x1e0] sm:$0xff]  ;;  %v8897_v7 = vld [vmem:[#allocation14 + $0x118] sm:$0xff] }
 0x74d   :  { %v8921_v8 = vld [vmem:[#allocation14 + $0x1d8] sm:$0xff] }
 0x74f   :  { %1896 = vmatpush.bf16.msra.mxu3 %v6527_v13  ;;  %1909 = vmatpush.bf16.msra.mxu0 %v6531_v20  ;;  %v8895_v13 = vld [vmem:[#allocation14 + $0x108] sm:$0xff] }
 0x750   :  { %1922 = vmatpush.bf16.msra.mxu1 %v6535_v21  ;;  %1935 = vmatpush.bf16.msra.mxu2 %v6539_v46  ;;  %v8919_v20 = vld [vmem:[#allocation14 + $0x1c8] sm:$0xff]  ;;  %v8902_v21 = vld [vmem:[#allocation14 + $0x140] sm:$0xff] }
 0x751   :  { %v8910_v46 = vld [vmem:[#allocation14 + $0x180] sm:$0xff] }
 0x752   :  { %1897 = vmatmul.bf16.vlgmr.msra.gmra.mxu3 %v9925_v22  ;;  %1910 = vmatmul.bf16.vlgmr.msra.gmra.mxu0 %v9925_v22 }
 0x753   :  { %3014 = vmatpush.bf16.msrb.mxu0 %v8877_v23  ;;  %1923 = vmatmul.bf16.vlgmr.msra.gmra.mxu1 %v9925_v22  ;;  %v8894_v23 = vld [vmem:[#allocation14 + $0x100] sm:$0xff] }
 0x754   :  { %3027 = vmatpush.bf16.msrb.mxu1 %v8885_v24  ;;  %1936 = vmatmul.bf16.vlgmr.msra.gmra.mxu2 %v9925_v22  ;;  %v8890_v22 = vld [vmem:[#allocation14 + $0xe0] sm:$0xff] }
 0x755   :  { %3001 = vmatpush.bf16.msrb.mxu3 %v8869_v25  ;;  %3040 = vmatpush.bf16.msrb.mxu2 %v8893_v12  ;;  %v8918_v24 = vld [vmem:[#allocation14 + $0x1c0] sm:$0xff] }
 0x756   :  { %v9943_v25 = vld [vmem:[#allocation13] sm:$0xff] }
 0x757   :  { %3015 = vmatpush.bf16.msrb.mxu0 %v8876_v52  ;;  %v1062_v12 = vperm.slane %v9943_v25, 1  ;;  %v1063_v52 = vperm.slane %v9943_v25, 2 }
 0x758   :  { %3028 = vmatpush.bf16.msrb.mxu1 %v8884_v26 }
 0x759   :  { %3002 = vmatpush.bf16.msrb.mxu3 %v8868_v27  ;;  %3041 = vmatpush.bf16.msrb.mxu2 %v8892_v28 }
 0x75b   :  { %3016 = vmatpush.bf16.msrb.mxu0 %v8875_v29 }
 0x75c   :  { %3029 = vmatpush.bf16.msrb.mxu1 %v8883_v30 }
 0x75d   :  { %3003 = vmatpush.bf16.msrb.mxu3 %v8867_v31  ;;  %3042 = vmatpush.bf16.msrb.mxu2 %v8891_v32  ;;  %v1061_v31 = vperm.slane %v9943_v25, 0 }
 0x75f   :  { %3017 = vmatpush.bf16.msrb.mxu0 %v8874_v33  ;;  %v1064_v33 = vperm.slane %v9943_v25, 3 }
 0x760   :  { %3030 = vmatpush.bf16.msrb.mxu1 %v8882_v34  ;;  %v8941_v34 = vld [vmem:[#allocation14 + $0x278] sm:$0xff] }
 0x761   :  { %3004 = vmatpush.bf16.msrb.mxu3 %v8866_v35  ;;  %3043 = vmatpush.bf16.msrb.mxu2 %v8890_v22  ;;  %v8949_v22 = vld [vmem:[#allocation14 + $0x2b8] sm:$0xff] }
 0x763   :  { %3018 = vmatpush.bf16.msrb.mxu0 %v8873_v36 }
 0x764   :  { %3031 = vmatpush.bf16.msrb.mxu1 %v8881_v37 }
 0x765   :  { %3005 = vmatpush.bf16.msrb.mxu3 %v8865_v38  ;;  %3044 = vmatpush.bf16.msrb.mxu2 %v8889_v39 }
 0x767   :  { %3019 = vmatpush.bf16.msrb.mxu0 %v8872_v40 }
 0x768   :  { %3032 = vmatpush.bf16.msrb.mxu1 %v8880_v41 }
 0x769   :  { %3006 = vmatpush.bf16.msrb.mxu3 %v8864_v42  ;;  %3045 = vmatpush.bf16.msrb.mxu2 %v8888_v43  ;;  %v8940_v42 = vld [vmem:[#allocation14 + $0x270] sm:$0xff] }
 0x76b   :  { %3020 = vmatpush.bf16.msrb.mxu0 %v8871_v44 }
 0x76c   :  { %3033 = vmatpush.bf16.msrb.mxu1 %v8879_v45  ;;  %v8948_v45 = vld [vmem:[#allocation14 + $0x2b0] sm:$0xff] }
 0x76d   :  { %3007 = vmatpush.bf16.msrb.mxu3 %v8863_v47  ;;  %3046 = vmatpush.bf16.msrb.mxu2 %v8887_v49  ;;  %v8933_v49 = vld [vmem:[#allocation14 + $0x238] sm:$0xff] }
 0x76f   :  { %3021 = vmatpush.bf16.msrb.mxu0 %v8870_v50 }
 0x770   :  { %3034 = vmatpush.bf16.msrb.mxu1 %v8878_v51  ;;  %v8957_v51 = vld [vmem:[#allocation14 + $0x2f8] sm:$0xff] }
 0x771   :  { %3008 = vmatpush.bf16.msrb.mxu3 %v8862_v54  ;;  %3047 = vmatpush.bf16.msrb.mxu2 %v8886_v55  ;;  %v8947_v54 = vld [vmem:[#allocation14 + $0x2a8] sm:$0xff]  ;;  %v1066_v55 = vperm.slane %v9943_v25, 5 }
 0x773   :  { %3066 = vmatpush.bf16.msra.mxu0 %v8909_v48 }
 0x774   :  { %3079 = vmatpush.bf16.msra.mxu1 %v8917_v53  ;;  %v8939_v53 = vld [vmem:[#allocation14 + $0x268] sm:$0xff] }
 0x775   :  { %3053 = vmatpush.bf16.msra.mxu3 %v8901_v56  ;;  %3092 = vmatpush.bf16.msra.mxu2 %v8925_v57  ;;  %v1067_v57 = vperm.slane %v9943_v25, 6 }
 0x777   :  { %3067 = vmatpush.bf16.msra.mxu0 %v8908_v58  ;;  %v8932_v58 = vld [vmem:[#allocation14 + $0x230] sm:$0xff] }
 0x778   :  { %3080 = vmatpush.bf16.msra.mxu1 %v8916_v59 }
 0x779   :  { %3054 = vmatpush.bf16.msra.mxu3 %v8900_v60  ;;  %3093 = vmatpush.bf16.msra.mxu2 %v8924_v61  ;;  %v8956_v60 = vld [vmem:[#allocation14 + $0x2f0] sm:$0xff] }
 0x77b   :  { %3068 = vmatpush.bf16.msra.mxu0 %v8907_v62  ;;  %v8938_v62 = vld [vmem:[#allocation14 + $0x260] sm:$0xff] }
 0x77c   :  { %3081 = vmatpush.bf16.msra.mxu1 %v8915_v15 }
 0x77d   :  { %3055 = vmatpush.bf16.msra.mxu3 %v8899_v63  ;;  %3094 = vmatpush.bf16.msra.mxu2 %v8923_v0  ;;  %v8946_v0 = vld [vmem:[#allocation14 + $0x2a0] sm:$0xff] }
 0x77f   :  { %3069 = vmatpush.bf16.msra.mxu0 %v8906_v1 }
 0x780   :  { %3082 = vmatpush.bf16.msra.mxu1 %v8914_v2  ;;  %v8931_v2 = vld [vmem:[#allocation14 + $0x228] sm:$0xff] }
 0x781   :  { %3056 = vmatpush.bf16.msra.mxu3 %v8898_v3  ;;  %3095 = vmatpush.bf16.msra.mxu2 %v8922_v4  ;;  %v8955_v4 = vld [vmem:[#allocation14 + $0x2e8] sm:$0xff] }
 0x783   :  { %3070 = vmatpush.bf16.msra.mxu0 %v8905_v5  ;;  %v1065_v5 = vperm.slane %v9943_v25, 4 }
 0x784   :  { %3083 = vmatpush.bf16.msra.mxu1 %v8913_v6 }
 0x785   :  { %3057 = vmatpush.bf16.msra.mxu3 %v8897_v7  ;;  %3096 = vmatpush.bf16.msra.mxu2 %v8921_v8  ;;  %v1068_v7 = vperm.slane %v9943_v25, 7  ;;  %v8937_v8 = vld [vmem:[#allocation14 + $0x258] sm:$0xff] }
 0x787   :  { %3071 = vmatpush.bf16.msra.mxu0 %v8904_v10 }
 0x788   :  { %3084 = vmatpush.bf16.msra.mxu1 %v8912_v11  ;;  %v8945_v11 = vld [vmem:[#allocation14 + $0x298] sm:$0xff] }
 0x789   :  { %3058 = vmatpush.bf16.msra.mxu3 %v8896_v14  ;;  %3097 = vmatpush.bf16.msra.mxu2 %v8920_v16 }
 0x78b   :  { %3072 = vmatpush.bf16.msra.mxu0 %v8903_v17  ;;  %v8930_v17 = vld [vmem:[#allocation14 + $0x220] sm:$0xff] }
 0x78c   :  { %3085 = vmatpush.bf16.msra.mxu1 %v8911_v18 }
 0x78d   :  { %3059 = vmatpush.bf16.msra.mxu3 %v8895_v13  ;;  %3098 = vmatpush.bf16.msra.mxu2 %v8919_v20  ;;  %v8954_v20 = vld [vmem:[#allocation14 + $0x2e0] sm:$0xff] }
 0x78e   :  { %v1755_v26 = vpop.f32.mrf.mxu0 }
 0x78f   :  { %3073 = vmatpush.bf16.msra.mxu0 %v8902_v21  ;;  %v1756_v27 = vadd.f32 %v1755_v26, %v1062_v12  ;;  %v1768_v28 = vpop.f32.mrf.mxu1  ;;  %v8944_v12 = vld [vmem:[#allocation14 + $0x290] sm:$0xff]  ;;  %v8929_v26 = vld [vmem:[#allocation14 + $0x218] sm:$0xff] }
 0x790   :  { %3086 = vmatpush.bf16.msra.mxu1 %v8910_v46  ;;  %v1769_v29 = vadd.f32 %v1768_v28, %v1063_v52  ;;  %v8953_v28 = vld [vmem:[#allocation14 + $0x2d8] sm:$0xff] }
 0x791   :  { %3060 = vmatpush.bf16.msra.mxu3 %v8894_v23  ;;  %3099 = vmatpush.bf16.msra.mxu2 %v8918_v24  ;;  %v1942_v30 = vmax.f32 %v1756_v27, 0.0  ;;  %v8936_v23 = vld [vmem:[#allocation14 + $0x250] sm:$0xff] }
 0x792   :  { %v1943_v32 = vmax.f32 %v1769_v29, 0.0 }
 0x793   :  { %v1958_v35 = vpack.c.bf16 %v1942_v30, %v1942_v30  ;;  %v8935_v30 = vld [vmem:[#allocation14 + $0x248] sm:$0xff] }
 0x794   :  { %v1959_v36 = vpack.c.bf16 %v1943_v32, %v1943_v32  ;;  %v1742_v37 = vpop.f32.mrf.mxu3  ;;  %v8943_v32 = vld [vmem:[#allocation14 + $0x288] sm:$0xff] }
 0x795   :  { %v1743_v38 = vadd.f32 %v1742_v37, %v1061_v31  ;;  %v1781_v39 = vpop.f32.mrf.mxu2  ;;  %3022 = vmatmul.bf16.vlgmr.msrb.gmra.mxu0 %v1958_v35  ;;  %v9953_v31 = vld [vmem:[#allocation13 + $0x8] sm:$0xff] }
 0x796   :  { %v1782_v40 = vadd.f32 %v1781_v39, %v1064_v33  ;;  %3035 = vmatmul.bf16.vlgmr.msrb.gmra.mxu1 %v1959_v36  ;;  %3118 = vmatpush.bf16.msrb.mxu0 %v8941_v34  ;;  %v1757_v41 = vpop.f32.mrf.mxu0  ;;  %v8928_v34 = vld [vmem:[#allocation14 + $0x210] sm:$0xff]  ;;  %v1071_v37 = vperm.slane %v9953_v31, 2  ;;  %v8942_v39 = vld [vmem:[#allocation14 + $0x280] sm:$0xff] }
 0x797   :  { %v1941_v43 = vmax.f32 %v1743_v38, 0.0  ;;  %3131 = vmatpush.bf16.msrb.mxu1 %v8949_v22  ;;  %v1770_v44 = vpop.f32.mrf.mxu1  ;;  %v1070_v22 = vperm.slane %v9953_v31, 1  ;;  %v8952_v36 = vld [vmem:[#allocation14 + $0x2d0] sm:$0xff]  ;;  %v8934_v38 = vld [vmem:[#allocation14 + $0x240] sm:$0xff] }
 0x798   :  { %v1944_v47 = vmax.f32 %v1782_v40, 0.0  ;;  %v8973_v40 = vld [vmem:[#allocation14 + $0x378] sm:$0xff] }
 0x799   :  { %v1957_v50 = vpack.c.bf16 %v1941_v43, %v1941_v43  ;;  %v8927_v43 = vld [vmem:[#allocation14 + $0x208] sm:$0xff] }
 0x79a   :  { %v1960_v48 = vpack.c.bf16 %v1944_v47, %v1944_v47  ;;  %3119 = vmatpush.bf16.msrb.mxu0 %v8940_v42  ;;  %v8981_v42 = vld [vmem:[#allocation14 + $0x3b8] sm:$0xff]  ;;  %v8951_v47 = vld [vmem:[#allocation14 + $0x2c8] sm:$0xff] }
 0x79b   :  { %3132 = vmatpush.bf16.msrb.mxu1 %v8948_v45  ;;  %3009 = vmatmul.bf16.vlgmr.msrb.gmra.mxu3 %v1957_v50 }
 0x79c   :  { %3048 = vmatmul.bf16.vlgmr.msrb.gmra.mxu2 %v1960_v48  ;;  %3105 = vmatpush.bf16.msrb.mxu3 %v8933_v49  ;;  %v1744_v56 = vpop.f32.mrf.mxu3 }
 0x79d   :  { %3144 = vmatpush.bf16.msrb.mxu2 %v8957_v51  ;;  %v1783_v59 = vpop.f32.mrf.mxu2  ;;  %v1069_v51 = vperm.slane %v9953_v31, 0  ;;  %v8980_v56 = vld [vmem:[#allocation14 + $0x3b0] sm:$0xff] }
 0x79e   :  { %3120 = vmatpush.bf16.msrb.mxu0 %v8939_v53  ;;  %v1807_v61 = vpop.f32.mrf.mxu0  ;;  %v1072_v53 = vperm.slane %v9953_v31, 3 }
 0x79f   :  { %3133 = vmatpush.bf16.msrb.mxu1 %v8947_v54  ;;  %v1808_v15 = vadd.f32 %v1807_v61, %v1066_v55  ;;  %v1820_v63 = vpop.f32.mrf.mxu1  ;;  %v8972_v54 = vld [vmem:[#allocation14 + $0x370] sm:$0xff]  ;;  %v8965_v61 = vld [vmem:[#allocation14 + $0x338] sm:$0xff] }
 0x7a0   :  { %v1821_v1 = vadd.f32 %v1820_v63, %v1067_v57  ;;  %3106 = vmatpush.bf16.msrb.mxu3 %v8932_v58  ;;  %v8926_v57 = vld [vmem:[#allocation14 + $0x200] sm:$0xff]  ;;  %v8989_v63 = vld [vmem:[#allocation14 + $0x3f8] sm:$0xff] }
 0x7a1   :  { %v1946_v3 = vmax.f32 %v1808_v15, 0.0  ;;  %3145 = vmatpush.bf16.msrb.mxu2 %v8956_v60  ;;  %v8950_v60 = vld [vmem:[#allocation14 + $0x2c0] sm:$0xff] }
 0x7a2   :  { %v1947_v6 = vmax.f32 %v1821_v1, 0.0  ;;  %3121 = vmatpush.bf16.msrb.mxu0 %v8938_v62 }
 0x7a3   :  { %v1962_v10 = vpack.c.bf16 %v1946_v3, %v1946_v3  ;;  %3134 = vmatpush.bf16.msrb.mxu1 %v8946_v0 }
 0x7a4   :  { %v1963_v14 = vpack.c.bf16 %v1947_v6, %v1947_v6  ;;  %3107 = vmatpush.bf16.msrb.mxu3 %v8931_v2  ;;  %v1794_v16 = vpop.f32.mrf.mxu3  ;;  %v8971_v2 = vld [vmem:[#allocation14 + $0x368] sm:$0xff] }
 0x7a5   :  { %3146 = vmatpush.bf16.msrb.mxu2 %v8955_v4  ;;  %v1795_v18 = vadd.f32 %v1794_v16, %v1065_v5  ;;  %v1833_v13 = vpop.f32.mrf.mxu2  ;;  %3074 = vmatmul.bf16.vlgmr.msra.gmra.mxu0 %v1962_v10  ;;  %v8979_v5 = vld [vmem:[#allocation14 + $0x3a8] sm:$0xff]  ;;  %v8988_v10 = vld [vmem:[#allocation14 + $0x3f0] sm:$0xff]  ;;  %v8978_v16 = vld [vmem:[#allocation14 + $0x3a0] sm:$0xff] }
 0x7a6   :  { %v1834_v21 = vadd.f32 %v1833_v13, %v1068_v7  ;;  %3087 = vmatmul.bf16.vlgmr.msra.gmra.mxu1 %v1963_v14  ;;  %3122 = vmatpush.bf16.msrb.mxu0 %v8937_v8  ;;  %v1809_v46 = vpop.f32.mrf.mxu0  ;;  %v8964_v7 = vld [vmem:[#allocation14 + $0x330] sm:$0xff]  ;;  %v8970_v14 = vld [vmem:[#allocation14 + $0x360] sm:$0xff] }
 0x7a7   :  { %v1945_v24 = vmax.f32 %v1795_v18, 0.0  ;;  %3135 = vmatpush.bf16.msrb.mxu1 %v8945_v11  ;;  %v1822_v25 = vpop.f32.mrf.mxu1  ;;  %v8963_v18 = vld [vmem:[#allocation14 + $0x328] sm:$0xff]  ;;  %v8977_v46 = vld [vmem:[#allocation14 + $0x398] sm:$0xff] }
 0x7a8   :  { %v1948_v52 = vmax.f32 %v1834_v21, 0.0  ;;  %3108 = vmatpush.bf16.msrb.mxu3 %v8930_v17  ;;  %v8969_v21 = vld [vmem:[#allocation14 + $0x358] sm:$0xff]  ;;  %v8968_v25 = vld [vmem:[#allocation14 + $0x350] sm:$0xff] }
 0x7a9   :  { %v1961_v27 = vpack.c.bf16 %v1945_v24, %v1945_v24  ;;  %3147 = vmatpush.bf16.msrb.mxu2 %v8954_v20  ;;  %v8987_v20 = vld [vmem:[#allocation14 + $0x3e8] sm:$0xff]  ;;  %v8986_v24 = vld [vmem:[#allocation14 + $0x3e0] sm:$0xff] }
 0x7aa   :  { %v1964_v29 = vpack.c.bf16 %v1948_v52, %v1948_v52  ;;  %3123 = vmatpush.bf16.msrb.mxu0 %v8936_v23  ;;  %v8962_v23 = vld [vmem:[#allocation14 + $0x320] sm:$0xff]  ;;  %v8961_v52 = vld [vmem:[#allocation14 + $0x318] sm:$0xff] }
 0x7ab   :  { %3136 = vmatpush.bf16.msrb.mxu1 %v8944_v12  ;;  %3061 = vmatmul.bf16.vlgmr.msra.gmra.mxu3 %v1961_v27  ;;  %v8976_v12 = vld [vmem:[#allocation14 + $0x390] sm:$0xff]  ;;  %v8967_v27 = vld [vmem:[#allocation14 + $0x348] sm:$0xff] }
 0x7ac   :  { %3100 = vmatmul.bf16.vlgmr.msra.gmra.mxu2 %v1964_v29  ;;  %3109 = vmatpush.bf16.msrb.mxu3 %v8929_v26  ;;  %v1796_v33 = vpop.f32.mrf.mxu3  ;;  %v8985_v26 = vld [vmem:[#allocation14 + $0x3d8] sm:$0xff]  ;;  %v1074_v29 = vperm.slane %v9953_v31, 5 }
 0x7ad   :  { %3148 = vmatpush.bf16.msrb.mxu2 %v8953_v28  ;;  %v1835_v35 = vpop.f32.mrf.mxu2  ;;  %v8975_v28 = vld [vmem:[#allocation14 + $0x388] sm:$0xff]  ;;  %v8984_v33 = vld [vmem:[#allocation14 + $0x3d0] sm:$0xff] }
 0x7ae   :  { %3124 = vmatpush.bf16.msrb.mxu0 %v8935_v30  ;;  %v8960_v30 = vld [vmem:[#allocation14 + $0x310] sm:$0xff] }
 0x7af   :  { %3137 = vmatpush.bf16.msrb.mxu1 %v8943_v32  ;;  %v1859_v41 = vpop.f32.mrf.mxu0  ;;  %v1075_v32 = vperm.slane %v9953_v31, 6 }
 0x7b0   :  { %3110 = vmatpush.bf16.msrb.mxu3 %v8928_v34  ;;  %v1860_v44 = vadd.f32 %v1859_v41, %v1070_v22  ;;  %v8966_v34 = vld [vmem:[#allocation14 + $0x340] sm:$0xff] }
 0x7b1   :  { %3149 = vmatpush.bf16.msrb.mxu2 %v8952_v36  ;;  %v8974_v22 = vld [vmem:[#allocation14 + $0x380] sm:$0xff] }
 0x7b2   :  { %v1872_v45 = vpop.f32.mrf.mxu1  ;;  %3125 = vmatpush.bf16.msrb.mxu0 %v8934_v38  ;;  %v1950_v50 = vmax.f32 %v1860_v44, 0.0  ;;  %v8959_v38 = vld [vmem:[#allocation14 + $0x308] sm:$0xff]  ;;  %v1076_v44 = vperm.slane %v9953_v31, 7 }
 0x7b3   :  { %v1873_v49 = vadd.f32 %v1872_v45, %v1071_v37  ;;  %3138 = vmatpush.bf16.msrb.mxu1 %v8942_v39 }
 0x7b4   :  { %3111 = vmatpush.bf16.msrb.mxu3 %v8927_v43  ;;  %v1966_v55 = vpack.c.bf16 %v1950_v50, %v1950_v50 }
 0x7b5   :  { %v1951_v48 = vmax.f32 %v1873_v49, 0.0  ;;  %3150 = vmatpush.bf16.msrb.mxu2 %v8951_v47  ;;  %v1846_v59 = vpop.f32.mrf.mxu3  ;;  %v8958_v47 = vld [vmem:[#allocation14 + $0x300] sm:$0xff] }
 0x7b6   :  { %3170 = vmatpush.bf16.msra.mxu0 %v8973_v40  ;;  %v1847_v62 = vadd.f32 %v1846_v59, %v1069_v51  ;;  %v8983_v40 = vld [vmem:[#allocation14 + $0x3c8] sm:$0xff]  ;;  %v8982_v51 = vld [vmem:[#allocation14 + $0x3c0] sm:$0xff] }
 0x7b7   :  { %3183 = vmatpush.bf16.msra.mxu1 %v8981_v42  ;;  %v1967_v58 = vpack.c.bf16 %v1951_v48, %v1951_v48  ;;  %3126 = vmatmul.bf16.vlgmr.msrb.gmra.mxu0 %v1966_v55  ;;  %v1861_v1 = vpop.f32.mrf.mxu0  ;;  %v1073_v42 = vperm.slane %v9953_v31, 4 }
 0x7b8   :  { %v1885_v15 = vpop.f32.mrf.mxu2  ;;  %v1949_v3 = vmax.f32 %v1847_v62, 0.0  ;;  %3112 = vmatpush.bf16.msrb.mxu3 %v8926_v57 }
 0x7b9   :  { %v1886_v0 = vadd.f32 %v1885_v15, %v1072_v53  ;;  %3139 = vmatmul.bf16.vlgmr.msrb.gmra.mxu1 %v1967_v58  ;;  %3151 = vmatpush.bf16.msrb.mxu2 %v8950_v60 }
 0x7ba   :  { %3171 = vmatpush.bf16.msra.mxu0 %v8972_v54  ;;  %v1874_v4 = vpop.f32.mrf.mxu1  ;;  %v1965_v8 = vpack.c.bf16 %v1949_v3, %v1949_v3 }
 0x7bb   :  { %3184 = vmatpush.bf16.msra.mxu1 %v8980_v56  ;;  %v1952_v6 = vmax.f32 %v1886_v0, 0.0 }
 0x7bc   :  { %3157 = vmatpush.bf16.msra.mxu3 %v8965_v61 }
 0x7bd   :  { %3196 = vmatpush.bf16.msra.mxu2 %v8989_v63  ;;  %v1968_v11 = vpack.c.bf16 %v1952_v6, %v1952_v6  ;;  %3113 = vmatmul.bf16.vlgmr.msrb.gmra.mxu3 %v1965_v8  ;;  %v1848_v17 = vpop.f32.mrf.mxu3 }
 0x7be   :  { %3172 = vmatpush.bf16.msra.mxu0 %v8971_v2 }
 0x7bf   :  { %3185 = vmatpush.bf16.msra.mxu1 %v8979_v5  ;;  %3152 = vmatmul.bf16.vlgmr.msrb.gmra.mxu2 %v1968_v11 }
 0x7c0   :  { %3158 = vmatpush.bf16.msra.mxu3 %v8964_v7  ;;  %v1887_v13 = vpop.f32.mrf.mxu2 }
 0x7c1   :  { %3197 = vmatpush.bf16.msra.mxu2 %v8988_v10 }
 0x7c2   :  { %3173 = vmatpush.bf16.msra.mxu0 %v8970_v14  ;;  %v9315_v14 = vld [vmem:[#allocation16] ss:$0 sm:$0xff] }
 0x7c3   :  { %3186 = vmatpush.bf16.msra.mxu1 %v8978_v16 }
 0x7c4   :  { %3159 = vmatpush.bf16.msra.mxu3 %v8963_v18 }
 0x7c5   :  { %3198 = vmatpush.bf16.msra.mxu2 %v8987_v20 }
 0x7c6   :  { %3174 = vmatpush.bf16.msra.mxu0 %v8969_v21 }
 0x7c7   :  { %3187 = vmatpush.bf16.msra.mxu1 %v8977_v46 }
 0x7c8   :  { %3160 = vmatpush.bf16.msra.mxu3 %v8962_v23 }
 0x7c9   :  { %3199 = vmatpush.bf16.msra.mxu2 %v8986_v24 }
 0x7ca   :  { %3175 = vmatpush.bf16.msra.mxu0 %v8968_v25 }
 0x7cb   :  { %3188 = vmatpush.bf16.msra.mxu1 %v8976_v12 }
 0x7cc   :  { %3161 = vmatpush.bf16.msra.mxu3 %v8961_v52 }
 0x7cd   :  { %3200 = vmatpush.bf16.msra.mxu2 %v8985_v26 }
 0x7ce   :  { %3176 = vmatpush.bf16.msra.mxu0 %v8967_v27 }
 0x7cf   :  { %v1911_v35 = vpop.f32.mrf.mxu0  ;;  %3189 = vmatpush.bf16.msra.mxu1 %v8975_v28 }
 0x7d0   :  { %v1912_v36 = vadd.f32 %v1911_v35, %v1074_v29  ;;  %v1924_v37 = vpop.f32.mrf.mxu1  ;;  %3162 = vmatpush.bf16.msra.mxu3 %v8960_v30 }
 0x7d1   :  { %v1925_v39 = vadd.f32 %v1924_v37, %v1075_v32  ;;  %3201 = vmatpush.bf16.msra.mxu2 %v8984_v33 }
 0x7d2   :  { %v1954_v41 = vmax.f32 %v1912_v36, 0.0  ;;  %3177 = vmatpush.bf16.msra.mxu0 %v8966_v34 }
 0x7d3   :  { %v1955_v43 = vmax.f32 %v1925_v39, 0.0  ;;  %3190 = vmatpush.bf16.msra.mxu1 %v8974_v22 }
 0x7d4   :  { %v1970_v45 = vpack.c.bf16 %v1954_v41, %v1954_v41  ;;  %3163 = vmatpush.bf16.msra.mxu3 %v8959_v38 }
 0x7d5   :  { %v1971_v49 = vpack.c.bf16 %v1955_v43, %v1955_v43  ;;  %v1898_v50 = vpop.f32.mrf.mxu3  ;;  %3202 = vmatpush.bf16.msra.mxu2 %v8983_v40 }
 0x7d6   :  { %v1899_v48 = vadd.f32 %v1898_v50, %v1073_v42  ;;  %3178 = vmatmul.bf16.vlgmr.msra.gmra.mxu0 %v1970_v45 }
 0x7d7   :  { %v1937_v53 = vpop.f32.mrf.mxu2  ;;  %3191 = vmatmul.bf16.vlgmr.msra.gmra.mxu1 %v1971_v49  ;;  %v1913_v55 = vpop.f32.mrf.mxu0 }
 0x7d8   :  { %v1938_v54 = vadd.f32 %v1937_v53, %v1076_v44  ;;  %v1953_v56 = vmax.f32 %v1899_v48, 0.0  ;;  %v1926_v57 = vpop.f32.mrf.mxu1  ;;  %3164 = vmatpush.bf16.msra.mxu3 %v8958_v47  ;;  %v9012_v48 = vld [vmem:[#allocation7 + $0x170] sm:$0xf0]  ;;  %v9011_v53 = vld [vmem:[#allocation7 + $0x16c] sm:$0xf] }
 0x7d9   :  { %3203 = vmatpush.bf16.msra.mxu2 %v8982_v51  ;;  %v7586_v51 = vld [vmem:[#allocation7 + $0x168] sm:$0xf]  ;;  %v7588_v55 = vld [vmem:[#allocation7 + $0x174] sm:$0xf0]  ;;  %v9013_v57 = vld [vmem:[#allocation7 + $0x178] sm:$0xf0] }
 0x7da   :  { %v1956_v58 = vmax.f32 %v1938_v54, 0.0  ;;  %v1969_v59 = vpack.c.bf16 %v1953_v56, %v1953_v56  ;;  %v7587_v54 = vor.u32 %v9012_v48, %v7586_v51  ;;  %v7594_v56 = vld [vmem:[#allocation7 + $0x170] sm:$0xf]  ;;  %v7516_v51 = vld [vmem:[#allocation7 + $0xe4] sm:$0xf0] }
 0x7db   :  { %v7522_v48 = vld [vmem:[#allocation7 + $0xe0] sm:$0xf] }
 0x7dc   :  { %v1972_v31 = vpack.c.bf16 %v1956_v58, %v1956_v58  ;;  %3165 = vmatmul.bf16.vlgmr.msra.gmra.mxu3 %v1969_v59  ;;  %v7591_v58 = vor.u32 %v9011_v53, %v7588_v55  ;;  %v7595_v59 = vor.u32 %v9013_v57, %v7594_v56  ;;  %v8995_v53 = vld [vmem:[#allocation7 + $0xe8] sm:$0xf0]  ;;  %v7502_v56 = vld [vmem:[#allocation7 + $0xc0] sm:$0xf] }
 0x7dd   :  { %v1900_v60 = vpop.f32.mrf.mxu3  ;;  %3412 = vmatpush.bf16.msrb.mxu3 %v7587_v54  ;;  %v7523_v55 = vor.u32 %v8995_v53, %v7522_v48  ;;  %v8991_v57 = vld [vmem:[#allocation7 + $0xc8] sm:$0xf0] }
 0x7de   :  { %3204 = vmatmul.bf16.vlgmr.msra.gmra.mxu2 %v1972_v31  ;;  %3425 = vmatpush.bf16.msrb.mxu0 %v7591_v58  ;;  %v8990_v58 = vld [vmem:[#allocation7 + $0xc4] sm:$0xf]  ;;  %v9015_v48 = vld [vmem:[#allocation10 + $0x48] sm:$0xff] }
 0x7df   :  { %v1939_v61 = vpop.f32.mrf.mxu2  ;;  %3438 = vmatpush.bf16.msrb.mxu1 %v7595_v59  ;;  %v7503_v59 = vor.u32 %v8991_v57, %v7502_v56  ;;  %v9014_v53 = vld [vmem:[#allocation10 + $0x40] sm:$0xff] }
 0x812   :  { %v3023_v62 = vpop.f32.mrf.mxu0 }
 0x813   :  { %v3036_v15 = vpop.f32.mrf.mxu1 }
 0x81a   :  { %v3025_v63 = vpop.f32.mrf.mxu0 }
 0x81b   :  { %v3038_v0 = vpop.f32.mrf.mxu1  ;;  %v9009_v63 = vld [vmem:[#allocation7 + $0x158] sm:$0xf0] }
 0x81c   :  { %v9008_v0 = vld [vmem:[#allocation7 + $0x154] sm:$0xf] }
 0x81e   :  { %v3010_v1 = vpop.f32.mrf.mxu3 }
 0x81f   :  { %v3049_v2 = vpop.f32.mrf.mxu2  ;;  %v3011_v16 = vadd.f32 %v9315_v14, %v3010_v1  ;;  %v7564_v14 = vld [vmem:[#allocation7 + $0x144] sm:$0xf0] }
 0x821   :  { %v3024_v21 = vadd.f32 %v3023_v62, %v3011_v16  ;;  %v7570_v16 = vld [vmem:[#allocation7 + $0x140] sm:$0xf] }
 0x822   :  { %v3075_v3 = vpop.f32.mrf.mxu0 }
 0x823   :  { %v3088_v4 = vpop.f32.mrf.mxu1  ;;  %v3037_v46 = vadd.f32 %v3036_v15, %v3024_v21  ;;  %v7574_v15 = vld [vmem:[#allocation7 + $0x150] sm:$0xf]  ;;  %v9003_v21 = vld [vmem:[#allocation7 + $0x128] sm:$0xf0] }
 0x824   :  { %v7575_v1 = vor.u32 %v9009_v63, %v7574_v15 }
 0x825   :  { %v3050_v25 = vadd.f32 %v3049_v2, %v3037_v46  ;;  %v7576_v2 = vld [vmem:[#allocation7 + $0x15c] sm:$0xf0]  ;;  %v9002_v46 = vld [vmem:[#allocation7 + $0x124] sm:$0xf] }
 0x826   :  { %v3012_v5 = vpop.f32.mrf.mxu3  ;;  %3413 = vmatpush.bf16.msrb.mxu3 %v7575_v1 }
 0x827   :  { %v3051_v6 = vpop.f32.mrf.mxu2  ;;  %v7579_v5 = vor.u32 %v9008_v0, %v7576_v2 }
 0x829   :  { %3426 = vmatpush.bf16.msrb.mxu0 %v7579_v5 }
 0x82a   :  { %v3077_v7 = vpop.f32.mrf.mxu0 }
 0x82b   :  { %v3090_v8 = vpop.f32.mrf.mxu1  ;;  %v7562_v7 = vld [vmem:[#allocation7 + $0x138] sm:$0xf] }
 0x82c   :  { %v9006_v8 = vld [vmem:[#allocation7 + $0x140] sm:$0xf0] }
 0x82e   :  { %v3062_v10 = vpop.f32.mrf.mxu3 }
 0x82f   :  { %v3101_v11 = vpop.f32.mrf.mxu2  ;;  %v3063_v26 = vadd.f32 %v3062_v10, %v3050_v25  ;;  %v9005_v10 = vld [vmem:[#allocation7 + $0x13c] sm:$0xf]  ;;  %v7558_v25 = vld [vmem:[#allocation7 + $0x128] sm:$0xf] }
 0x831   :  { %v3076_v27 = vadd.f32 %v3075_v3, %v3063_v26  ;;  %v7582_v3 = vld [vmem:[#allocation7 + $0x158] sm:$0xf] }
 0x833   :  { %v3089_v30 = vadd.f32 %v3088_v4, %v3076_v27  ;;  %v9010_v4 = vld [vmem:[#allocation7 + $0x160] sm:$0xf0]  ;;  %v7538_v27 = vld [vmem:[#allocation7 + $0x108] sm:$0xf] }
 0x834   :  { %v3127_v17 = vpop.f32.mrf.mxu0  ;;  %v7583_v6 = vor.u32 %v9010_v4, %v7582_v3 }
 0x835   :  { %v3102_v32 = vadd.f32 %v3101_v11, %v3089_v30  ;;  %v7563_v11 = vor.u32 %v9006_v8, %v7562_v7  ;;  %v9316_v8 = vld [vmem:[%s10116_s14] ss:$0 sm:$0xff] }
 0x836   :  { %v3140_v18 = vpop.f32.mrf.mxu1  ;;  %v3064_v13 = vpop.f32.mrf.mxu3  ;;  %3439 = vmatpush.bf16.msrb.mxu1 %v7583_v6 }
 0x837   :  { %v3103_v20 = vpop.f32.mrf.mxu2  ;;  %3414 = vmatpush.bf16.msrb.mxu3 %v7563_v11 }
 0x838   :  { %v7550_v20 = vld [vmem:[#allocation7 + $0x120] sm:$0xf] }
 0x83c   :  { %v3129_v23 = vpop.f32.mrf.mxu0 }
 0x83d   :  { %v7551_v23 = vor.u32 %v9003_v21, %v7550_v20 }
 0x83e   :  { %v3142_v24 = vpop.f32.mrf.mxu1 }
 0x83f   :  { %v7552_v24 = vld [vmem:[#allocation7 + $0x12c] sm:$0xf0]  ;;  %3415 = vmatpush.bf16.msrb.mxu3 %v7551_v23 }
 0x840   :  { %v3114_v12 = vpop.f32.mrf.mxu3 }
 0x841   :  { %v3115_v33 = vadd.f32 %v3114_v12, %v3102_v32  ;;  %v9004_v12 = vld [vmem:[#allocation7 + $0x130] sm:$0xf0]  ;;  %v7540_v32 = vld [vmem:[#allocation7 + $0x114] sm:$0xf0] }
 0x842   :  { %v3153_v52 = vpop.f32.mrf.mxu2  ;;  %v7559_v26 = vor.u32 %v9004_v12, %v7558_v25 }
 0x843   :  { %v3128_v22 = vadd.f32 %v3127_v17, %v3115_v33  ;;  %v9007_v17 = vld [vmem:[#allocation7 + $0x148] sm:$0xf0]  ;;  %v7546_v33 = vld [vmem:[#allocation7 + $0x110] sm:$0xf] }
 0x844   :  { %v7571_v13 = vor.u32 %v9007_v17, %v7570_v16 }
 0x845   :  { %v3141_v36 = vadd.f32 %v3140_v18, %v3128_v22  ;;  %v7567_v18 = vor.u32 %v9005_v10, %v7564_v14  ;;  %v9317_v14 = vld [vmem:[%s10117_s15] ss:$0 sm:$0xff] }
 0x846   :  { %3440 = vmatpush.bf16.msrb.mxu1 %v7571_v13  ;;  %v3276_v13 = vld [vmem:[#allocation8 + $0x3] sm:$0x7] }
 0x847   :  { %v3154_v39 = vadd.f32 %v3153_v52, %v3141_v36  ;;  %3427 = vmatpush.bf16.msrb.mxu0 %v7567_v18  ;;  %v7555_v52 = vor.u32 %v9002_v46, %v7552_v24  ;;  %v7526_v36 = vld [vmem:[#allocation7 + $0xf0] sm:$0xf]  ;;  %v3279_v46 = vperm.slane %v3276_v13, 1  ;;  %v3278_v23 = vperm.slane %v3276_v13, 0 }
 0x848   :  { %v3116_v28 = vpop.f32.mrf.mxu3  ;;  %v3280_v24 = vperm.slane %v3276_v13, 2 }
 0x849   :  { %v9000_v28 = vld [vmem:[#allocation7 + $0x110] sm:$0xf0] }
 0x84a   :  { %v3155_v29 = vpop.f32.mrf.mxu2  ;;  %3441 = vmatpush.bf16.msrb.mxu1 %v7559_v26  ;;  %v7539_v30 = vor.u32 %v9000_v28, %v7538_v27 }
 0x84b   :  { %3428 = vmatpush.bf16.msrb.mxu0 %v7555_v52  ;;  %v8999_v29 = vld [vmem:[#allocation7 + $0x10c] sm:$0xf] }
 0x84c   :  { %3416 = vmatpush.bf16.msrb.mxu3 %v7539_v30 }
 0x853   :  { %v3179_v34 = vpop.f32.mrf.mxu0 }
 0x854   :  { %v3192_v35 = vpop.f32.mrf.mxu1 }
 0x85b   :  { %v3181_v37 = vpop.f32.mrf.mxu0 }
 0x85c   :  { %v3194_v38 = vpop.f32.mrf.mxu1  ;;  %v8997_v37 = vld [vmem:[#allocation7 + $0xf8] sm:$0xf0] }
 0x85d   :  { %v8996_v38 = vld [vmem:[#allocation7 + $0xf4] sm:$0xf] }
 0x85f   :  { %v3166_v40 = vpop.f32.mrf.mxu3 }
 0x860   :  { %v3167_v41 = vadd.f32 %v3166_v40, %v3154_v39  ;;  %v7527_v39 = vor.u32 %v8997_v37, %v7526_v36  ;;  %v7528_v40 = vld [vmem:[#allocation7 + $0xfc] sm:$0xf0] }
 0x861   :  { %v3205_v42 = vpop.f32.mrf.mxu2 }
 0x862   :  { %v3180_v43 = vadd.f32 %v3179_v34, %v3167_v41  ;;  %v9001_v34 = vld [vmem:[#allocation7 + $0x118] sm:$0xf0]  ;;  %v7534_v41 = vld [vmem:[#allocation7 + $0xf8] sm:$0xf]  ;;  %3417 = vmatpush.bf16.msrb.mxu3 %v7527_v39 }
 0x863   :  { %v7547_v22 = vor.u32 %v9001_v34, %v7546_v33 }
 0x864   :  { %v3193_v44 = vadd.f32 %v3192_v35, %v3180_v43  ;;  %v7543_v35 = vor.u32 %v8999_v29, %v7540_v32  ;;  %v7531_v43 = vor.u32 %v8996_v38, %v7528_v40 }
 0x865   :  { %3442 = vmatpush.bf16.msrb.mxu1 %v7547_v22 }
 0x866   :  { %v3206_v45 = vadd.f32 %v3205_v42, %v3193_v44  ;;  %3429 = vmatpush.bf16.msrb.mxu0 %v7543_v35  ;;  %v8998_v42 = vld [vmem:[#allocation7 + $0x100] sm:$0xf0] }
 0x867   :  { %v3168_v47 = vpop.f32.mrf.mxu3  ;;  %v7535_v44 = vor.u32 %v8998_v42, %v7534_v41 }
 0x868   :  { %v3209_v50 = vadd.f32 %v3206_v45, %v9921_v19  ;;  %v7514_v45 = vld [vmem:[#allocation7 + $0xd8] sm:$0xf]  ;;  %v8994_v47 = vld [vmem:[#allocation7 + $0xe0] sm:$0xf0] }
 0x869   :  { %v3207_v49 = vpop.f32.mrf.mxu2  ;;  %3443 = vmatpush.bf16.msrb.mxu1 %v7535_v44 }
 0x86a   :  { %3212 = vadd.xlane.f32.xlu2 %v3209_v50  ;;  %3430 = vmatpush.bf16.msrb.mxu0 %v7531_v43  ;;  %v8993_v49 = vld [vmem:[#allocation7 + $0xdc] sm:$0xf] }
 0x86b   :  { %v7519_v54 = vor.u32 %v8993_v49, %v7516_v51 }
 0x86d   :  { %3444 = vmatpush.bf16.msrb.mxu1 %v7523_v55 }
 0x86e   :  { %3431 = vmatpush.bf16.msrb.mxu0 %v7519_v54 }
 0x8dd   :  { %v3213_v31 = vpop.xlane.xlu2 %3212 }
 0x8de   :  { %v3214_v60 = vmul.f32 0.03125, %v3213_v31  ;;  %v7504_v31 = vld [vmem:[#allocation7 + $0xcc] sm:$0xf0] }
 0x8e0   :  { %v3215_v61 = vsub.f32 %v3209_v50, %v3214_v60  ;;  %v7515_v50 = vor.u32 %v8994_v47, %v7514_v45  ;;  %v7510_v60 = vld [vmem:[#allocation7 + $0xc8] sm:$0xf] }
 0x8e2   :  { %v9965_v62 = vmul.f32 %v9906_v9, %v3215_v61  ;;  %3418 = vmatpush.bf16.msrb.mxu3 %v7515_v50  ;;  %v8992_v61 = vld [vmem:[#allocation7 + $0xd0] sm:$0xf0] }
 0x8e3   :  { %v7511_v15 = vor.u32 %v8992_v61, %v7510_v60 }
 0x8e4   :  { %v3217_v19 = vmul.f32 %v9965_v62, %v9965_v62 }
 0x8e5   :  { %3445 = vmatpush.bf16.msrb.mxu1 %v7511_v15 }
 0x8e6   :  { %3218 = vadd.xlane.f32.xlu1 %v3217_v19  ;;  %v7507_v19 = vor.u32 %v8990_v58, %v7504_v31  ;;  %3419 = vmatpush.bf16.msrb.mxu3 %v7503_v59 }
 0x8e8   :  { %3432 = vmatpush.bf16.msrb.mxu0 %v7507_v19 }
 0x959   :  { %v3219_v63 = vpop.xlane.xlu1 %3218 }
 0x95a   :  { %v3220_v0 = vmul.f32 0.03125, %v3219_v63 }
 0x95c   :  { %v3221_v1 = vadd.f32 1e-05, %v3220_v0 }
 0x95e   :  { %9343 = vrsqrt.f32 %v3221_v1  ;;  %vm3228_vm12 = vweird.f32 %v3221_v1 }
 0x964   :  { %v9344_v2 = vpop.eup %9343 }
 0x965   :  { %v3223_v3 = vmul.f32 %v9344_v2, %v3221_v1  ;;  %vm3229_vm11 = vweird.f32 %v9344_v2 }
 0x966   :  { %vm3230_vm13 = vmor %vm3228_vm12, %vm3229_vm11 }
 0x967   :  { %v3224_v4 = vmul.f32 %v9344_v2, %v3223_v3 }
 0x969   :  { %v3225_v5 = vmul.f32 0.5, %v3224_v4 }
 0x96b   :  { %v3226_v6 = vsub.f32 1.5, %v3225_v5 }
 0x96d   :  { %v3227_v7 = vmul.f32 %v9344_v2, %v3226_v6 }
 0x96f   :  { %v3231_v10 = vsel %vm3230_vm13, %v9344_v2, %v3227_v7 }
 0x970   :  { %v3232_v11 = vmul.f32 %v3231_v10, %v9965_v62 }
 0x972   :  { %v3236_v16 = vmul.f32 %v9316_v8, %v3232_v11 }
 0x974   :  { %v9976_v17 = vadd.f32 %v9317_v14, %v3236_v16 }
 0x976   :  { %v3241_v18 = vpack.c.bf16 %v9976_v17, %v9976_v17 }
 0x978   :  { %3420 = vmatmul.bf16.vlgmr.msrb.gmra.mxu3 %v3241_v18  ;;  %3433 = vmatmul.bf16.vlgmr.msrb.gmra.mxu0 %v3241_v18 }
 0x979   :  { %3446 = vmatmul.bf16.vlgmr.msrb.gmra.mxu1 %v3241_v18 }
 0x9f5   :  { %v3434_v20 = vpop.f32.mrf.mxu0 }
 0x9f6   :  { %v3447_v21 = vpop.f32.mrf.mxu1  ;;  %v3435_v25 = vadd.f32 %v3434_v20, %v3279_v46 }
 0x9f7   :  { %v3448_v52 = vadd.f32 %v3447_v21, %v3280_v24 }
 0x9f9   :  { %v9980_v30 = vpack.c.bf16 %v3448_v52, %v3448_v52 }
 0x9fb   :  { %v3421_v62 = vpop.f32.mrf.mxu3  ;;  %v3521_v35 = vsel %vm544_vm2, %v9980_v30, 0  ;;  %v3588_v46 = vunpack.c.l.b16 %v9980_v30 }
 0x9fc   :  { %v3422_v12 = vadd.f32 %v3421_v62, %v3278_v23 }
 0x9fd   :  { %v3436_v26 = vpop.f32.mrf.mxu0  ;;  %v10005_v23 = vpack.c.b16 %v3588_v46, %v3588_v46 }
 0x9fe   :  { %v3451_v27 = vpack.c.bf16 %v3435_v25, %v3422_v12  ;;  %v3449_v28 = vpop.f32.mrf.mxu1 }
 0xa00   :  { %v3471_v29 = vunpack.c.h.b16 %v3451_v27  ;;  %v3537_v22 = vunpack.c.l.b16 %v3451_v27 }
 0xa02   :  { %v3472_v32 = vpack.c.b16 %v3471_v29, %v3471_v29  ;;  %v3538_v36 = vpack.c.b16 %v3537_v22, %v3537_v22 }
 0xa03   :  { %v3423_v33 = vpop.f32.mrf.mxu3 }
 0xa04   :  { %3541 = vrot.lane.b32.xlu2 %v3472_v32, %s9688_s23  ;;  %v3477_v34 = vsel %vm495_vm1, %v3472_v32, 0 }
 0xa05   :  { %3486 = vmatpush.bf16.xpose.msrb.mxu2 %v3477_v34 }
 0xa0c   :  { %3767 = vrot.lane.b32.xlu2 %v3538_v36, %s9689_s24  ;;  %7596 = vmatmul.msk.bf16.vlgmr.msrb.gmra.mxu2 %vm495_vm1, %v3451_v27 }
 0xa0d   :  { %3530 = vmatpush.bf16.msra.mxu2 %v3521_v35 }
 0xa11   :  { %3661 = vmatpush.bf16.msrb.mxu2 %v9015_v48 }
 0xa15   :  { %3662 = vmatpush.bf16.msrb.mxu2 %v9014_v53 }
 0xa5e   :  { %v3542_v37 = vpop.permute.xlu2 %3541 }
 0xa5f   :  { %v3547_v38 = vsel %vm495_vm1, %v3542_v37, 0 }
 0xa60   :  { %3556 = vmatpush.bf16.xpose.msra.mxu3 %v3547_v38 }
 0xa66   :  { %v3768_v24 = vpop.permute.xlu2 %3767 }
 0xa8f   :  { %v3488_v39 = vpop.f32.mrf.mxu2 }
 0xa90   :  { %v3492_v40 = vsel %vm515_vm3, %v3488_v39, -inf }
 0xa91   :  { %3493 = vmax.xlane.f32.xlu0 %v3492_v40 }
 0xa97   :  { %v3490_v41 = vpop.f32.mrf.mxu2 }
 0xaa5   :  { %3539 = vrot.lane.b32.xlu0 %v3538_v36, %s9688_s23 }
 0xaad   :  { %3670 = vrot.lane.b32.xlu0 %v3472_v32, %s9673_s30 }
 0xb04   :  { %v3494_v42 = vpop.xlane.xlu0 %3493 }
 0xb05   :  { %v3495_v43 = vsub.f32 %v3488_v39, %v3494_v42 }
 0xb07   :  { %v3496_v44 = vmul.f32 1.442695, %v3495_v43 }
 0xb09   :  { %9345 = vpow2.f32 %v3496_v44 }
 0xb0f   :  { %v9346_v45 = vpop.eup %9345 }
 0xb10   :  { %v3498_v47 = vsel %vm515_vm3, %v9346_v45, 0.0 }
 0xb11   :  { %3499 = vadd.xlane.f32.xlu1 %v3498_v47 }
 0xb17   :  { %v3540_v49 = vpop.permute.xlu0 %3539 }
 0xb18   :  { %7598 = vmatmul.msk.bf16.vlgmr.msra.gmra.mxu3 %vm495_vm1, %v3540_v49 }
 0xb1f   :  { %v3671_v50 = vpop.permute.xlu0 %3670 }
 0xb20   :  { %v3676_v51 = vsel %vm495_vm1, %v3671_v50, 0  ;;  %v9017_v50 = vld [vmem:[#allocation10 + $0x58] sm:$0xff] }
 0xb21   :  { %3685 = vmatpush.bf16.xpose.msrb.mxu3 %v3676_v51  ;;  %3633 = vmatpush.bf16.msra.mxu1 %v9017_v50  ;;  %v9016_v51 = vld [vmem:[#allocation10 + $0x50] sm:$0xff]  ;;  %v8093_v50 = vld [vmem:[#allocation11 + $0x780] sm:$0xf] }
 0xb25   :  { %3634 = vmatpush.bf16.msra.mxu1 %v9016_v51  ;;  %v9142_v51 = vld [vmem:[#allocation11 + $0x7bc] sm:$0xf0] }
 0xb2a   :  { %3769 = vrot.lane.b32.xlu1 %v3472_v32, %s9689_s24 }
 0xb32   :  { %3668 = vrot.lane.b32.xlu1 %v3538_v36, %s9673_s30 }
 0xb84   :  { %v3500_v54 = vpop.xlane.xlu1 %3499 }
 0xb85   :  { %9347 = vrcp.f32 %v3500_v54  ;;  %v3512_v58 = vand.u32 2147483648, %v3500_v54  ;;  %v3510_v31 = vand.u32 2147483647, %v3500_v54  ;;  %vm3506_vm15 = vweird.f32 %v3500_v54 }
 0xb87   :  { %v3513_v61 = vor.u32 1.1754944e-38, %v3512_v58  ;;  %vm3511_vm4 = vcmp.eq.f32.partialorder %v3510_v31, 8.507059e+37 }
 0xb8b   :  { %v9348_v55 = vpop.eup %9347 }
 0xb8c   :  { %v3502_v56 = vmul.f32 %v9348_v55, %v3500_v54  ;;  %vm3507_vm14 = vweird.f32 %v9348_v55 }
 0xb8d   :  { %vm3508_vm0 = vmor %vm3506_vm15, %vm3507_vm14 }
 0xb8e   :  { %v3503_v57 = vsub.f32 1.0, %v3502_v56 }
 0xb90   :  { %v3504_v59 = vmul.f32 %v9348_v55, %v3503_v57 }
 0xb92   :  { %v3505_v60 = vadd.f32 %v9348_v55, %v3504_v59 }
 0xb94   :  { %v3509_v19 = vsel %vm3508_vm0, %v9348_v55, %v3505_v60 }
 0xb95   :  { %v3514_v15 = vsel %vm3511_vm4, %v3513_v61, %v3509_v19 }
 0xb96   :  { %v3515_v63 = vmul.f32 %v9346_v45, %v3514_v15 }
 0xb98   :  { %v3516_v0 = vpack.c.bf16 %v3515_v63, %v3515_v63 }
 0xb9a   :  { %7597 = vmatmul.msk.bf16.vlgmr.msra.gmra.mxu2 %vm515_vm3, %v3516_v0 }
 0xb9b   :  { %v3558_v1 = vpop.f32.mrf.mxu3 }
 0xb9c   :  { %v3770_v2 = vpop.permute.xlu1 %3769  ;;  %v3562_v3 = vsel %vm515_vm3, %v3558_v1, -inf }
 0xb9d   :  { %v3775_v4 = vsel %vm495_vm1, %v3770_v2, 0  ;;  %3563 = vmax.xlane.f32.xlu0 %v3562_v3 }
 0xb9e   :  { %3784 = vmatpush.bf16.xpose.msra.mxu2 %v3775_v4 }
 0xba3   :  { %v3560_v5 = vpop.f32.mrf.mxu3 }
 0xba4   :  { %v3669_v6 = vpop.permute.xlu1 %3668 }
 0xba5   :  { %7618 = vmatmul.msk.bf16.vlgmr.msrb.gmra.mxu3 %vm495_vm1, %v3669_v6 }
 0xc10   :  { %v3564_v7 = vpop.xlane.xlu0 %3563 }
 0xc11   :  { %v3565_v8 = vsub.f32 %v3558_v1, %v3564_v7 }
 0xc13   :  { %v3566_v10 = vmul.f32 1.442695, %v3565_v8 }
 0xc15   :  { %9349 = vpow2.f32 %v3566_v10  ;;  %v9019_v10 = vld [vmem:[#allocation10 + $0x68] sm:$0xff] }
 0xc16   :  { %3759 = vmatpush.bf16.msrb.mxu1 %v9019_v10  ;;  %v9102_v10 = vld [vmem:[#allocation11 + $0x684] sm:$0xf] }
 0xc1b   :  { %v9350_v11 = vpop.eup %9349 }
 0xc1c   :  { %v3568_v14 = vsel %vm515_vm3, %v9350_v11, 0.0 }
 0xc1d   :  { %3569 = vadd.xlane.f32.xlu0 %v3568_v14  ;;  %v3532_v16 = vpop.f32.mrf.mxu2 }
 0xc1e   :  { %v3536_v18 = vpack.c.bf16 %v3532_v16, %v3532_v16 }
 0xc20   :  { %7617 = vmatmul.msk.bf16.vlgmr.msrb.gmra.mxu2 %vm495_vm1, %v3536_v18 }
 0xc25   :  { %v3534_v13 = vpop.f32.mrf.mxu2 }
 0xc28   :  { %v3687_v20 = vpop.f32.mrf.mxu3 }
 0xc29   :  { %v3691_v21 = vsel %vm515_vm3, %v3687_v20, -inf }
 0xc2a   :  { %3692 = vmax.xlane.f32.xlu1 %v3691_v21 }
 0xc30   :  { %v3689_v62 = vpop.f32.mrf.mxu3  ;;  %7629 = vmatmul.msk.bf16.vlgmr.msra.gmra.mxu2 %vm495_vm1, %v3768_v24 }
 0xc31   :  { %3590 = vrot.lane.b32.xlu0 %v10005_v23, %s9688_s23 }
 0xc90   :  { %v3570_v25 = vpop.xlane.xlu0 %3569 }
 0xc91   :  { %9351 = vrcp.f32 %v3570_v25  ;;  %v3582_v27 = vand.u32 2147483648, %v3570_v25  ;;  %v3580_v29 = vand.u32 2147483647, %v3570_v25  ;;  %vm3576_vm6 = vweird.f32 %v3570_v25 }
 0xc93   :  { %v3583_v34 = vor.u32 1.1754944e-38, %v3582_v27  ;;  %vm3581_vm8 = vcmp.eq.f32.partialorder %v3580_v29, 8.507059e+37 }
 0xc97   :  { %v9352_v12 = vpop.eup %9351 }
 0xc98   :  { %v3572_v52 = vmul.f32 %v9352_v12, %v3570_v25  ;;  %vm3577_vm5 = vweird.f32 %v9352_v12 }
 0xc99   :  { %vm3578_vm7 = vmor %vm3576_vm6, %vm3577_vm5 }
 0xc9a   :  { %v3573_v26 = vsub.f32 1.0, %v3572_v52 }
 0xc9c   :  { %v3574_v28 = vmul.f32 %v9352_v12, %v3573_v26 }
 0xc9d   :  { %v3693_v32 = vpop.xlane.xlu1 %3692 }
 0xc9e   :  { %v3575_v30 = vadd.f32 %v9352_v12, %v3574_v28  ;;  %v3694_v33 = vsub.f32 %v3687_v20, %v3693_v32 }
 0xca0   :  { %v3579_v35 = vsel %vm3578_vm7, %v9352_v12, %v3575_v30  ;;  %v3695_v22 = vmul.f32 1.442695, %v3694_v33 }
 0xca1   :  { %v3584_v36 = vsel %vm3581_vm8, %v3583_v34, %v3579_v35  ;;  %v9021_v34 = vld [vmem:[#allocation10 + $0x78] sm:$0xff]  ;;  %v9020_v35 = vld [vmem:[#allocation10 + $0x70] sm:$0xff] }
 0xca2   :  { %v3585_v37 = vmul.f32 %v9350_v11, %v3584_v36  ;;  %9353 = vpow2.f32 %v3695_v22  ;;  %v9018_v11 = vld [vmem:[#allocation10 + $0x60] sm:$0xff] }
 0xca3   :  { %v3591_v38 = vpop.permute.xlu0 %3590  ;;  %v10010_v39 = vpop.f32.mrf.mxu2  ;;  %3760 = vmatpush.bf16.msrb.mxu1 %v9018_v11  ;;  %v7967_v11 = vld [vmem:[#allocation11 + $0x6c0] sm:$0xf0] }
 0xca4   :  { %v3596_v40 = vsel %vm544_vm2, %v3591_v38, 0  ;;  %v3586_v41 = vpack.c.bf16 %v3585_v37, %v3585_v37 }
 0xca5   :  { %3605 = vmatpush.bf16.msra.mxu0 %v3596_v40 }
 0xca8   :  { %v9354_v42 = vpop.eup %9353  ;;  %7599 = vmatmul.msk.bf16.vlgmr.msra.gmra.mxu0 %vm515_vm3, %v3586_v41 }
 0xca9   :  { %v3697_v43 = vsel %vm515_vm3, %v9354_v42, 0.0 }
 0xcaa   :  { %3698 = vadd.xlane.f32.xlu1 %v3697_v43  ;;  %v9318_v43 = vld [vmem:[%s10109_s7 + $0x1] ss:$0 sm:$0xff] }
 0xcab   :  { %v3666_v44 = vpop.f32.mrf.mxu2 }
 0xcb3   :  { %v3786_v45 = vpop.f32.mrf.mxu2 }
 0xcb4   :  { %v3790_v47 = vsel %vm515_vm3, %v3786_v45, -inf }
 0xcb5   :  { %3791 = vmax.xlane.f32.xlu2 %v3790_v47 }
 0xcbb   :  { %v3788_v49 = vpop.f32.mrf.mxu2 }
 0xcc3   :  { %3716 = vrot.lane.b32.xlu1 %v10005_v23, %s9673_s30 }
 0xd1d   :  { %v3699_v48 = vpop.xlane.xlu1 %3698 }
 0xd1e   :  { %9355 = vrcp.f32 %v3699_v48  ;;  %v3711_v61 = vand.u32 2147483648, %v3699_v48  ;;  %vm3705_vm10 = vweird.f32 %v3699_v48  ;;  %v3709_v15 = vand.u32 2147483647, %v3699_v48 }
 0xd20   :  { %v3712_v1 = vor.u32 1.1754944e-38, %v3711_v61  ;;  %vm3710_vm12 = vcmp.eq.f32.partialorder %v3709_v15, 8.507059e+37  ;;  %v8031_v15 = vld [vmem:[#allocation11 + $0x740] sm:$0xf0] }
 0xd24   :  { %v9356_v53 = vpop.eup %9355 }
 0xd25   :  { %v3701_v54 = vmul.f32 %v9356_v53, %v3699_v48  ;;  %v3607_v55 = vpop.f32.mrf.mxu0  ;;  %vm3706_vm9 = vweird.f32 %v9356_v53  ;;  %v9134_v48 = vld [vmem:[#allocation11 + $0x784] sm:$0xf] }
 0xd26   :  { %v3611_v56 = vpack.c.bf16 %v3607_v55, %v3607_v55  ;;  %vm3707_vm11 = vmor %vm3705_vm10, %vm3706_vm9  ;;  %v8101_v55 = vld [vmem:[#allocation11 + $0x788] sm:$0xf] }
 0xd27   :  { %v3702_v57 = vsub.f32 1.0, %v3701_v54  ;;  %v8095_v54 = vld [vmem:[#allocation11 + $0x7c0] sm:$0xf0] }
 0xd28   :  { %7608 = vmatmul.msk.bf16.vlgmr.msra.gmra.mxu1 %vm495_vm1, %v3611_v56  ;;  %v3792_v58 = vpop.xlane.xlu2 %3791  ;;  %v9143_v56 = vld [vmem:[#allocation11 + $0x7c4] sm:$0xf0] }
 0xd29   :  { %v3703_v59 = vmul.f32 %v9356_v53, %v3702_v57  ;;  %v3793_v31 = vsub.f32 %v3786_v45, %v3792_v58  ;;  %v8098_v57 = vor.u32 %v9134_v48, %v8095_v54  ;;  %v8102_v58 = vor.u32 %v9143_v56, %v8101_v55  ;;  %v7781_v48 = vld [vmem:[#allocation11 + $0x508] sm:$0xf]  ;;  %v9055_v54 = vld [vmem:[#allocation11 + $0x50c] sm:$0xf] }
 0xd2a   :  { %v7783_v55 = vld [vmem:[#allocation11 + $0x548] sm:$0xf0] }
 0xd2b   :  { %v3704_v60 = vadd.f32 %v9356_v53, %v3703_v59  ;;  %v3794_v19 = vmul.f32 1.442695, %v3793_v31  ;;  %v9135_v59 = vld [vmem:[#allocation11 + $0x78c] sm:$0xf]  ;;  %4726 = vmatpush.bf16.msrb.mxu2 %v8098_v57 }
 0xd2c   :  { %v8103_v31 = vld [vmem:[#allocation11 + $0x7c8] sm:$0xf0] }
 0xd2d   :  { %9357 = vpow2.f32 %v3794_v19  ;;  %v3609_v63 = vpop.f32.mrf.mxu0  ;;  %v3708_v0 = vsel %vm3707_vm11, %v9356_v53, %v3704_v60  ;;  %v8094_v53 = vor.u32 %v9142_v51, %v8093_v50  ;;  %v8029_v60 = vld [vmem:[#allocation11 + $0x700] sm:$0xf]  ;;  %v8106_v61 = vor.u32 %v9135_v59, %v8103_v31  ;;  %v7775_v51 = vld [vmem:[#allocation11 + $0x540] sm:$0xf0] }
 0xd2e   :  { %v3713_v2 = vsel %vm3710_vm12, %v3712_v1, %v3708_v0  ;;  %v9126_v19 = vld [vmem:[#allocation11 + $0x73c] sm:$0xf0]  ;;  %v8037_v1 = vld [vmem:[#allocation11 + $0x708] sm:$0xf] }
 0xd2f   :  { %v3714_v4 = vmul.f32 %v9354_v42, %v3713_v2  ;;  %4713 = vmatpush.bf16.msra.mxu1 %v8094_v53  ;;  %v8030_v63 = vor.u32 %v9126_v19, %v8029_v60  ;;  %v9127_v2 = vld [vmem:[#allocation11 + $0x744] sm:$0xf0]  ;;  %v7709_v59 = vld [vmem:[#allocation11 + $0x480] sm:$0xf]  ;;  %v9038_v60 = vld [vmem:[#allocation11 + $0x484] sm:$0xf] }
 0xd30   :  { %v9063_v53 = vld [vmem:[#allocation11 + $0x544] sm:$0xf0]  ;;  %v9046_v31 = vld [vmem:[#allocation11 + $0x4bc] sm:$0xf0]  ;;  %v7711_v19 = vld [vmem:[#allocation11 + $0x4c0] sm:$0xf0] }
 0xd31   :  { %v3715_v8 = vpack.c.bf16 %v3714_v4, %v3714_v4  ;;  %v8038_v4 = vor.u32 %v9127_v2, %v8037_v1  ;;  %v7710_v2 = vor.u32 %v9046_v31, %v7709_v59  ;;  %v9105_v59 = vld [vmem:[#allocation11 + $0x69c] sm:$0xf] }
 0xd32   :  { %v7991_v31 = vld [vmem:[#allocation11 + $0x6d8] sm:$0xf0] }
 0xd33   :  { %v9358_v3 = vpop.eup %9357  ;;  %4714 = vmatpush.bf16.msra.mxu1 %v8030_v63  ;;  %v9039_v63 = vld [vmem:[#allocation11 + $0x48c] sm:$0xf] }
 0xd34   :  { %v3796_v5 = vsel %vm515_vm3, %v9358_v3, 0.0 }
 0xd35   :  { %v3717_v6 = vpop.permute.xlu1 %3716  ;;  %3797 = vadd.xlane.f32.xlu2 %v3796_v5  ;;  %v8039_v5 = vld [vmem:[#allocation11 + $0x748] sm:$0xf0] }
 0xd36   :  { %v3722_v7 = vsel %vm544_vm2, %v3717_v6, 0  ;;  %v7965_v6 = vld [vmem:[#allocation11 + $0x680] sm:$0xf] }
 0xd37   :  { %3731 = vmatpush.bf16.msrb.mxu0 %v3722_v7  ;;  %v9110_v7 = vld [vmem:[#allocation11 + $0x6bc] sm:$0xf0] }
 0xd3a   :  { %7619 = vmatmul.msk.bf16.vlgmr.msrb.gmra.mxu0 %vm515_vm3, %v3715_v8 }
 0xd3b   :  { %3858 = vmatpush.bf16.msra.mxu0 %v9021_v34  ;;  %v9078_v34 = vld [vmem:[#allocation11 + $0x5bc] sm:$0xf0] }
 0xd3f   :  { %3859 = vmatpush.bf16.msra.mxu0 %v9020_v35  ;;  %v9070_v35 = vld [vmem:[#allocation11 + $0x584] sm:$0xf] }
 0xd43   :  { %4752 = vmatpush.bf16.msrb.mxu0 %v8106_v61  ;;  %v7786_v61 = vor.u32 %v9055_v54, %v7783_v55  ;;  %v7983_v54 = vld [vmem:[#allocation11 + $0x6d0] sm:$0xf0]  ;;  %v7989_v55 = vld [vmem:[#allocation11 + $0x698] sm:$0xf] }
 0xd4d   :  { %3815 = vrot.lane.b32.xlu2 %v10005_v23, %s9689_s24 }
 0xda5   :  { %v3636_v14 = vpop.f32.mrf.mxu1 }
 0xda6   :  { %v3665_v22 = vadd.f32 %v10010_v39, %v3636_v14  ;;  %v7973_v14 = vld [vmem:[#allocation11 + $0x688] sm:$0xf] }
 0xda8   :  { %v3798_v16 = vpop.xlane.xlu2 %3797 }
 0xda9   :  { %9359 = vrcp.f32 %v3798_v16  ;;  %v3810_v62 = vand.u32 2147483648, %v3798_v16  ;;  %v3808_v12 = vand.u32 2147483647, %v3798_v16  ;;  %vm3804_vm14 = vweird.f32 %v3798_v16 }
 0xdab   :  { %v3811_v52 = vor.u32 1.1754944e-38, %v3810_v62  ;;  %vm3809_vm0 = vcmp.eq.f32.partialorder %v3808_v12, 8.507059e+37  ;;  %v9094_v62 = vld [vmem:[#allocation11 + $0x63c] sm:$0xf0] }
 0xdad   :  { %v3638_v18 = vpop.f32.mrf.mxu1 }
 0xdae   :  { %v9111_v18 = vld [vmem:[#allocation11 + $0x6c4] sm:$0xf0] }
 0xdaf   :  { %v9360_v13 = vpop.eup %9359 }
 0xdb0   :  { %v3800_v20 = vmul.f32 %v9360_v13, %v3798_v16  ;;  %v3816_v21 = vpop.permute.xlu2 %3815  ;;  %vm3805_vm13 = vweird.f32 %v9360_v13  ;;  %v7966_v16 = vor.u32 %v9110_v7, %v7965_v6 }
 0xdb1   :  { %v3821_v46 = vsel %vm544_vm2, %v3816_v21, 0  ;;  %vm3806_vm15 = vmor %vm3804_vm14, %vm3805_vm13  ;;  %v7970_v21 = vor.u32 %v9102_v10, %v7967_v11  ;;  %v7645_v11 = vld [vmem:[#allocation11 + $0x400] sm:$0xf] }
 0xdb2   :  { %v3801_v24 = vsub.f32 1.0, %v3800_v20  ;;  %3830 = vmatpush.bf16.msra.mxu3 %v3821_v46  ;;  %v7975_v20 = vld [vmem:[#allocation11 + $0x6c8] sm:$0xf0]  ;;  %v7974_v46 = vor.u32 %v9111_v18, %v7973_v14  ;;  %4715 = vmatpush.bf16.msra.mxu1 %v7966_v16  ;;  %v9030_v14 = vld [vmem:[#allocation11 + $0x43c] sm:$0xf0] }
 0xdb3   :  { %v9022_v16 = vld [vmem:[#allocation11 + $0x404] sm:$0xf]  ;;  %v7646_v18 = vor.u32 %v9030_v14, %v7645_v11  ;;  %v9072_v11 = vld [vmem:[#allocation11 + $0x594] sm:$0xf] }
 0xdb4   :  { %v3802_v25 = vmul.f32 %v9360_v13, %v3801_v24  ;;  %v7901_v24 = vld [vmem:[#allocation11 + $0x600] sm:$0xf] }
 0xdb6   :  { %v3803_v23 = vadd.f32 %v9360_v13, %v3802_v25  ;;  %4739 = vmatpush.bf16.msrb.mxu3 %v8102_v58  ;;  %v9086_v25 = vld [vmem:[#allocation11 + $0x604] sm:$0xf]  ;;  %v7782_v58 = vor.u32 %v9063_v53, %v7781_v48  ;;  %v9104_v48 = vld [vmem:[#allocation11 + $0x694] sm:$0xf] }
 0xdb7   :  { %v3733_v26 = vpop.f32.mrf.mxu0 }
 0xdb8   :  { %v3807_v27 = vsel %vm3806_vm15, %v9360_v13, %v3803_v23  ;;  %v3737_v28 = vpack.c.bf16 %v3733_v26, %v3733_v26  ;;  %v9103_v13 = vld [vmem:[#allocation11 + $0x68c] sm:$0xf]  ;;  %v7903_v23 = vld [vmem:[#allocation11 + $0x640] sm:$0xf0]  ;;  %v9095_v26 = vld [vmem:[#allocation11 + $0x644] sm:$0xf0] }
 0xdb9   :  { %v3812_v29 = vsel %vm3809_vm0, %v3811_v52, %v3807_v27  ;;  %v7978_v12 = vor.u32 %v9103_v13, %v7975_v20  ;;  %v7909_v52 = vld [vmem:[#allocation11 + $0x608] sm:$0xf]  ;;  %v9087_v27 = vld [vmem:[#allocation11 + $0x60c] sm:$0xf]  ;;  %v7647_v13 = vld [vmem:[#allocation11 + $0x440] sm:$0xf0] }
 0xdba   :  { %v3813_v32 = vmul.f32 %v9358_v3, %v3812_v29  ;;  %7628 = vmatmul.msk.bf16.vlgmr.msrb.gmra.mxu1 %vm495_vm1, %v3737_v28  ;;  %v9119_v3 = vld [vmem:[#allocation11 + $0x70c] sm:$0xf]  ;;  %4740 = vmatpush.bf16.msrb.mxu3 %v8038_v4  ;;  %v7902_v29 = vor.u32 %v9094_v62, %v7901_v24  ;;  %v7714_v4 = vor.u32 %v9038_v60, %v7711_v19  ;;  %v7653_v20 = vld [vmem:[#allocation11 + $0x408] sm:$0xf]  ;;  %v9096_v19 = vld [vmem:[#allocation11 + $0x64c] sm:$0xf0] }
 0xdbb   :  { %v8042_v8 = vor.u32 %v9119_v3, %v8039_v5  ;;  %v7911_v28 = vld [vmem:[#allocation11 + $0x648] sm:$0xf0]  ;;  %v7994_v60 = vor.u32 %v9105_v59, %v7991_v31 }
 0xdbc   :  { %v3814_v30 = vpack.c.bf16 %v3813_v32, %v3813_v32  ;;  %v7906_v32 = vor.u32 %v9086_v25, %v7903_v23  ;;  %4716 = vmatpush.bf16.msra.mxu1 %v7902_v29  ;;  %v9023_v24 = vld [vmem:[#allocation11 + $0x40c] sm:$0xf]  ;;  %v8109_v25 = vld [vmem:[#allocation11 + $0x790] sm:$0xf]  ;;  %v8117_v29 = vld [vmem:[#allocation11 + $0x798] sm:$0xf] }
 0xdbd   :  { %4753 = vmatpush.bf16.msrb.mxu0 %v8042_v8  ;;  %v7655_v62 = vld [vmem:[#allocation11 + $0x448] sm:$0xf0]  ;;  %v9144_v23 = vld [vmem:[#allocation11 + $0x7cc] sm:$0xf0] }
 0xdbe   :  { %7630 = vmatmul.msk.bf16.vlgmr.msra.gmra.mxu3 %vm515_vm3, %v3814_v30  ;;  %v7910_v30 = vor.u32 %v9095_v26, %v7909_v52  ;;  %v9136_v52 = vld [vmem:[#allocation11 + $0x794] sm:$0xf] }
 0xdbf   :  { %v3735_v33 = vpop.f32.mrf.mxu0  ;;  %4741 = vmatpush.bf16.msrb.mxu3 %v7974_v46  ;;  %v7650_v46 = vor.u32 %v9022_v16, %v7647_v13  ;;  %v8111_v26 = vld [vmem:[#allocation11 + $0x7d0] sm:$0xf0]  ;;  %v9081_v13 = vld [vmem:[#allocation11 + $0x5d4] sm:$0xf0] }
 0xdc0   :  { %v7837_v33 = vld [vmem:[#allocation11 + $0x580] sm:$0xf]  ;;  %v7855_v16 = vld [vmem:[#allocation11 + $0x5d0] sm:$0xf0] }
 0xdc1   :  { %4754 = vmatpush.bf16.msrb.mxu0 %v7978_v12  ;;  %v7658_v12 = vor.u32 %v9023_v24, %v7655_v62  ;;  %v7789_v62 = vld [vmem:[#allocation11 + $0x510] sm:$0xf] }
 0xdc3   :  { %4742 = vmatpush.bf16.msrb.mxu3 %v7910_v30  ;;  %v9137_v30 = vld [vmem:[#allocation11 + $0x79c] sm:$0xf] }
 0xe37   :  { %v3762_v36 = vpop.f32.mrf.mxu1 }
 0xe38   :  { %v3766_v37 = vadd.f32 %v3762_v36, %v3665_v22  ;;  %v7914_v22 = vor.u32 %v9087_v27, %v7911_v28  ;;  %v7839_v36 = vld [vmem:[#allocation11 + $0x5c0] sm:$0xf0]  ;;  %v8110_v27 = vor.u32 %v9144_v23, %v8109_v25  ;;  %v8114_v28 = vor.u32 %v9136_v52, %v8111_v26  ;;  %v9064_v25 = vld [vmem:[#allocation11 + $0x54c] sm:$0xf0]  ;;  %v7791_v52 = vld [vmem:[#allocation11 + $0x550] sm:$0xf0] }
 0xe39   :  { %v7790_v23 = vor.u32 %v9064_v25, %v7789_v62  ;;  %v7797_v26 = vld [vmem:[#allocation11 + $0x518] sm:$0xf]  ;;  %v8061_v62 = vld [vmem:[#allocation11 + $0x720] sm:$0xf] }
 0xe3a   :  { %4755 = vmatpush.bf16.msrb.mxu0 %v7914_v22  ;;  %v9128_v22 = vld [vmem:[#allocation11 + $0x74c] sm:$0xf0]  ;;  %v9130_v25 = vld [vmem:[#allocation11 + $0x75c] sm:$0xf0] }
 0xe3f   :  { %v3764_v38 = vpop.f32.mrf.mxu1 }
 0xe40   :  { %v9079_v38 = vld [vmem:[#allocation11 + $0x5c4] sm:$0xf0] }
 0xe41   :  { %v3832_v40 = vpop.f32.mrf.mxu3 }
 0xe42   :  { %v3836_v41 = vpack.c.bf16 %v3832_v40, %v3832_v40  ;;  %v9071_v40 = vld [vmem:[#allocation11 + $0x58c] sm:$0xf] }
 0xe44   :  { %7639 = vmatmul.msk.bf16.vlgmr.msra.gmra.mxu0 %vm495_vm1, %v3836_v41  ;;  %v7847_v41 = vld [vmem:[#allocation11 + $0x5c8] sm:$0xf0] }
 0xe45   :  { %v7850_v50 = vor.u32 %v9071_v40, %v7847_v41  ;;  %v8047_v40 = vld [vmem:[#allocation11 + $0x750] sm:$0xf0]  ;;  %v8053_v41 = vld [vmem:[#allocation11 + $0x718] sm:$0xf] }
 0xe47   :  { %4756 = vmatpush.bf16.msrb.mxu0 %v7850_v50  ;;  %v7981_v50 = vld [vmem:[#allocation11 + $0x690] sm:$0xf] }
 0xe49   :  { %v3834_v42 = vpop.f32.mrf.mxu3 }
 0xe4a   :  { %v7838_v42 = vor.u32 %v9078_v34, %v7837_v33  ;;  %v8119_v34 = vld [vmem:[#allocation11 + $0x7d8] sm:$0xf0] }
 0xe4b   :  { %4757 = vmatpush.bf16.msrb.mxu0 %v7786_v61  ;;  %v7917_v61 = vld [vmem:[#allocation11 + $0x610] sm:$0xf] }
 0xe4c   :  { %4717 = vmatpush.bf16.msra.mxu1 %v7838_v42 }
 0xec1   :  { %v3861_v44 = vpop.f32.mrf.mxu0 }
 0xec2   :  { %v3865_v45 = vadd.f32 %v3861_v44, %v3766_v37  ;;  %v7845_v37 = vld [vmem:[#allocation11 + $0x588] sm:$0xf] }
 0xec3   :  { %v7846_v44 = vor.u32 %v9079_v38, %v7845_v37  ;;  %v9120_v38 = vld [vmem:[#allocation11 + $0x714] sm:$0xf] }
 0xec4   :  { %v3871_v47 = vadd.f32 %v9318_v43, %v3865_v45  ;;  %v7842_v43 = vor.u32 %v9070_v35, %v7839_v36  ;;  %v7773_v45 = vld [vmem:[#allocation11 + $0x500] sm:$0xf]  ;;  %v8045_v35 = vld [vmem:[#allocation11 + $0x710] sm:$0xf]  ;;  %v8122_v36 = vor.u32 %v9137_v30, %v8119_v34  ;;  %v8050_v42 = vor.u32 %v9120_v38, %v8047_v40  ;;  %v7799_v30 = vld [vmem:[#allocation11 + $0x558] sm:$0xf0] }
 0xec5   :  { %4743 = vmatpush.bf16.msrb.mxu3 %v7846_v44  ;;  %v8046_v37 = vor.u32 %v9128_v22, %v8045_v35  ;;  %v9121_v44 = vld [vmem:[#allocation11 + $0x71c] sm:$0xf]  ;;  %v7725_v34 = vld [vmem:[#allocation11 + $0x490] sm:$0xf]  ;;  %v9040_v22 = vld [vmem:[#allocation11 + $0x494] sm:$0xf] }
 0xec6   :  { %v10033_v49 = vadd.f32 %v3871_v47, %v9976_v17  ;;  %v9118_v17 = vld [vmem:[#allocation11 + $0x704] sm:$0xf]  ;;  %v9062_v47 = vld [vmem:[#allocation11 + $0x53c] sm:$0xf0]  ;;  %v9048_v35 = vld [vmem:[#allocation11 + $0x4cc] sm:$0xf0] }
 0xec7   :  { %v8034_v0 = vor.u32 %v9118_v17, %v8031_v15  ;;  %v7774_v56 = vor.u32 %v9062_v47, %v7773_v45  ;;  %v7717_v17 = vld [vmem:[#allocation11 + $0x488] sm:$0xf]  ;;  %v8055_v45 = vld [vmem:[#allocation11 + $0x758] sm:$0xf0]  ;;  %v7733_v38 = vld [vmem:[#allocation11 + $0x498] sm:$0xf] }
 0xec8   :  { %3877 = vadd.xlane.f32.xlu0 %v10033_v49  ;;  %v9047_v15 = vld [vmem:[#allocation11 + $0x4c4] sm:$0xf0]  ;;  %v9049_v40 = vld [vmem:[#allocation11 + $0x4d4] sm:$0xf0] }
 0xec9   :  { %v3863_v39 = vpop.f32.mrf.mxu0  ;;  %4727 = vmatpush.bf16.msrb.mxu2 %v8034_v0  ;;  %v7719_v0 = vld [vmem:[#allocation11 + $0x4c8] sm:$0xf0]  ;;  %4718 = vmatpush.bf16.msra.mxu1 %v7774_v56  ;;  %v7718_v5 = vor.u32 %v9047_v15, %v7717_v17  ;;  %v9113_v56 = vld [vmem:[#allocation11 + $0x6d4] sm:$0xf0]  ;;  %v9088_v17 = vld [vmem:[#allocation11 + $0x614] sm:$0xf]  ;;  %v7918_v15 = vor.u32 %v9096_v19, %v7917_v61 }
 0xeca   :  { %v9054_v39 = vld [vmem:[#allocation11 + $0x504] sm:$0xf]  ;;  %4744 = vmatpush.bf16.msrb.mxu3 %v7782_v58  ;;  %v7722_v6 = vor.u32 %v9039_v63, %v7719_v0  ;;  %v7990_v58 = vor.u32 %v9113_v56, %v7989_v55  ;;  %v7919_v63 = vld [vmem:[#allocation11 + $0x650] sm:$0xf0]  ;;  %v7925_v0 = vld [vmem:[#allocation11 + $0x618] sm:$0xf] }
 0xecb   :  { %v7778_v57 = vor.u32 %v9054_v39, %v7775_v51  ;;  %v8058_v39 = vor.u32 %v9121_v44, %v8055_v45  ;;  %v9112_v51 = vld [vmem:[#allocation11 + $0x6cc] sm:$0xf0]  ;;  %v7735_v44 = vld [vmem:[#allocation11 + $0x4d8] sm:$0xf0] }
 0xecc   :  { %4758 = vmatpush.bf16.msrb.mxu0 %v7722_v6  ;;  %v7982_v53 = vor.u32 %v9112_v51, %v7981_v50  ;;  %v9024_v50 = vld [vmem:[#allocation11 + $0x414] sm:$0xf] }
 0xecd   :  { %4728 = vmatpush.bf16.msrb.mxu2 %v7970_v21  ;;  %4719 = vmatpush.bf16.msra.mxu1 %v7710_v2  ;;  %v9031_v21 = vld [vmem:[#allocation11 + $0x444] sm:$0xf0]  ;;  %v7922_v2 = vor.u32 %v9088_v17, %v7919_v63 }
 0xece   :  { %4745 = vmatpush.bf16.msrb.mxu3 %v7718_v5  ;;  %v7927_v5 = vld [vmem:[#allocation11 + $0x658] sm:$0xf0] }
 0xed0   :  { %4759 = vmatpush.bf16.msrb.mxu0 %v7658_v12  ;;  %v9056_v12 = vld [vmem:[#allocation11 + $0x514] sm:$0xf] }
 0xed1   :  { %4729 = vmatpush.bf16.msrb.mxu2 %v7906_v32  ;;  %4720 = vmatpush.bf16.msra.mxu1 %v7646_v18  ;;  %v9145_v32 = vld [vmem:[#allocation11 + $0x7d4] sm:$0xf0] }
 0xed2   :  { %v8118_v33 = vor.u32 %v9145_v32, %v8117_v29  ;;  %v7861_v18 = vld [vmem:[#allocation11 + $0x598] sm:$0xf]  ;;  %v9057_v32 = vld [vmem:[#allocation11 + $0x51c] sm:$0xf] }
 0xed4   :  { %4804 = vmatpush.bf16.msra.mxu0 %v8122_v36  ;;  %v7726_v36 = vor.u32 %v9048_v35, %v7725_v34  ;;  %v9114_v34 = vld [vmem:[#allocation11 + $0x6dc] sm:$0xf0] }
 0xed5   :  { %4730 = vmatpush.bf16.msrb.mxu2 %v7842_v43  ;;  %4765 = vmatpush.bf16.msrb.mxu1 %v8110_v27  ;;  %v9129_v43 = vld [vmem:[#allocation11 + $0x754] sm:$0xf0] }
 0xed6   :  { %v8054_v47 = vor.u32 %v9129_v43, %v8053_v41  ;;  %v9065_v27 = vld [vmem:[#allocation11 + $0x554] sm:$0xf0]  ;;  %v9041_v43 = vld [vmem:[#allocation11 + $0x49c] sm:$0xf] }
 0xed7   :  { %v7798_v29 = vor.u32 %v9065_v27, %v7797_v26  ;;  %v7738_v45 = vor.u32 %v9041_v43, %v7735_v44  ;;  %v8069_v26 = vld [vmem:[#allocation11 + $0x728] sm:$0xf] }
 0xed8   :  { %4805 = vmatpush.bf16.msra.mxu0 %v8058_v39  ;;  %v9032_v39 = vld [vmem:[#allocation11 + $0x44c] sm:$0xf0]  ;;  %v9131_v27 = vld [vmem:[#allocation11 + $0x764] sm:$0xf0] }
 0xed9   :  { %4731 = vmatpush.bf16.msrb.mxu2 %v7778_v57  ;;  %4766 = vmatpush.bf16.msrb.mxu1 %v8046_v37  ;;  %v7986_v57 = vor.u32 %v9104_v48, %v7983_v54  ;;  %v7727_v37 = vld [vmem:[#allocation11 + $0x4d0] sm:$0xf0]  ;;  %v9033_v54 = vld [vmem:[#allocation11 + $0x454] sm:$0xf0]  ;;  %v8070_v35 = vor.u32 %v9131_v27, %v8069_v26  ;;  %v9051_v26 = vld [vmem:[#allocation11 + $0x4e4] sm:$0xf0] }
 0xeda   :  { %v7730_v41 = vor.u32 %v9040_v22, %v7727_v37  ;;  %v7663_v48 = vld [vmem:[#allocation11 + $0x450] sm:$0xf0]  ;;  %v7999_v37 = vld [vmem:[#allocation11 + $0x6e0] sm:$0xf0]  ;;  %v9043_v27 = vld [vmem:[#allocation11 + $0x4ac] sm:$0xf] }
 0xedb   :  { %v7666_v55 = vor.u32 %v9024_v50, %v7663_v48  ;;  %v7935_v48 = vld [vmem:[#allocation11 + $0x660] sm:$0xf0] }
 0xedc   :  { %4806 = vmatpush.bf16.msra.mxu0 %v7994_v60 }
 0xedd   :  { %4732 = vmatpush.bf16.msrb.mxu2 %v7714_v4  ;;  %4767 = vmatpush.bf16.msrb.mxu1 %v7982_v53  ;;  %v9089_v4 = vld [vmem:[#allocation11 + $0x61c] sm:$0xf]  ;;  %v7669_v53 = vld [vmem:[#allocation11 + $0x418] sm:$0xf] }
 0xede   :  { %v7930_v6 = vor.u32 %v9089_v4, %v7927_v5  ;;  %v7670_v56 = vor.u32 %v9033_v54, %v7669_v53  ;;  %v9320_v4 = vld [vmem:[%s10115_s13 + $0x1] ss:$0 sm:$0xff]  ;;  %v7941_v53 = vld [vmem:[#allocation11 + $0x628] sm:$0xf] }
 0xedf   :  { %v9099_v54 = vld [vmem:[#allocation11 + $0x664] sm:$0xf0] }
 0xee0   :  { %4807 = vmatpush.bf16.msra.mxu0 %v7930_v6 }
 0xee1   :  { %4733 = vmatpush.bf16.msrb.mxu2 %v7650_v46  ;;  %4768 = vmatpush.bf16.msrb.mxu1 %v7918_v15  ;;  %v9073_v46 = vld [vmem:[#allocation11 + $0x59c] sm:$0xf] }
 0xee5   :  { %4778 = vmatpush.bf16.msra.mxu2 %v8114_v28  ;;  %v7794_v28 = vor.u32 %v9056_v12, %v7791_v52  ;;  %v8063_v52 = vld [vmem:[#allocation11 + $0x760] sm:$0xf0] }
 0xee9   :  { %4779 = vmatpush.bf16.msra.mxu2 %v8050_v42  ;;  %v7734_v42 = vor.u32 %v9049_v40, %v7733_v38  ;;  %v8005_v38 = vld [vmem:[#allocation11 + $0x6a8] sm:$0xf] }
 0xeea   :  { %v9115_v40 = vld [vmem:[#allocation11 + $0x6e4] sm:$0xf0] }
 0xeed   :  { %4780 = vmatpush.bf16.msra.mxu2 %v7986_v57  ;;  %v9025_v57 = vld [vmem:[#allocation11 + $0x41c] sm:$0xf] }
 0xef1   :  { %4781 = vmatpush.bf16.msra.mxu2 %v7922_v2  ;;  %v9319_v2 = vld [vmem:[%s10114_s12 + $0x1] ss:$0 sm:$0xff] }
 0xf3b   :  { %v3878_v1 = vpop.xlane.xlu0 %3877 }
 0xf3c   :  { %v3879_v3 = vmul.f32 0.03125, %v3878_v1  ;;  %v9097_v1 = vld [vmem:[#allocation11 + $0x654] sm:$0xf0] }
 0xf3e   :  { %v3880_v7 = vsub.f32 %v10033_v49, %v3879_v3  ;;  %v7654_v49 = vor.u32 %v9031_v21, %v7653_v20  ;;  %v7926_v3 = vor.u32 %v9097_v1, %v7925_v0  ;;  %v7858_v20 = vor.u32 %v9072_v11, %v7855_v16  ;;  %v9138_v11 = vld [vmem:[#allocation11 + $0x7a4] sm:$0xf]  ;;  %v8133_v16 = vld [vmem:[#allocation11 + $0x7a8] sm:$0xf] }
 0xf3f   :  { %v7862_v21 = vor.u32 %v9081_v13, %v7861_v18  ;;  %v9147_v13 = vld [vmem:[#allocation11 + $0x7e4] sm:$0xf0] }
 0xf40   :  { %v10038_v8 = vmul.f32 %v9906_v9, %v3880_v7  ;;  %4746 = vmatpush.bf16.msrb.mxu3 %v7654_v49  ;;  %v7853_v7 = vld [vmem:[#allocation11 + $0x590] sm:$0xf]  ;;  %v7863_v49 = vld [vmem:[#allocation11 + $0x5d8] sm:$0xf0]  ;;  %4782 = vmatpush.bf16.msra.mxu2 %v7858_v20  ;;  %v9139_v20 = vld [vmem:[#allocation11 + $0x7ac] sm:$0xf] }
 0xf41   :  { %v7866_v24 = vor.u32 %v9073_v46, %v7863_v49 }
 0xf42   :  { %v3882_v10 = vmul.f32 %v10038_v8, %v10038_v8 }
 0xf43   :  { %4808 = vmatpush.bf16.msra.mxu0 %v7866_v24 }
 0xf44   :  { %3883 = vadd.xlane.f32.xlu2 %v3882_v10  ;;  %4791 = vmatpush.bf16.msra.mxu3 %v8118_v33  ;;  %v9080_v10 = vld [vmem:[#allocation11 + $0x5cc] sm:$0xf0]  ;;  %v7802_v33 = vor.u32 %v9057_v32, %v7799_v30  ;;  %v8062_v32 = vor.u32 %v9130_v25, %v8061_v62  ;;  %v9050_v62 = vld [vmem:[#allocation11 + $0x4dc] sm:$0xf0] }
 0xf45   :  { %v7854_v14 = vor.u32 %v9080_v10, %v7853_v7  ;;  %4783 = vmatpush.bf16.msra.mxu2 %v7794_v28  ;;  %v8125_v7 = vld [vmem:[#allocation11 + $0x7a0] sm:$0xf]  ;;  %v9123_v28 = vld [vmem:[#allocation11 + $0x72c] sm:$0xf] }
 0xf46   :  { %v9146_v10 = vld [vmem:[#allocation11 + $0x7dc] sm:$0xf0] }
 0xf47   :  { %4769 = vmatpush.bf16.msrb.mxu1 %v7854_v14  ;;  %4809 = vmatpush.bf16.msra.mxu0 %v7802_v33  ;;  %v8127_v14 = vld [vmem:[#allocation11 + $0x7e0] sm:$0xf0]  ;;  %v8126_v49 = vor.u32 %v9146_v10, %v8125_v7  ;;  %v7997_v33 = vld [vmem:[#allocation11 + $0x6a0] sm:$0xf] }
 0xf48   :  { %4792 = vmatpush.bf16.msra.mxu3 %v8054_v47  ;;  %v7661_v47 = vld [vmem:[#allocation11 + $0x410] sm:$0xf]  ;;  %v8130_v24 = vor.u32 %v9138_v11, %v8127_v14  ;;  %v7998_v43 = vor.u32 %v9114_v34, %v7997_v33  ;;  %v9058_v10 = vld [vmem:[#allocation11 + $0x524] sm:$0xf]  ;;  %v7813_v14 = vld [vmem:[#allocation11 + $0x528] sm:$0xf] }
 0xf49   :  { %4784 = vmatpush.bf16.msra.mxu2 %v7730_v41  ;;  %v7662_v51 = vor.u32 %v9032_v39, %v7661_v47  ;;  %v9107_v41 = vld [vmem:[#allocation11 + $0x6ac] sm:$0xf]  ;;  %v9098_v47 = vld [vmem:[#allocation11 + $0x65c] sm:$0xf0]  ;;  %v8006_v39 = vor.u32 %v9115_v40, %v8005_v38  ;;  %v7807_v11 = vld [vmem:[#allocation11 + $0x560] sm:$0xf0] }
 0xf4a   :  { %v9034_v33 = vld [vmem:[#allocation11 + $0x45c] sm:$0xf0]  ;;  %v9026_v34 = vld [vmem:[#allocation11 + $0x424] sm:$0xf]  ;;  %v9035_v38 = vld [vmem:[#allocation11 + $0x464] sm:$0xf0] }
 0xf4b   :  { %4770 = vmatpush.bf16.msrb.mxu1 %v7790_v23  ;;  %4810 = vmatpush.bf16.msra.mxu0 %v7738_v45  ;;  %v9122_v23 = vld [vmem:[#allocation11 + $0x724] sm:$0xf]  ;;  %v7933_v45 = vld [vmem:[#allocation11 + $0x620] sm:$0xf]  ;;  %v9027_v40 = vld [vmem:[#allocation11 + $0x42c] sm:$0xf] }
 0xf4c   :  { %4793 = vmatpush.bf16.msra.mxu3 %v7990_v58  ;;  %v7671_v58 = vld [vmem:[#allocation11 + $0x458] sm:$0xf0]  ;;  %v8066_v30 = vor.u32 %v9122_v23, %v8063_v52  ;;  %v7743_v23 = vld [vmem:[#allocation11 + $0x4e0] sm:$0xf0]  ;;  %v7749_v52 = vld [vmem:[#allocation11 + $0x4a8] sm:$0xf] }
 0xf4d   :  { %v7674_v59 = vor.u32 %v9025_v57, %v7671_v58  ;;  %4785 = vmatpush.bf16.msra.mxu2 %v7666_v55  ;;  %v9091_v55 = vld [vmem:[#allocation11 + $0x62c] sm:$0xf]  ;;  %v7934_v57 = vor.u32 %v9098_v47, %v7933_v45  ;;  %v8143_v45 = vld [vmem:[#allocation11 + $0x7f0] sm:$0xf0]  ;;  %v8149_v47 = vld [vmem:[#allocation11 + $0x7b8] sm:$0xf] }
 0xf4f   :  { %4771 = vmatpush.bf16.msrb.mxu1 %v7726_v36  ;;  %4811 = vmatpush.bf16.msra.mxu0 %v7674_v59  ;;  %v9106_v36 = vld [vmem:[#allocation11 + $0x6a4] sm:$0xf]  ;;  %v7869_v59 = vld [vmem:[#allocation11 + $0x5a0] sm:$0xf] }
 0xf50   :  { %4794 = vmatpush.bf16.msra.mxu3 %v7926_v3  ;;  %v8002_v44 = vor.u32 %v9106_v36, %v7999_v37  ;;  %v7685_v37 = vld [vmem:[#allocation11 + $0x428] sm:$0xf] }
 0xf53   :  { %4772 = vmatpush.bf16.msrb.mxu1 %v7662_v51  ;;  %v9090_v51 = vld [vmem:[#allocation11 + $0x624] sm:$0xf] }
 0xf54   :  { %4795 = vmatpush.bf16.msra.mxu3 %v7862_v21  ;;  %v8135_v21 = vld [vmem:[#allocation11 + $0x7e8] sm:$0xf0]  ;;  %v7938_v58 = vor.u32 %v9090_v51, %v7935_v48  ;;  %v9149_v51 = vld [vmem:[#allocation11 + $0x7f4] sm:$0xf0]  ;;  %v9141_v48 = vld [vmem:[#allocation11 + $0x7bc] sm:$0xf] }
 0xf55   :  { %v8138_v12 = vor.u32 %v9139_v20, %v8135_v21  ;;  %v7815_v20 = vld [vmem:[#allocation11 + $0x568] sm:$0xf0] }
 0xf58   :  { %4796 = vmatpush.bf16.msra.mxu3 %v7798_v29  ;;  %v8071_v29 = vld [vmem:[#allocation11 + $0x768] sm:$0xf0] }
 0xf59   :  { %v8074_v22 = vor.u32 %v9123_v28, %v8071_v29  ;;  %v7751_v28 = vld [vmem:[#allocation11 + $0x4e8] sm:$0xf0]  ;;  %v7677_v29 = vld [vmem:[#allocation11 + $0x420] sm:$0xf] }
 0xf5a   :  { %v7754_v36 = vor.u32 %v9043_v27, %v7751_v28  ;;  %v7959_v27 = vld [vmem:[#allocation11 + $0x678] sm:$0xf0] }
 0xf5c   :  { %4797 = vmatpush.bf16.msra.mxu3 %v7734_v42  ;;  %v8007_v42 = vld [vmem:[#allocation11 + $0x6e8] sm:$0xf0] }
 0xf5d   :  { %v8010_v50 = vor.u32 %v9107_v41, %v8007_v42  ;;  %v7687_v41 = vld [vmem:[#allocation11 + $0x468] sm:$0xf0]  ;;  %v8141_v42 = vld [vmem:[#allocation11 + $0x7b0] sm:$0xf] }
 0xf60   :  { %4798 = vmatpush.bf16.msra.mxu3 %v7670_v56  ;;  %v7943_v56 = vld [vmem:[#allocation11 + $0x668] sm:$0xf0] }
 0xfb7   :  { %v3884_v31 = vpop.xlane.xlu2 %3883 }
 0xfb8   :  { %v3885_v60 = vmul.f32 0.03125, %v3884_v31  ;;  %v9082_v31 = vld [vmem:[#allocation11 + $0x5dc] sm:$0xf0] }
 0xfba   :  { %v3886_v61 = vadd.f32 1e-05, %v3885_v60  ;;  %v7942_v60 = vor.u32 %v9099_v54, %v7941_v53  ;;  %v8151_v53 = vld [vmem:[#allocation11 + $0x7f8] sm:$0xf0]  ;;  %v7686_v54 = vor.u32 %v9035_v38, %v7685_v37  ;;  %v9085_v37 = vld [vmem:[#allocation11 + $0x5f4] sm:$0xf0] }
 0xfbb   :  { %v9077_v38 = vld [vmem:[#allocation11 + $0x5bc] sm:$0xf] }
 0xfbc   :  { %9361 = vrsqrt.f32 %v3886_v61  ;;  %vm3893_vm2 = vweird.f32 %v3886_v61 }
 0xfc2   :  { %v9362_v19 = vpop.eup %9361 }
 0xfc3   :  { %v3888_v17 = vmul.f32 %v9362_v19, %v3886_v61  ;;  %vm3894_vm1 = vweird.f32 %v9362_v19  ;;  %v7946_v61 = vor.u32 %v9091_v55, %v7943_v56  ;;  %v7690_v55 = vor.u32 %v9027_v40, %v7687_v41  ;;  %v7895_v40 = vld [vmem:[#allocation11 + $0x5f8] sm:$0xf0] }
 0xfc4   :  { %vm3895_vm3 = vmor %vm3893_vm2, %vm3894_vm1 }
 0xfc5   :  { %v3889_v15 = vmul.f32 %v9362_v19, %v3888_v17  ;;  %v7871_v17 = vld [vmem:[#allocation11 + $0x5e0] sm:$0xf0] }
 0xfc7   :  { %v3890_v63 = vmul.f32 0.5, %v3889_v15  ;;  %v7877_v15 = vld [vmem:[#allocation11 + $0x5a8] sm:$0xf] }
 0xfc9   :  { %v3891_v0 = vsub.f32 1.5, %v3890_v63  ;;  %v9083_v63 = vld [vmem:[#allocation11 + $0x5e4] sm:$0xf0] }
 0xfcb   :  { %v3892_v1 = vmul.f32 %v9362_v19, %v3891_v0  ;;  %v9075_v0 = vld [vmem:[#allocation11 + $0x5ac] sm:$0xf] }
 0xfcd   :  { %v3896_v3 = vsel %vm3895_vm3, %v9362_v19, %v3892_v1  ;;  %v9074_v19 = vld [vmem:[#allocation11 + $0x5a4] sm:$0xf]  ;;  %v7879_v1 = vld [vmem:[#allocation11 + $0x5e8] sm:$0xf0] }
 0xfce   :  { %v3897_v5 = vmul.f32 %v3896_v3, %v10038_v8  ;;  %v8134_v8 = vor.u32 %v9147_v13, %v8133_v16  ;;  %v7874_v3 = vor.u32 %v9074_v19, %v7871_v17  ;;  %v7882_v7 = vor.u32 %v9075_v0, %v7879_v1  ;;  %v9067_v16 = vld [vmem:[#allocation11 + $0x564] sm:$0xf0]  ;;  %v9059_v13 = vld [vmem:[#allocation11 + $0x52c] sm:$0xf]  ;;  %v8079_v19 = vld [vmem:[#allocation11 + $0x770] sm:$0xf0] }
 0xfcf   :  { %v7814_v25 = vor.u32 %v9067_v16, %v7813_v14  ;;  %v8085_v17 = vld [vmem:[#allocation11 + $0x738] sm:$0xf]  ;;  %v8087_v0 = vld [vmem:[#allocation11 + $0x778] sm:$0xf0] }
 0xfd0   :  { %v3901_v6 = vmul.f32 %v9319_v2, %v3897_v5  ;;  %v7870_v2 = vor.u32 %v9082_v31, %v7869_v59  ;;  %v9066_v5 = vld [vmem:[#allocation11 + $0x55c] sm:$0xf0]  ;;  %v9132_v59 = vld [vmem:[#allocation11 + $0x76c] sm:$0xf0]  ;;  %v8150_v31 = vor.u32 %v9149_v51, %v8149_v47  ;;  %v9117_v14 = vld [vmem:[#allocation11 + $0x6f4] sm:$0xf0]  ;;  %v7898_v47 = vor.u32 %v9077_v38, %v7895_v40 }
 0xfd1   :  { %v9109_v16 = vld [vmem:[#allocation11 + $0x6bc] sm:$0xf]  ;;  %v7829_v51 = vld [vmem:[#allocation11 + $0x538] sm:$0xf]  ;;  %v9152_v38 = vld [vmem:[#allocation14 + $0x410] sm:$0xff] }
 0xfd2   :  { %v10049_v18 = vadd.f32 %v9320_v4, %v3901_v6  ;;  %v7805_v4 = vld [vmem:[#allocation11 + $0x520] sm:$0xf]  ;;  %v7878_v6 = vor.u32 %v9083_v63, %v7877_v15  ;;  %v9133_v15 = vld [vmem:[#allocation11 + $0x774] sm:$0xf0]  ;;  %v9125_v63 = vld [vmem:[#allocation11 + $0x73c] sm:$0xf] }
 0xfd3   :  { %v7806_v21 = vor.u32 %v9066_v5, %v7805_v4  ;;  %v9116_v4 = vld [vmem:[#allocation11 + $0x6ec] sm:$0xf0]  ;;  %v8086_v5 = vor.u32 %v9133_v15, %v8085_v17  ;;  %v9053_v17 = vld [vmem:[#allocation11 + $0x4f4] sm:$0xf0]  ;;  %v9045_v15 = vld [vmem:[#allocation11 + $0x4bc] sm:$0xf] }
 0xfd4   :  { %v10053_v46 = vpack.c.bf16 %v10049_v18, %v10049_v18  ;;  %v9176_v40 = vld [vmem:[#allocation14 + $0x4d0] sm:$0xff] }
 0xfd6   :  { %4721 = vmatmul.bf16.vlgmr.msra.gmra.mxu1 %v10053_v46  ;;  %4734 = vmatmul.bf16.vlgmr.msrb.gmra.mxu2 %v10053_v46 }
 0xfd7   :  { %4747 = vmatmul.bf16.vlgmr.msrb.gmra.mxu3 %v10053_v46  ;;  %4760 = vmatmul.bf16.vlgmr.msrb.gmra.mxu0 %v10053_v46 }
 0xfd8   :  { %4817 = vmatpush.bf16.msra.mxu1 %v8126_v49  ;;  %4830 = vmatpush.bf16.msrb.mxu2 %v8130_v24  ;;  %v7810_v49 = vor.u32 %v9058_v10, %v7807_v11  ;;  %v7741_v24 = vld [vmem:[#allocation11 + $0x4a0] sm:$0xf]  ;;  %v8015_v10 = vld [vmem:[#allocation11 + $0x6f0] sm:$0xf0]  ;;  %v8021_v11 = vld [vmem:[#allocation11 + $0x6b8] sm:$0xf] }
 0xfd9   :  { %4843 = vmatpush.bf16.msrb.mxu3 %v8134_v8  ;;  %4856 = vmatpush.bf16.msrb.mxu0 %v8138_v12  ;;  %v7818_v8 = vor.u32 %v9059_v13, %v7815_v20  ;;  %v9042_v12 = vld [vmem:[#allocation11 + $0x4a4] sm:$0xf]  ;;  %v8023_v13 = vld [vmem:[#allocation11 + $0x6f8] sm:$0xf0] }
 0xfdc   :  { %4818 = vmatpush.bf16.msra.mxu1 %v8062_v32  ;;  %4831 = vmatpush.bf16.msrb.mxu2 %v8066_v30  ;;  %v7742_v32 = vor.u32 %v9050_v62, %v7741_v24  ;;  %v7746_v30 = vor.u32 %v9042_v12, %v7743_v23  ;;  %v9100_v24 = vld [vmem:[#allocation11 + $0x66c] sm:$0xf0]  ;;  %v8022_v62 = vor.u32 %v9117_v14, %v8021_v11  ;;  %v7951_v12 = vld [vmem:[#allocation11 + $0x670] sm:$0xf0]  ;;  %v7957_v23 = vld [vmem:[#allocation11 + $0x638] sm:$0xf] }
 0xfdd   :  { %4844 = vmatpush.bf16.msrb.mxu3 %v8070_v35  ;;  %4857 = vmatpush.bf16.msrb.mxu0 %v8074_v22  ;;  %v7679_v35 = vld [vmem:[#allocation11 + $0x460] sm:$0xf0]  ;;  %v7750_v22 = vor.u32 %v9051_v26, %v7749_v52  ;;  %v9101_v52 = vld [vmem:[#allocation11 + $0x674] sm:$0xf0]  ;;  %v9093_v26 = vld [vmem:[#allocation11 + $0x63c] sm:$0xf] }
 0xfde   :  { %v9037_v11 = vld [vmem:[#allocation11 + $0x474] sm:$0xf0]  ;;  %v9029_v14 = vld [vmem:[#allocation11 + $0x43c] sm:$0xf] }
 0xfe0   :  { %4819 = vmatpush.bf16.msra.mxu1 %v7998_v43  ;;  %4832 = vmatpush.bf16.msrb.mxu2 %v8002_v44  ;;  %v9148_v43 = vld [vmem:[#allocation11 + $0x7ec] sm:$0xf0]  ;;  %v9140_v44 = vld [vmem:[#allocation11 + $0x7b4] sm:$0xf] }
 0xfe1   :  { %4845 = vmatpush.bf16.msrb.mxu3 %v8006_v39  ;;  %4858 = vmatpush.bf16.msrb.mxu0 %v8010_v50  ;;  %v7678_v39 = vor.u32 %v9034_v33, %v7677_v29  ;;  %v7682_v50 = vor.u32 %v9026_v34, %v7679_v35  ;;  %v8142_v56 = vor.u32 %v9148_v43, %v8141_v42  ;;  %v9076_v35 = vld [vmem:[#allocation11 + $0x5b4] sm:$0xf]  ;;  %v7821_v43 = vld [vmem:[#allocation11 + $0x530] sm:$0xf] }
 0xfe2   :  { %v7958_v33 = vor.u32 %v9101_v52, %v7957_v23  ;;  %v7962_v34 = vor.u32 %v9093_v26, %v7959_v27  ;;  %v9180_v23 = vld [vmem:[#allocation14 + $0x4f0] sm:$0xff]  ;;  %v9155_v27 = vld [vmem:[#allocation14 + $0x428] sm:$0xff] }
 0xfe3   :  { %v9164_v52 = vld [vmem:[#allocation14 + $0x470] sm:$0xff] }
 0xfe4   :  { %4820 = vmatpush.bf16.msra.mxu1 %v7934_v57  ;;  %4833 = vmatpush.bf16.msrb.mxu2 %v7938_v58  ;;  %v8146_v57 = vor.u32 %v9140_v44, %v8143_v45  ;;  %v8077_v58 = vld [vmem:[#allocation11 + $0x730] sm:$0xf] }
 0xfe5   :  { %4846 = vmatpush.bf16.msrb.mxu3 %v7942_v60  ;;  %4859 = vmatpush.bf16.msrb.mxu0 %v7946_v61  ;;  %v8154_v60 = vor.u32 %v9141_v48, %v8151_v53  ;;  %v9124_v61 = vld [vmem:[#allocation11 + $0x734] sm:$0xf]  ;;  %v8078_v1 = vor.u32 %v9132_v59, %v8077_v58  ;;  %v9068_v44 = vld [vmem:[#allocation11 + $0x56c] sm:$0xf0]  ;;  %v9069_v48 = vld [vmem:[#allocation11 + $0x574] sm:$0xf0] }
 0xfe6   :  { %4773 = vmatmul.bf16.vlgmr.msrb.gmra.mxu1 %v10053_v46  ;;  %4786 = vmatmul.bf16.vlgmr.msra.gmra.mxu2 %v10053_v46  ;;  %v9061_v53 = vld [vmem:[#allocation11 + $0x53c] sm:$0xf]  ;;  %v9052_v58 = vld [vmem:[#allocation11 + $0x4ec] sm:$0xf0]  ;;  %v7830_v59 = vor.u32 %v9069_v48, %v7829_v51 }
 0xfe7   :  { %4799 = vmatmul.bf16.vlgmr.msra.gmra.mxu3 %v10053_v46  ;;  %4812 = vmatmul.bf16.vlgmr.msra.gmra.mxu0 %v10053_v46  ;;  %v9172_v26 = vld [vmem:[#allocation14 + $0x4b0] sm:$0xff]  ;;  %v9189_v51 = vld [vmem:[#allocation14 + $0x538] sm:$0xff] }
 0xfe8   :  { %4821 = vmatpush.bf16.msra.mxu1 %v7870_v2  ;;  %4834 = vmatpush.bf16.msrb.mxu2 %v7874_v3  ;;  %v8082_v2 = vor.u32 %v9124_v61, %v8079_v19  ;;  %v8013_v3 = vld [vmem:[#allocation11 + $0x6b0] sm:$0xf]  ;;  %v7759_v61 = vld [vmem:[#allocation11 + $0x4f0] sm:$0xf0]  ;;  %v7765_v19 = vld [vmem:[#allocation11 + $0x4b8] sm:$0xf] }
 0xfe9   :  { %4847 = vmatpush.bf16.msrb.mxu3 %v7878_v6  ;;  %4860 = vmatpush.bf16.msrb.mxu0 %v7882_v7  ;;  %v8090_v6 = vor.u32 %v9125_v63, %v8087_v0  ;;  %v9108_v7 = vld [vmem:[#allocation11 + $0x6b4] sm:$0xf]  ;;  %v8014_v20 = vor.u32 %v9116_v4, %v8013_v3  ;;  %v7767_v63 = vld [vmem:[#allocation11 + $0x4f8] sm:$0xf0]  ;;  %v9036_v3 = vld [vmem:[#allocation11 + $0x46c] sm:$0xf0]  ;;  %v7766_v4 = vor.u32 %v9053_v17, %v7765_v19 }
 0xfea   :  { %v9213_v48 = vld [vmem:[#allocation14 + $0x5f8] sm:$0xff]  ;;  %v9195_v19 = vld [vmem:[#allocation14 + $0x568] sm:$0xff] }
 0xfeb   :  { %v9203_v17 = vld [vmem:[#allocation14 + $0x5a8] sm:$0xff] }
 0xfec   :  { %4822 = vmatpush.bf16.msra.mxu1 %v7806_v21  ;;  %4835 = vmatpush.bf16.msrb.mxu2 %v7810_v49  ;;  %v8018_v21 = vor.u32 %v9108_v7, %v8015_v10  ;;  %v7949_v49 = vld [vmem:[#allocation11 + $0x630] sm:$0xf]  ;;  %v7695_v7 = vld [vmem:[#allocation11 + $0x470] sm:$0xf0]  ;;  %v7701_v10 = vld [vmem:[#allocation11 + $0x438] sm:$0xf] }
 0xfed   :  { %4848 = vmatpush.bf16.msrb.mxu3 %v7814_v25  ;;  %4861 = vmatpush.bf16.msrb.mxu0 %v7818_v8  ;;  %v8026_v25 = vor.u32 %v9109_v16, %v8023_v13  ;;  %v9092_v8 = vld [vmem:[#allocation11 + $0x634] sm:$0xf]  ;;  %v7950_v28 = vor.u32 %v9100_v24, %v7949_v49  ;;  %v7703_v16 = vld [vmem:[#allocation11 + $0x478] sm:$0xf0] }
 0xfee   :  { %v7954_v29 = vor.u32 %v9092_v8, %v7951_v12  ;;  %v7706_v49 = vor.u32 %v9029_v14, %v7703_v16  ;;  %v9157_v24 = vld [vmem:[#allocation14 + $0x438] sm:$0xff]  ;;  %v9156_v12 = vld [vmem:[#allocation14 + $0x430] sm:$0xff]  ;;  %v9183_v14 = vld [vmem:[#allocation14 + $0x508] sm:$0xff] }
 0xfef   :  { %v9173_v8 = vld [vmem:[#allocation14 + $0x4b8] sm:$0xff]  ;;  %v9207_v16 = vld [vmem:[#allocation14 + $0x5c8] sm:$0xff] }
 0xff0   :  { %4823 = vmatpush.bf16.msra.mxu1 %v7742_v32  ;;  %4836 = vmatpush.bf16.msrb.mxu2 %v7746_v30  ;;  %v7885_v32 = vld [vmem:[#allocation11 + $0x5b0] sm:$0xf] }
 0xff1   :  { %4849 = vmatpush.bf16.msrb.mxu3 %v7750_v22  ;;  %4862 = vmatpush.bf16.msrb.mxu0 %v7754_v36  ;;  %v9084_v30 = vld [vmem:[#allocation11 + $0x5ec] sm:$0xf0]  ;;  %v7887_v22 = vld [vmem:[#allocation11 + $0x5f0] sm:$0xf0]  ;;  %v7893_v36 = vld [vmem:[#allocation11 + $0x5b8] sm:$0xf] }
 0xff2   :  { %v7886_v41 = vor.u32 %v9084_v30, %v7885_v32  ;;  %v7890_v42 = vor.u32 %v9076_v35, %v7887_v22  ;;  %v7894_v45 = vor.u32 %v9085_v37, %v7893_v36  ;;  %v9171_v32 = vld [vmem:[#allocation14 + $0x4a8] sm:$0xff]  ;;  %v9154_v30 = vld [vmem:[#allocation14 + $0x420] sm:$0xff]  ;;  %v9153_v35 = vld [vmem:[#allocation14 + $0x418] sm:$0xff] }
 0xff3   :  { %v9177_v22 = vld [vmem:[#allocation14 + $0x4d8] sm:$0xff] }
 0xff4   :  { %4824 = vmatpush.bf16.msra.mxu1 %v7678_v39  ;;  %4837 = vmatpush.bf16.msrb.mxu2 %v7682_v50  ;;  %v9060_v39 = vld [vmem:[#allocation11 + $0x534] sm:$0xf]  ;;  %v9161_v36 = vld [vmem:[#allocation14 + $0x458] sm:$0xff] }
 0xff5   :  { %4850 = vmatpush.bf16.msrb.mxu3 %v7686_v54  ;;  %4863 = vmatpush.bf16.msrb.mxu0 %v7690_v55  ;;  %v7823_v50 = vld [vmem:[#allocation11 + $0x570] sm:$0xf0]  ;;  %v7831_v54 = vld [vmem:[#allocation11 + $0x578] sm:$0xf0]  ;;  %v7822_v55 = vor.u32 %v9068_v44, %v7821_v43  ;;  %v9151_v43 = vld [vmem:[#allocation14 + $0x408] sm:$0xff] }
 0xff6   :  { %v9169_v37 = vld [vmem:[#allocation14 + $0x498] sm:$0xff]  ;;  %v9175_v44 = vld [vmem:[#allocation14 + $0x4c8] sm:$0xff] }
 0xff7   :  { %4825 = vmatmul.bf16.vlgmr.msra.gmra.mxu1 %v10053_v46  ;;  %4838 = vmatmul.bf16.vlgmr.msrb.gmra.mxu2 %v10053_v46 }
 0xff8   :  { %4869 = vmatpush.bf16.msrb.mxu1 %v8142_v56  ;;  %4882 = vmatpush.bf16.msra.mxu2 %v8146_v57  ;;  %v7826_v56 = vor.u32 %v9060_v39, %v7823_v50  ;;  %v7757_v57 = vld [vmem:[#allocation11 + $0x4b0] sm:$0xf]  ;;  %v9150_v39 = vld [vmem:[#allocation14 + $0x400] sm:$0xff] }
 0xff9   :  { %4895 = vmatpush.bf16.msra.mxu3 %v8150_v31  ;;  %4908 = vmatpush.bf16.msra.mxu0 %v8154_v60  ;;  %v7834_v31 = vor.u32 %v9061_v53, %v7831_v54  ;;  %v9044_v60 = vld [vmem:[#allocation11 + $0x4b4] sm:$0xf]  ;;  %v7758_v0 = vor.u32 %v9052_v58, %v7757_v57  ;;  %v9174_v50 = vld [vmem:[#allocation14 + $0x4c0] sm:$0xff] }
 0xffa   :  { %4851 = vmatmul.bf16.vlgmr.msrb.gmra.mxu3 %v10053_v46  ;;  %4864 = vmatmul.bf16.vlgmr.msrb.gmra.mxu0 %v10053_v46  ;;  %v9158_v53 = vld [vmem:[#allocation14 + $0x440] sm:$0xff]  ;;  %v9188_v57 = vld [vmem:[#allocation14 + $0x530] sm:$0xff] }
 0xffb   :  { %v9166_v54 = vld [vmem:[#allocation14 + $0x480] sm:$0xff]  ;;  %v9212_v58 = vld [vmem:[#allocation14 + $0x5f0] sm:$0xff] }
 0xffc   :  { %4870 = vmatpush.bf16.msrb.mxu1 %v8078_v1  ;;  %4883 = vmatpush.bf16.msra.mxu2 %v8082_v2  ;;  %v7762_v1 = vor.u32 %v9044_v60, %v7759_v61  ;;  %v7693_v2 = vld [vmem:[#allocation11 + $0x430] sm:$0xf]  ;;  %v9187_v60 = vld [vmem:[#allocation14 + $0x528] sm:$0xff] }
 0xffd   :  { %4896 = vmatpush.bf16.msra.mxu3 %v8086_v5  ;;  %4909 = vmatpush.bf16.msra.mxu0 %v8090_v6  ;;  %v7770_v5 = vor.u32 %v9045_v15, %v7767_v63  ;;  %v9028_v6 = vld [vmem:[#allocation11 + $0x434] sm:$0xf]  ;;  %v7694_v13 = vor.u32 %v9036_v3, %v7693_v2  ;;  %v9211_v61 = vld [vmem:[#allocation14 + $0x5e8] sm:$0xff]  ;;  %v9186_v15 = vld [vmem:[#allocation14 + $0x520] sm:$0xff] }
 0xffe   :  { %v9210_v63 = vld [vmem:[#allocation14 + $0x5e0] sm:$0xff]  ;;  %v9185_v2 = vld [vmem:[#allocation14 + $0x518] sm:$0xff] }
 0xfff   :  { %v9209_v3 = vld [vmem:[#allocation14 + $0x5d8] sm:$0xff] }
0x1000   :  { %4871 = vmatpush.bf16.msrb.mxu1 %v8014_v20  ;;  %4884 = vmatpush.bf16.msra.mxu2 %v8018_v21  ;;  %v7698_v20 = vor.u32 %v9028_v6, %v7695_v7  ;;  %v7702_v21 = vor.u32 %v9037_v11, %v7701_v10  ;;  %v9184_v6 = vld [vmem:[#allocation14 + $0x510] sm:$0xff] }
0x1001   :  { %4897 = vmatpush.bf16.msra.mxu3 %v8022_v62  ;;  %4910 = vmatpush.bf16.msra.mxu0 %v8026_v25  ;;  %v9181_v62 = vld [vmem:[#allocation14 + $0x4f8] sm:$0xff]  ;;  %v9208_v7 = vld [vmem:[#allocation14 + $0x5d0] sm:$0xff] }
0x1002   :  { %v9165_v25 = vld [vmem:[#allocation14 + $0x478] sm:$0xff]  ;;  %v9192_v10 = vld [vmem:[#allocation14 + $0x550] sm:$0xff] }
0x1003   :  { %v9200_v11 = vld [vmem:[#allocation14 + $0x590] sm:$0xff] }
0x1004   :  { %4872 = vmatpush.bf16.msrb.mxu1 %v7950_v28  ;;  %4885 = vmatpush.bf16.msra.mxu2 %v7954_v29  ;;  %v9179_v28 = vld [vmem:[#allocation14 + $0x4e8] sm:$0xff] }
0x1005   :  { %4898 = vmatpush.bf16.msra.mxu3 %v7958_v33  ;;  %4911 = vmatpush.bf16.msra.mxu0 %v7962_v34  ;;  %v9163_v29 = vld [vmem:[#allocation14 + $0x468] sm:$0xff]  ;;  %v9178_v33 = vld [vmem:[#allocation14 + $0x4e0] sm:$0xff] }
0x1006   :  { %v9162_v34 = vld [vmem:[#allocation14 + $0x460] sm:$0xff] }
0x1008   :  { %4873 = vmatpush.bf16.msrb.mxu1 %v7886_v41  ;;  %4886 = vmatpush.bf16.msra.mxu2 %v7890_v42  ;;  %v9160_v41 = vld [vmem:[#allocation14 + $0x450] sm:$0xff] }
0x1009   :  { %4899 = vmatpush.bf16.msra.mxu3 %v7894_v45  ;;  %4912 = vmatpush.bf16.msra.mxu0 %v7898_v47  ;;  %v9168_v42 = vld [vmem:[#allocation14 + $0x490] sm:$0xff]  ;;  %v9159_v45 = vld [vmem:[#allocation14 + $0x448] sm:$0xff] }
0x100a   :  { %v9167_v47 = vld [vmem:[#allocation14 + $0x488] sm:$0xff] }
0x100c   :  { %4874 = vmatpush.bf16.msrb.mxu1 %v7822_v55  ;;  %4887 = vmatpush.bf16.msra.mxu2 %v7826_v56  ;;  %v9197_v55 = vld [vmem:[#allocation14 + $0x578] sm:$0xff] }
0x100d   :  { %4900 = vmatpush.bf16.msra.mxu3 %v7830_v59  ;;  %4913 = vmatpush.bf16.msra.mxu0 %v7834_v31  ;;  %v9205_v56 = vld [vmem:[#allocation14 + $0x5b8] sm:$0xff]  ;;  %v9196_v59 = vld [vmem:[#allocation14 + $0x570] sm:$0xff] }
0x100e   :  { %v9204_v31 = vld [vmem:[#allocation14 + $0x5b0] sm:$0xff] }
0x1010   :  { %4875 = vmatpush.bf16.msrb.mxu1 %v7758_v0  ;;  %4888 = vmatpush.bf16.msra.mxu2 %v7762_v1  ;;  %v9194_v0 = vld [vmem:[#allocation14 + $0x560] sm:$0xff] }
0x1011   :  { %4901 = vmatpush.bf16.msra.mxu3 %v7766_v4  ;;  %4914 = vmatpush.bf16.msra.mxu0 %v7770_v5  ;;  %v9202_v1 = vld [vmem:[#allocation14 + $0x5a0] sm:$0xff]  ;;  %v9193_v4 = vld [vmem:[#allocation14 + $0x558] sm:$0xff] }
0x1012   :  { %v9201_v5 = vld [vmem:[#allocation14 + $0x598] sm:$0xff] }
0x1014   :  { %4876 = vmatpush.bf16.msrb.mxu1 %v7694_v13  ;;  %4889 = vmatpush.bf16.msra.mxu2 %v7698_v20  ;;  %v9191_v13 = vld [vmem:[#allocation14 + $0x548] sm:$0xff] }
0x1015   :  { %4902 = vmatpush.bf16.msra.mxu3 %v7702_v21  ;;  %4915 = vmatpush.bf16.msra.mxu0 %v7706_v49  ;;  %v9199_v20 = vld [vmem:[#allocation14 + $0x588] sm:$0xff]  ;;  %v9182_v21 = vld [vmem:[#allocation14 + $0x500] sm:$0xff] }
0x1016   :  { %v9206_v49 = vld [vmem:[#allocation14 + $0x5c0] sm:$0xff] }
0x1017   :  { %4877 = vmatmul.bf16.vlgmr.msrb.gmra.mxu1 %v10053_v46  ;;  %4890 = vmatmul.bf16.vlgmr.msra.gmra.mxu2 %v10053_v46 }
0x1018   :  { %5983 = vmatpush.bf16.msra.mxu1 %v9157_v24  ;;  %4903 = vmatmul.bf16.vlgmr.msra.gmra.mxu3 %v10053_v46  ;;  %v9190_v24 = vld [vmem:[#allocation14 + $0x540] sm:$0xff] }
0x1019   :  { %6022 = vmatpush.bf16.msrb.mxu0 %v9181_v62  ;;  %5996 = vmatpush.bf16.msrb.mxu2 %v9165_v25  ;;  %v9198_v62 = vld [vmem:[#allocation14 + $0x580] sm:$0xff]  ;;  %v10071_v25 = vld [vmem:[#allocation13 + $0x10] sm:$0xff] }
0x101a   :  { %4916 = vmatmul.bf16.vlgmr.msra.gmra.mxu0 %v10053_v46  ;;  %6009 = vmatpush.bf16.msrb.mxu3 %v9173_v8  ;;  %v9170_v46 = vld [vmem:[#allocation14 + $0x4a0] sm:$0xff]  ;;  %v4041_v8 = vperm.slane %v10071_v25, 0 }
0x101c   :  { %5984 = vmatpush.bf16.msra.mxu1 %v9156_v12  ;;  %v4044_v12 = vperm.slane %v10071_v25, 3 }
0x101d   :  { %6023 = vmatpush.bf16.msrb.mxu0 %v9180_v23  ;;  %5997 = vmatpush.bf16.msrb.mxu2 %v9164_v52 }
0x101e   :  { %6010 = vmatpush.bf16.msrb.mxu3 %v9172_v26 }
0x1020   :  { %5985 = vmatpush.bf16.msra.mxu1 %v9155_v27 }
0x1021   :  { %6024 = vmatpush.bf16.msrb.mxu0 %v9179_v28  ;;  %5998 = vmatpush.bf16.msrb.mxu2 %v9163_v29  ;;  %v4042_v29 = vperm.slane %v10071_v25, 1 }
0x1022   :  { %6011 = vmatpush.bf16.msrb.mxu3 %v9171_v32 }
0x1024   :  { %5986 = vmatpush.bf16.msra.mxu1 %v9154_v30  ;;  %v4043_v30 = vperm.slane %v10071_v25, 2 }
0x1025   :  { %6025 = vmatpush.bf16.msrb.mxu0 %v9178_v33  ;;  %5999 = vmatpush.bf16.msrb.mxu2 %v9162_v34  ;;  %v9221_v33 = vld [vmem:[#allocation14 + $0x638] sm:$0xff] }
0x1026   :  { %6012 = vmatpush.bf16.msrb.mxu3 %v9170_v46  ;;  %v9245_v46 = vld [vmem:[#allocation14 + $0x6f8] sm:$0xff] }
0x1028   :  { %5987 = vmatpush.bf16.msra.mxu1 %v9153_v35 }
0x1029   :  { %6026 = vmatpush.bf16.msrb.mxu0 %v9177_v22  ;;  %6000 = vmatpush.bf16.msrb.mxu2 %v9161_v36 }
0x102a   :  { %6013 = vmatpush.bf16.msrb.mxu3 %v9169_v37 }
0x102c   :  { %5988 = vmatpush.bf16.msra.mxu1 %v9152_v38 }
0x102d   :  { %6027 = vmatpush.bf16.msrb.mxu0 %v9176_v40  ;;  %6001 = vmatpush.bf16.msrb.mxu2 %v9160_v41  ;;  %v9220_v41 = vld [vmem:[#allocation14 + $0x630] sm:$0xff] }
0x102e   :  { %6014 = vmatpush.bf16.msrb.mxu3 %v9168_v42 }
0x1030   :  { %5989 = vmatpush.bf16.msra.mxu1 %v9151_v43 }
0x1031   :  { %6028 = vmatpush.bf16.msrb.mxu0 %v9175_v44  ;;  %6002 = vmatpush.bf16.msrb.mxu2 %v9159_v45  ;;  %v9244_v44 = vld [vmem:[#allocation14 + $0x6f0] sm:$0xff] }
0x1032   :  { %6015 = vmatpush.bf16.msrb.mxu3 %v9167_v47  ;;  %v9229_v47 = vld [vmem:[#allocation14 + $0x678] sm:$0xff] }
0x1034   :  { %5990 = vmatpush.bf16.msra.mxu1 %v9150_v39 }
0x1035   :  { %6029 = vmatpush.bf16.msrb.mxu0 %v9174_v50  ;;  %6003 = vmatpush.bf16.msrb.mxu2 %v9158_v53  ;;  %v9237_v50 = vld [vmem:[#allocation14 + $0x6b8] sm:$0xff]  ;;  %v9243_v53 = vld [vmem:[#allocation14 + $0x6e8] sm:$0xff] }
0x1036   :  { %6016 = vmatpush.bf16.msrb.mxu3 %v9166_v54  ;;  %v4045_v54 = vperm.slane %v10071_v25, 4 }
0x1038   :  { %6035 = vmatpush.bf16.msrb.mxu1 %v9189_v51 }
0x1039   :  { %6074 = vmatpush.bf16.msra.mxu0 %v9213_v48  ;;  %6048 = vmatpush.bf16.msra.mxu2 %v9197_v55  ;;  %v9219_v48 = vld [vmem:[#allocation14 + $0x628] sm:$0xff] }
0x103a   :  { %6061 = vmatpush.bf16.msra.mxu3 %v9205_v56  ;;  %v4048_v56 = vperm.slane %v10071_v25, 7 }
0x103c   :  { %6036 = vmatpush.bf16.msrb.mxu1 %v9188_v57  ;;  %v9228_v57 = vld [vmem:[#allocation14 + $0x670] sm:$0xff] }
0x103d   :  { %6075 = vmatpush.bf16.msra.mxu0 %v9212_v58  ;;  %6049 = vmatpush.bf16.msra.mxu2 %v9196_v59  ;;  %v9236_v59 = vld [vmem:[#allocation14 + $0x6b0] sm:$0xff] }
0x103e   :  { %6062 = vmatpush.bf16.msra.mxu3 %v9204_v31 }
0x1040   :  { %6037 = vmatpush.bf16.msrb.mxu1 %v9187_v60  ;;  %v9218_v60 = vld [vmem:[#allocation14 + $0x620] sm:$0xff] }
0x1041   :  { %6076 = vmatpush.bf16.msra.mxu0 %v9211_v61  ;;  %6050 = vmatpush.bf16.msra.mxu2 %v9195_v19 }
0x1042   :  { %6063 = vmatpush.bf16.msra.mxu3 %v9203_v17  ;;  %v9242_v17 = vld [vmem:[#allocation14 + $0x6e0] sm:$0xff] }
0x1044   :  { %6038 = vmatpush.bf16.msrb.mxu1 %v9186_v15 }
0x1045   :  { %6077 = vmatpush.bf16.msra.mxu0 %v9210_v63  ;;  %6051 = vmatpush.bf16.msra.mxu2 %v9194_v0  ;;  %v9227_v63 = vld [vmem:[#allocation14 + $0x668] sm:$0xff] }
0x1046   :  { %6064 = vmatpush.bf16.msra.mxu3 %v9202_v1  ;;  %v9235_v1 = vld [vmem:[#allocation14 + $0x6a8] sm:$0xff] }
0x1048   :  { %6039 = vmatpush.bf16.msrb.mxu1 %v9185_v2  ;;  %v4046_v2 = vperm.slane %v10071_v25, 5 }
0x1049   :  { %6078 = vmatpush.bf16.msra.mxu0 %v9209_v3  ;;  %6052 = vmatpush.bf16.msra.mxu2 %v9193_v4  ;;  %v4047_v4 = vperm.slane %v10071_v25, 6 }
0x104a   :  { %6065 = vmatpush.bf16.msra.mxu3 %v9201_v5  ;;  %v9217_v5 = vld [vmem:[#allocation14 + $0x618] sm:$0xff] }
0x104c   :  { %6040 = vmatpush.bf16.msrb.mxu1 %v9184_v6 }
0x104d   :  { %6079 = vmatpush.bf16.msra.mxu0 %v9208_v7  ;;  %6053 = vmatpush.bf16.msra.mxu2 %v9192_v10  ;;  %v9241_v7 = vld [vmem:[#allocation14 + $0x6d8] sm:$0xff] }
0x104e   :  { %6066 = vmatpush.bf16.msra.mxu3 %v9200_v11 }
0x1050   :  { %6041 = vmatpush.bf16.msrb.mxu1 %v9183_v14  ;;  %v9226_v14 = vld [vmem:[#allocation14 + $0x660] sm:$0xff] }
0x1051   :  { %6080 = vmatpush.bf16.msra.mxu0 %v9207_v16  ;;  %6054 = vmatpush.bf16.msra.mxu2 %v9191_v13 }
0x1052   :  { %6067 = vmatpush.bf16.msra.mxu3 %v9199_v20  ;;  %v9234_v20 = vld [vmem:[#allocation14 + $0x6a0] sm:$0xff] }
0x1053   :  { %v4722_v23 = vpop.f32.mrf.mxu1 }
0x1054   :  { %6042 = vmatpush.bf16.msrb.mxu1 %v9182_v21  ;;  %v4723_v52 = vadd.f32 %v4722_v23, %v4041_v8  ;;  %v4761_v26 = vpop.f32.mrf.mxu0  ;;  %v9240_v8 = vld [vmem:[#allocation14 + $0x6d0] sm:$0xff]  ;;  %v9225_v23 = vld [vmem:[#allocation14 + $0x658] sm:$0xff] }
0x1055   :  { %6081 = vmatpush.bf16.msra.mxu0 %v9206_v49  ;;  %6055 = vmatpush.bf16.msra.mxu2 %v9190_v24  ;;  %v4762_v27 = vadd.f32 %v4761_v26, %v4044_v12  ;;  %v9216_v24 = vld [vmem:[#allocation14 + $0x610] sm:$0xff]  ;;  %v9233_v26 = vld [vmem:[#allocation14 + $0x698] sm:$0xff] }
0x1056   :  { %6068 = vmatpush.bf16.msra.mxu3 %v9198_v62  ;;  %v4921_v28 = vmax.f32 %v4723_v52, 0.0 }
0x1057   :  { %v4924_v32 = vmax.f32 %v4762_v27, 0.0 }
0x1058   :  { %v4937_v34 = vpack.c.bf16 %v4921_v28, %v4921_v28  ;;  %v9215_v28 = vld [vmem:[#allocation14 + $0x608] sm:$0xff] }
0x1059   :  { %v4940_v35 = vpack.c.bf16 %v4924_v32, %v4924_v32  ;;  %v4735_v22 = vpop.f32.mrf.mxu2  ;;  %v9239_v32 = vld [vmem:[#allocation14 + $0x6c8] sm:$0xff] }
0x105a   :  { %v4736_v36 = vadd.f32 %v4735_v22, %v4042_v29  ;;  %v4748_v37 = vpop.f32.mrf.mxu3  ;;  %5991 = vmatmul.bf16.vlgmr.msra.gmra.mxu1 %v4937_v34  ;;  %v10081_v29 = vld [vmem:[#allocation13 + $0x18] sm:$0xff] }
0x105b   :  { %v4749_v38 = vadd.f32 %v4748_v37, %v4043_v30  ;;  %6030 = vmatmul.bf16.vlgmr.msrb.gmra.mxu0 %v4940_v35  ;;  %6087 = vmatpush.bf16.msra.mxu1 %v9221_v33  ;;  %v4724_v40 = vpop.f32.mrf.mxu1  ;;  %v9224_v33 = vld [vmem:[#allocation14 + $0x650] sm:$0xff]  ;;  %v4052_v22 = vperm.slane %v10081_v29, 3  ;;  %v9238_v37 = vld [vmem:[#allocation14 + $0x6c0] sm:$0xff] }
0x105c   :  { %v4922_v42 = vmax.f32 %v4736_v36, 0.0  ;;  %6126 = vmatpush.bf16.msrb.mxu0 %v9245_v46  ;;  %v4763_v43 = vpop.f32.mrf.mxu0  ;;  %v4049_v46 = vperm.slane %v10081_v29, 0  ;;  %v9232_v35 = vld [vmem:[#allocation14 + $0x690] sm:$0xff]  ;;  %v9214_v36 = vld [vmem:[#allocation14 + $0x600] sm:$0xff] }
0x105d   :  { %v4923_v45 = vmax.f32 %v4749_v38, 0.0  ;;  %v9253_v38 = vld [vmem:[#allocation14 + $0x738] sm:$0xff] }
0x105e   :  { %v4938_v39 = vpack.c.bf16 %v4922_v42, %v4922_v42  ;;  %v9223_v42 = vld [vmem:[#allocation14 + $0x648] sm:$0xff] }
0x105f   :  { %v4939_v51 = vpack.c.bf16 %v4923_v45, %v4923_v45  ;;  %6088 = vmatpush.bf16.msra.mxu1 %v9220_v41  ;;  %v9277_v41 = vld [vmem:[#allocation14 + $0x7f8] sm:$0xff]  ;;  %v9231_v45 = vld [vmem:[#allocation14 + $0x688] sm:$0xff] }
0x1060   :  { %6127 = vmatpush.bf16.msrb.mxu0 %v9244_v44  ;;  %6004 = vmatmul.bf16.vlgmr.msrb.gmra.mxu2 %v4938_v39 }
0x1061   :  { %6017 = vmatmul.bf16.vlgmr.msrb.gmra.mxu3 %v4939_v51  ;;  %6100 = vmatpush.bf16.msrb.mxu2 %v9229_v47  ;;  %v4737_v55 = vpop.f32.mrf.mxu2 }
0x1062   :  { %6113 = vmatpush.bf16.msrb.mxu3 %v9237_v50  ;;  %v4750_v58 = vpop.f32.mrf.mxu3  ;;  %v4050_v50 = vperm.slane %v10081_v29, 1  ;;  %v9276_v55 = vld [vmem:[#allocation14 + $0x7f0] sm:$0xff] }
0x1063   :  { %6089 = vmatpush.bf16.msra.mxu1 %v9219_v48  ;;  %v4774_v31 = vpop.f32.mrf.mxu1  ;;  %v4051_v48 = vperm.slane %v10081_v29, 2 }
0x1064   :  { %6128 = vmatpush.bf16.msrb.mxu0 %v9243_v53  ;;  %v4775_v61 = vadd.f32 %v4774_v31, %v4045_v54  ;;  %v4813_v19 = vpop.f32.mrf.mxu0  ;;  %v9252_v53 = vld [vmem:[#allocation14 + $0x730] sm:$0xff]  ;;  %v9261_v31 = vld [vmem:[#allocation14 + $0x778] sm:$0xff] }
0x1065   :  { %v4814_v15 = vadd.f32 %v4813_v19, %v4048_v56  ;;  %6101 = vmatpush.bf16.msrb.mxu2 %v9228_v57  ;;  %v9222_v56 = vld [vmem:[#allocation14 + $0x640] sm:$0xff]  ;;  %v9269_v19 = vld [vmem:[#allocation14 + $0x7b8] sm:$0xff] }
0x1066   :  { %v4925_v0 = vmax.f32 %v4775_v61, 0.0  ;;  %6114 = vmatpush.bf16.msrb.mxu3 %v9236_v59  ;;  %v9230_v59 = vld [vmem:[#allocation14 + $0x680] sm:$0xff] }
0x1067   :  { %v4928_v3 = vmax.f32 %v4814_v15, 0.0  ;;  %6090 = vmatpush.bf16.msra.mxu1 %v9218_v60 }
0x1068   :  { %v4941_v6 = vpack.c.bf16 %v4925_v0, %v4925_v0  ;;  %6129 = vmatpush.bf16.msrb.mxu0 %v9242_v17 }
0x1069   :  { %v4944_v10 = vpack.c.bf16 %v4928_v3, %v4928_v3  ;;  %6102 = vmatpush.bf16.msrb.mxu2 %v9227_v63  ;;  %v4787_v11 = vpop.f32.mrf.mxu2  ;;  %v9251_v63 = vld [vmem:[#allocation14 + $0x728] sm:$0xff] }
0x106a   :  { %6115 = vmatpush.bf16.msrb.mxu3 %v9235_v1  ;;  %v4788_v16 = vadd.f32 %v4787_v11, %v4046_v2  ;;  %v4800_v13 = vpop.f32.mrf.mxu3  ;;  %6043 = vmatmul.bf16.vlgmr.msrb.gmra.mxu1 %v4941_v6  ;;  %v9275_v2 = vld [vmem:[#allocation14 + $0x7e8] sm:$0xff]  ;;  %v9268_v6 = vld [vmem:[#allocation14 + $0x7b0] sm:$0xff]  ;;  %v9274_v11 = vld [vmem:[#allocation14 + $0x7e0] sm:$0xff] }
0x106b   :  { %v4801_v21 = vadd.f32 %v4800_v13, %v4047_v4  ;;  %6082 = vmatmul.bf16.vlgmr.msra.gmra.mxu0 %v4944_v10  ;;  %6091 = vmatpush.bf16.msra.mxu1 %v9217_v5  ;;  %v4776_v49 = vpop.f32.mrf.mxu1  ;;  %v9260_v4 = vld [vmem:[#allocation14 + $0x770] sm:$0xff]  ;;  %v9250_v10 = vld [vmem:[#allocation14 + $0x720] sm:$0xff] }
0x106c   :  { %v4926_v62 = vmax.f32 %v4788_v16, 0.0  ;;  %6130 = vmatpush.bf16.msrb.mxu0 %v9241_v7  ;;  %v4815_v25 = vpop.f32.mrf.mxu0  ;;  %v9259_v16 = vld [vmem:[#allocation14 + $0x768] sm:$0xff]  ;;  %v9273_v49 = vld [vmem:[#allocation14 + $0x7d8] sm:$0xff] }
0x106d   :  { %v4927_v12 = vmax.f32 %v4801_v21, 0.0  ;;  %6103 = vmatpush.bf16.msrb.mxu2 %v9226_v14  ;;  %v9249_v21 = vld [vmem:[#allocation14 + $0x718] sm:$0xff]  ;;  %v9248_v25 = vld [vmem:[#allocation14 + $0x710] sm:$0xff] }
0x106e   :  { %v4942_v52 = vpack.c.bf16 %v4926_v62, %v4926_v62  ;;  %6116 = vmatpush.bf16.msrb.mxu3 %v9234_v20  ;;  %v9267_v20 = vld [vmem:[#allocation14 + $0x7a8] sm:$0xff]  ;;  %v9266_v62 = vld [vmem:[#allocation14 + $0x7a0] sm:$0xff] }
0x106f   :  { %v4943_v27 = vpack.c.bf16 %v4927_v12, %v4927_v12  ;;  %6092 = vmatpush.bf16.msra.mxu1 %v9216_v24  ;;  %v9258_v24 = vld [vmem:[#allocation14 + $0x760] sm:$0xff]  ;;  %v9257_v12 = vld [vmem:[#allocation14 + $0x758] sm:$0xff] }
0x1070   :  { %6131 = vmatpush.bf16.msrb.mxu0 %v9240_v8  ;;  %6056 = vmatmul.bf16.vlgmr.msra.gmra.mxu2 %v4942_v52  ;;  %v9272_v8 = vld [vmem:[#allocation14 + $0x7d0] sm:$0xff]  ;;  %v9247_v52 = vld [vmem:[#allocation14 + $0x708] sm:$0xff] }
0x1071   :  { %6069 = vmatmul.bf16.vlgmr.msra.gmra.mxu3 %v4943_v27  ;;  %6104 = vmatpush.bf16.msrb.mxu2 %v9225_v23  ;;  %v4789_v30 = vpop.f32.mrf.mxu2  ;;  %v9265_v23 = vld [vmem:[#allocation14 + $0x798] sm:$0xff]  ;;  %v4053_v27 = vperm.slane %v10081_v29, 4 }
0x1072   :  { %6117 = vmatpush.bf16.msrb.mxu3 %v9233_v26  ;;  %v4802_v34 = vpop.f32.mrf.mxu3  ;;  %v9271_v26 = vld [vmem:[#allocation14 + $0x7c8] sm:$0xff]  ;;  %v9264_v30 = vld [vmem:[#allocation14 + $0x790] sm:$0xff] }
0x1073   :  { %6093 = vmatpush.bf16.msra.mxu1 %v9215_v28  ;;  %v9256_v28 = vld [vmem:[#allocation14 + $0x750] sm:$0xff] }
0x1074   :  { %6132 = vmatpush.bf16.msrb.mxu0 %v9239_v32  ;;  %v4826_v40 = vpop.f32.mrf.mxu1  ;;  %v4056_v32 = vperm.slane %v10081_v29, 7 }
0x1075   :  { %6105 = vmatpush.bf16.msrb.mxu2 %v9224_v33  ;;  %v4827_v43 = vadd.f32 %v4826_v40, %v4049_v46  ;;  %v9246_v33 = vld [vmem:[#allocation14 + $0x700] sm:$0xff] }
0x1076   :  { %6118 = vmatpush.bf16.msrb.mxu3 %v9232_v35  ;;  %v9270_v46 = vld [vmem:[#allocation14 + $0x7c0] sm:$0xff] }
0x1077   :  { %v4865_v44 = vpop.f32.mrf.mxu0  ;;  %6094 = vmatpush.bf16.msra.mxu1 %v9214_v36  ;;  %v4929_v39 = vmax.f32 %v4827_v43, 0.0  ;;  %v9255_v36 = vld [vmem:[#allocation14 + $0x748] sm:$0xff]  ;;  %v4055_v43 = vperm.slane %v10081_v29, 6 }
0x1078   :  { %v4866_v47 = vadd.f32 %v4865_v44, %v4052_v22  ;;  %6133 = vmatpush.bf16.msrb.mxu0 %v9238_v37 }
0x1079   :  { %6106 = vmatpush.bf16.msrb.mxu2 %v9223_v42  ;;  %v4945_v54 = vpack.c.bf16 %v4929_v39, %v4929_v39 }
0x107a   :  { %v4932_v51 = vmax.f32 %v4866_v47, 0.0  ;;  %6119 = vmatpush.bf16.msrb.mxu3 %v9231_v45  ;;  %v4839_v58 = vpop.f32.mrf.mxu2  ;;  %v9254_v45 = vld [vmem:[#allocation14 + $0x740] sm:$0xff] }
0x107b   :  { %6139 = vmatpush.bf16.msrb.mxu1 %v9253_v38  ;;  %v4840_v60 = vadd.f32 %v4839_v58, %v4050_v50  ;;  %v9263_v38 = vld [vmem:[#allocation14 + $0x788] sm:$0xff]  ;;  %v9262_v50 = vld [vmem:[#allocation14 + $0x780] sm:$0xff] }
0x107c   :  { %6178 = vmatpush.bf16.msra.mxu0 %v9277_v41  ;;  %v4948_v57 = vpack.c.bf16 %v4932_v51, %v4932_v51  ;;  %6095 = vmatmul.bf16.vlgmr.msra.gmra.mxu1 %v4945_v54  ;;  %v4828_v15 = vpop.f32.mrf.mxu1  ;;  %v4054_v41 = vperm.slane %v10081_v29, 5 }
0x107d   :  { %v4852_v61 = vpop.f32.mrf.mxu3  ;;  %v4930_v0 = vmax.f32 %v4840_v60, 0.0  ;;  %6107 = vmatpush.bf16.msrb.mxu2 %v9222_v56 }
0x107e   :  { %v4853_v17 = vadd.f32 %v4852_v61, %v4051_v48  ;;  %6134 = vmatmul.bf16.vlgmr.msrb.gmra.mxu0 %v4948_v57  ;;  %6120 = vmatpush.bf16.msrb.mxu3 %v9230_v59 }
0x107f   :  { %6140 = vmatpush.bf16.msrb.mxu1 %v9252_v53  ;;  %v4867_v1 = vpop.f32.mrf.mxu0  ;;  %v4946_v5 = vpack.c.bf16 %v4930_v0, %v4930_v0 }
0x1080   :  { %6179 = vmatpush.bf16.msra.mxu0 %v9276_v55  ;;  %v4931_v3 = vmax.f32 %v4853_v17, 0.0 }
0x1081   :  { %6152 = vmatpush.bf16.msra.mxu2 %v9261_v31 }
0x1082   :  { %6165 = vmatpush.bf16.msra.mxu3 %v9269_v19  ;;  %v4947_v7 = vpack.c.bf16 %v4931_v3, %v4931_v3  ;;  %6108 = vmatmul.bf16.vlgmr.msrb.gmra.mxu2 %v4946_v5  ;;  %v4841_v14 = vpop.f32.mrf.mxu2 }
0x1083   :  { %6141 = vmatpush.bf16.msrb.mxu1 %v9251_v63 }
0x1084   :  { %6180 = vmatpush.bf16.msra.mxu0 %v9275_v2  ;;  %6121 = vmatmul.bf16.vlgmr.msrb.gmra.mxu3 %v4947_v7 }
0x1085   :  { %6153 = vmatpush.bf16.msra.mxu2 %v9260_v4  ;;  %v4854_v13 = vpop.f32.mrf.mxu3 }
0x1086   :  { %6166 = vmatpush.bf16.msra.mxu3 %v9268_v6 }
0x1087   :  { %6142 = vmatpush.bf16.msrb.mxu1 %v9250_v10  ;;  %v9321_v10 = vld [vmem:[#allocation16 + $0x1] ss:$0 sm:$0xff] }
0x1088   :  { %6181 = vmatpush.bf16.msra.mxu0 %v9274_v11 }
0x1089   :  { %6154 = vmatpush.bf16.msra.mxu2 %v9259_v16 }
0x108a   :  { %6167 = vmatpush.bf16.msra.mxu3 %v9267_v20 }
0x108b   :  { %6143 = vmatpush.bf16.msrb.mxu1 %v9249_v21 }
0x108c   :  { %6182 = vmatpush.bf16.msra.mxu0 %v9273_v49 }
0x108d   :  { %6155 = vmatpush.bf16.msra.mxu2 %v9258_v24 }
0x108e   :  { %6168 = vmatpush.bf16.msra.mxu3 %v9266_v62 }
0x108f   :  { %6144 = vmatpush.bf16.msrb.mxu1 %v9248_v25 }
0x1090   :  { %6183 = vmatpush.bf16.msra.mxu0 %v9272_v8 }
0x1091   :  { %6156 = vmatpush.bf16.msra.mxu2 %v9257_v12 }
0x1092   :  { %6169 = vmatpush.bf16.msra.mxu3 %v9265_v23 }
0x1093   :  { %6145 = vmatpush.bf16.msrb.mxu1 %v9247_v52 }
0x1094   :  { %v4878_v34 = vpop.f32.mrf.mxu1  ;;  %6184 = vmatpush.bf16.msra.mxu0 %v9271_v26 }
0x1095   :  { %v4879_v35 = vadd.f32 %v4878_v34, %v4053_v27  ;;  %6157 = vmatpush.bf16.msra.mxu2 %v9256_v28 }
0x1096   :  { %6170 = vmatpush.bf16.msra.mxu3 %v9264_v30 }
0x1097   :  { %v4917_v22 = vpop.f32.mrf.mxu0  ;;  %v4933_v40 = vmax.f32 %v4879_v35, 0.0  ;;  %6146 = vmatpush.bf16.msrb.mxu1 %v9246_v33 }
0x1098   :  { %v4918_v37 = vadd.f32 %v4917_v22, %v4056_v32  ;;  %6185 = vmatpush.bf16.msra.mxu0 %v9270_v46 }
0x1099   :  { %v4949_v44 = vpack.c.bf16 %v4933_v40, %v4933_v40  ;;  %6158 = vmatpush.bf16.msra.mxu2 %v9255_v36 }
0x109a   :  { %v4936_v42 = vmax.f32 %v4918_v37, 0.0  ;;  %v4891_v39 = vpop.f32.mrf.mxu2  ;;  %6171 = vmatpush.bf16.msra.mxu3 %v9263_v38 }
0x109b   :  { %v4892_v51 = vadd.f32 %v4891_v39, %v4054_v41  ;;  %v4904_v48 = vpop.f32.mrf.mxu3  ;;  %6147 = vmatmul.bf16.vlgmr.msrb.gmra.mxu1 %v4949_v44 }
0x109c   :  { %v4952_v47 = vpack.c.bf16 %v4936_v42, %v4936_v42  ;;  %v4905_v53 = vadd.f32 %v4904_v48, %v4055_v43  ;;  %v4880_v54 = vpop.f32.mrf.mxu1 }
0x109d   :  { %v4934_v55 = vmax.f32 %v4892_v51, 0.0  ;;  %6159 = vmatpush.bf16.msra.mxu2 %v9254_v45 }
0x109e   :  { %6186 = vmatmul.bf16.vlgmr.msra.gmra.mxu0 %v4952_v47  ;;  %v4935_v57 = vmax.f32 %v4905_v53, 0.0  ;;  %6172 = vmatpush.bf16.msra.mxu3 %v9262_v50  ;;  %v9285_v50 = vld [vmem:[#allocation17 + $0x38] sm:$0xff] }
0x109f   :  { %v4919_v56 = vpop.f32.mrf.mxu0  ;;  %v4950_v58 = vpack.c.bf16 %v4934_v55, %v4934_v55  ;;  %6294 = vmatpush.bf16.msra.mxu1 %v9285_v50 }
0x10a0   :  { %v4951_v29 = vpack.c.bf16 %v4935_v57, %v4935_v57  ;;  %v9284_v56 = vld [vmem:[#allocation17 + $0x30] sm:$0xff]  ;;  %v9283_v57 = vld [vmem:[#allocation17 + $0x28] sm:$0xff] }
0x10a1   :  { %6160 = vmatmul.bf16.vlgmr.msra.gmra.mxu2 %v4950_v58  ;;  %v9282_v58 = vld [vmem:[#allocation17 + $0x20] sm:$0xff] }
0x10a2   :  { %6173 = vmatmul.bf16.vlgmr.msra.gmra.mxu3 %v4951_v29  ;;  %v4893_v59 = vpop.f32.mrf.mxu2  ;;  %v9281_v29 = vld [vmem:[#allocation17 + $0x18] sm:$0xff] }
0x10a3   :  { %v4906_v31 = vpop.f32.mrf.mxu3  ;;  %6295 = vmatpush.bf16.msra.mxu1 %v9284_v56  ;;  %v9279_v59 = vld [vmem:[#allocation17 + $0x8] sm:$0xff] }
0x10a4   :  { %v9278_v31 = vld [vmem:[#allocation17] sm:$0xff] }
0x10a7   :  { %6296 = vmatpush.bf16.msra.mxu1 %v9283_v57 }
0x10ab   :  { %6297 = vmatpush.bf16.msra.mxu1 %v9282_v58 }
0x10af   :  { %6298 = vmatpush.bf16.msra.mxu1 %v9281_v29 }
0x10d7   :  { %v5992_v60 = vpop.f32.mrf.mxu1 }
0x10d8   :  { %v6031_v61 = vpop.f32.mrf.mxu0  ;;  %v5993_v11 = vadd.f32 %v9321_v10, %v5992_v60 }
0x10df   :  { %v5994_v19 = vpop.f32.mrf.mxu1 }
0x10e0   :  { %v6033_v17 = vpop.f32.mrf.mxu0 }
0x10e3   :  { %v6005_v15 = vpop.f32.mrf.mxu2 }
0x10e4   :  { %v6018_v63 = vpop.f32.mrf.mxu3  ;;  %v6006_v13 = vadd.f32 %v6005_v15, %v5993_v11  ;;  %v9324_v11 = vld [vmem:[#allocation19] ss:$0 sm:$0xff] }
0x10e6   :  { %v6019_v49 = vadd.f32 %v6018_v63, %v6006_v13 }
0x10e7   :  { %v6044_v0 = vpop.f32.mrf.mxu1 }
0x10e8   :  { %v6083_v1 = vpop.f32.mrf.mxu0  ;;  %v6032_v25 = vadd.f32 %v6031_v61, %v6019_v49 }
0x10ea   :  { %v6045_v23 = vadd.f32 %v6044_v0, %v6032_v25 }
0x10eb   :  { %v6007_v2 = vpop.f32.mrf.mxu2 }
0x10ec   :  { %v6020_v3 = vpop.f32.mrf.mxu3  ;;  %v9322_v2 = vld [vmem:[%s10116_s14 + $0x1] ss:$0 sm:$0xff] }
0x10ef   :  { %v6046_v4 = vpop.f32.mrf.mxu1 }
0x10f0   :  { %v6085_v5 = vpop.f32.mrf.mxu0 }
0x10f1   :  { %v9323_v5 = vld [vmem:[%s10117_s15 + $0x1] ss:$0 sm:$0xff] }
0x10f3   :  { %v6057_v6 = vpop.f32.mrf.mxu2 }
0x10f4   :  { %v6070_v7 = vpop.f32.mrf.mxu3  ;;  %v6058_v52 = vadd.f32 %v6057_v6, %v6045_v23 }
0x10f6   :  { %v6071_v26 = vadd.f32 %v6070_v7, %v6058_v52 }
0x10f8   :  { %v6084_v32 = vadd.f32 %v6083_v1, %v6071_v26 }
0x10f9   :  { %v6096_v14 = vpop.f32.mrf.mxu1 }
0x10fa   :  { %v6097_v30 = vadd.f32 %v6096_v14, %v6084_v32 }
0x10fb   :  { %v6135_v16 = vpop.f32.mrf.mxu0  ;;  %v6059_v20 = vpop.f32.mrf.mxu2 }
0x10fc   :  { %v6072_v21 = vpop.f32.mrf.mxu3 }
0x1101   :  { %v6098_v24 = vpop.f32.mrf.mxu1 }
0x1103   :  { %v6137_v62 = vpop.f32.mrf.mxu0 }
0x1105   :  { %v6109_v8 = vpop.f32.mrf.mxu2 }
0x1106   :  { %v6110_v34 = vadd.f32 %v6109_v8, %v6097_v30 }
0x1107   :  { %v6122_v12 = vpop.f32.mrf.mxu3 }
0x1108   :  { %v6123_v35 = vadd.f32 %v6122_v12, %v6110_v34 }
0x110a   :  { %v6136_v36 = vadd.f32 %v6135_v16, %v6123_v35 }
0x110d   :  { %v6111_v27 = vpop.f32.mrf.mxu2 }
0x110f   :  { %v6124_v28 = vpop.f32.mrf.mxu3 }
0x1118   :  { %v6148_v33 = vpop.f32.mrf.mxu1 }
0x1119   :  { %v6149_v38 = vadd.f32 %v6148_v33, %v6136_v36 }
0x111b   :  { %v6187_v46 = vpop.f32.mrf.mxu0 }
0x1120   :  { %v6150_v22 = vpop.f32.mrf.mxu1 }
0x1123   :  { %v6189_v37 = vpop.f32.mrf.mxu0 }
0x1124   :  { %v6161_v40 = vpop.f32.mrf.mxu2 }
0x1125   :  { %v6162_v41 = vadd.f32 %v6161_v40, %v6149_v38  ;;  %v6174_v42 = vpop.f32.mrf.mxu3 }
0x1127   :  { %v6175_v43 = vadd.f32 %v6174_v42, %v6162_v41 }
0x1129   :  { %v6188_v44 = vadd.f32 %v6187_v46, %v6175_v43 }
0x112b   :  { %v6191_v45 = vadd.f32 %v6188_v44, %v10049_v18  ;;  %v9280_v18 = vld [vmem:[#allocation17 + $0x10] sm:$0xff] }
0x112c   :  { %v6163_v47 = vpop.f32.mrf.mxu2  ;;  %6299 = vmatpush.bf16.msra.mxu1 %v9280_v18 }
0x112d   :  { %v6176_v39 = vpop.f32.mrf.mxu3  ;;  %6196 = vadd.xlane.f32.xlu1 %v6191_v45 }
0x1130   :  { %6300 = vmatpush.bf16.msra.mxu1 %v9279_v59 }
0x1134   :  { %6301 = vmatpush.bf16.msra.mxu1 %v9278_v31 }
0x11a0   :  { %v6197_v51 = vpop.xlane.xlu1 %6196 }
0x11a1   :  { %v6198_v48 = vmul.f32 0.03125, %v6197_v51 }
0x11a3   :  { %v6199_v53 = vsub.f32 %v6191_v45, %v6198_v48 }
0x11a5   :  { %v6200_v54 = vmul.f32 %v9906_v9, %v6199_v53 }
0x11a7   :  { %v6201_v55 = vmul.f32 %v6200_v54, %v6200_v54 }
0x11a9   :  { %6202 = vadd.xlane.f32.xlu0 %v6201_v55 }
0x121c   :  { %v6203_v60 = vpop.xlane.xlu0 %6202 }
0x121d   :  { %v6204_v61 = vmul.f32 0.03125, %v6203_v60 }
0x121f   :  { %v6205_v19 = vadd.f32 1e-05, %v6204_v61 }
0x1221   :  { %9363 = vrsqrt.f32 %v6205_v19  ;;  %vm6212_vm5 = vweird.f32 %v6205_v19 }
0x1227   :  { %v9364_v9 = vpop.eup %9363 }
0x1228   :  { %v6207_v17 = vmul.f32 %v9364_v9, %v6205_v19  ;;  %vm6213_vm4 = vweird.f32 %v9364_v9 }
0x1229   :  { %vm6214_vm6 = vmor %vm6212_vm5, %vm6213_vm4 }
0x122a   :  { %v6208_v15 = vmul.f32 %v9364_v9, %v6207_v17 }
0x122c   :  { %v6209_v63 = vmul.f32 0.5, %v6208_v15 }
0x122e   :  { %v6210_v0 = vsub.f32 1.5, %v6209_v63 }
0x1230   :  { %v6211_v1 = vmul.f32 %v9364_v9, %v6210_v0 }
0x1232   :  { %v6215_v3 = vsel %vm6214_vm6, %v9364_v9, %v6211_v1 }
0x1233   :  { %v6216_v4 = vmul.f32 %v6215_v3, %v6200_v54 }
0x1235   :  { %v6220_v6 = vmul.f32 %v9322_v2, %v6216_v4 }
0x1237   :  { %v6224_v7 = vadd.f32 %v9323_v5, %v6220_v6 }
0x1239   :  { %v6225_v10 = vpack.c.bf16 %v6224_v7, %v6224_v7 }
0x123b   :  { %6302 = vmatmul.bf16.vlgmr.msra.gmra.mxu1 %v6225_v10 }
0x12b8   :  { %v6303_v14 = vpop.f32.mrf.mxu1 }
0x12b9   :  { %v6304_v16 = vadd.f32 %v9324_v11, %v6303_v14 }
0x12bb   :  { %6307 = vst [vmem:[#allocation20] sm:$0xff] %v6304_v16 }
0x12bc   :  { %6318 = dma.vmem_to_hbm [thread:$0]  %s6314_s17, 128, %s6316_s4, [#allocation4]  }
0x12c0   :  { %v6305_v13 = vpop.f32.mrf.mxu1 }
0x12c1   :  { %9665 = dma.done.wait [#allocation4], 128  }
0x12c2   :  { %9666 = vsyncadd [#allocation4], 4294967168 }
0x12c3   :  { %6323 = vsyncpa [#allocation3], 1 }
0x12c4   :  { %6324 = vsyncpa [#allocation6], 1 }
0x12c5   :  { %6325 = vsyncpa [#allocation9], 1 }
0x12c6   :  { %6326 = vsyncpa [#allocation12], 1 }
0x12c7   :  { %6327 = vsyncpa [#allocation15], 1 }
0x12c8   :  { %6328 = vsyncpa [#allocation18], 1 }
0x12c9   :  { %6329 = vsyncpa [#allocation4], 1 }

</bundles_post_ra>
